<compile_context>
chip_gen: v7x
topology: tpu7x:2x2x1
jax: 0.10.0
libtpu: 0.0.40
codegen_flags: <defaults>
</compile_context>

<pallas_src>
import functools

import numpy as np
import jax
import jax.numpy as jnp
from jax import lax
from jax.experimental import pallas as pl
from jax.experimental.pallas import tpu as pltpu

# ----------------------------- config (cfg.TRAIN.*) -----------------------------
RPN_CLOBBER_POSITIVES = False
RPN_NEGATIVE_OVERLAP = 0.3
RPN_POSITIVE_OVERLAP = 0.7
RPN_FG_FRACTION = 0.5
RPN_BATCHSIZE = 256
RPN_BBOX_INSIDE_WEIGHT = 1.0   # cfg.TRAIN.RPN_BBOX_INSIDE_WEIGHTS[0]
RPN_POSITIVE_WEIGHT = -1.0

LANE = 128
CHUNK = 8        # sublanes per in-kernel chunk: one (8,128) f32 vreg per array
NSPLIT = 2       # grid split along the anchor axis (2 TensorCores on v7x at B=1)


# ----------------------------- anchor generation (numpy, deterministic) ---------
def _whctrs(anchor):
    w = anchor[2] - anchor[0] + 1
    h = anchor[3] - anchor[1] + 1
    x_ctr = anchor[0] + 0.5 * (w - 1)
    y_ctr = anchor[1] + 0.5 * (h - 1)
    return w, h, x_ctr, y_ctr


def _mkanchors(ws, hs, x_ctr, y_ctr):
    ws = ws[:, np.newaxis]
    hs = hs[:, np.newaxis]
    return np.hstack((x_ctr - 0.5 * (ws - 1), y_ctr - 0.5 * (hs - 1),
                      x_ctr + 0.5 * (ws - 1), y_ctr + 0.5 * (hs - 1)))


def _ratio_enum(anchor, ratios):
    w, h, x_ctr, y_ctr = _whctrs(anchor)
    size = w * h
    size_ratios = size / ratios
    ws = np.round(np.sqrt(size_ratios))
    hs = np.round(ws * ratios)
    return _mkanchors(ws, hs, x_ctr, y_ctr)


def _scale_enum(anchor, scales):
    w, h, x_ctr, y_ctr = _whctrs(anchor)
    ws = w * scales
    hs = h * scales
    return _mkanchors(ws, hs, x_ctr, y_ctr)


def generate_anchors(base_size=16, ratios=np.array([0.5, 1, 2]),
                     scales=2 ** np.arange(3, 6)):
    base_anchor = np.array([1, 1, base_size, base_size], dtype=np.float64) - 1
    ratio_anchors = _ratio_enum(base_anchor, np.asarray(ratios, dtype=np.float64))
    anchors = np.vstack([_scale_enum(ratio_anchors[i, :], np.asarray(scales, np.float64))
                         for i in range(ratio_anchors.shape[0])])
    return anchors.astype(np.float32)


@functools.lru_cache(maxsize=None)
def _prepare_anchors(H, W, feat_stride, scales, ratios):
    """Host-side anchor + shift generation, cached per config and uploaded once."""
    base_anchors = generate_anchors(scales=np.array(scales), ratios=np.array(ratios))
    A = base_anchors.shape[0]
    shift_x = np.arange(0, W) * feat_stride
    shift_y = np.arange(0, H) * feat_stride
    sx, sy = np.meshgrid(shift_x, shift_y)
    shifts = np.stack([sx.ravel(), sy.ravel(), sx.ravel(), sy.ravel()], axis=1)
    all_anchors = (base_anchors[None, :, :] + shifts[:, None, :].astype(np.float32))
    all_anchors = all_anchors.reshape(-1, 4).astype(np.float32)      # (K*A, 4)
    T = all_anchors.shape[0]
    quantum = LANE * CHUNK * NSPLIT
    Tp = ((T + quantum - 1) // quantum) * quantum
    pad = Tp - T
    if pad:
        # padded anchors sit far outside the image -> inside mask False -> fill values
        all_anchors = np.concatenate(
            [all_anchors, np.full((pad, 4), -1e8, np.float32)], axis=0)
    S_pad = Tp // LANE
    anc = jax.device_put(np.ascontiguousarray(all_anchors.T.reshape(4, S_pad, LANE)))
    return anc, A, T, S_pad


# ----------------------------- shared in-kernel helpers --------------------------
def _anchor_chunk(anc_ref, off, ch, im_w, im_h):
    """Load one (ch, 128) anchor chunk and derive per-anchor quantities."""
    ax1 = anc_ref[0, pl.ds(off, ch), :]
    ay1 = anc_ref[1, pl.ds(off, ch), :]
    ax2 = anc_ref[2, pl.ds(off, ch), :]
    ay2 = anc_ref[3, pl.ds(off, ch), :]
    aw = ax2 - ax1 + 1.0
    ah = ay2 - ay1 + 1.0
    a_area = aw * ah
    anc_zero = jnp.logical_and(aw == 1.0, ah == 1.0)
    inside = (ax1 >= 0.0) & (ay1 >= 0.0) & (ax2 < im_w) & (ay2 < im_h)
    return ax1, ay1, ax2, ay2, aw, ah, a_area, anc_zero, inside


def _iou_chunk(ax1, ay1, ax2, ay2, a_area, anc_zero, gx1, gy1, gx2, gy2):
    """IoU of one gt box (SMEM scalars) against an anchor chunk.  Used by BOTH
    kernels so that pass-2's `ov == gt_max` exact-equality test matches the
    value pass 1 reduced over (deterministic identical FP expression)."""
    gw = gx2 - gx1 + 1.0
    gh = gy2 - gy1 + 1.0
    g_area = gw * gh
    gt_zero = jnp.logical_and(gw == 1.0, gh == 1.0)       # zero-padded gt row
    iw = jnp.maximum(jnp.minimum(ax2, gx2) - jnp.maximum(ax1, gx1) + 1.0, 0.0)
    ih = jnp.maximum(jnp.minimum(ay2, gy2) - jnp.maximum(ay1, gy1) + 1.0, 0.0)
    inter = iw * ih
    ua = jnp.maximum(a_area + g_area - inter, 1e-10)      # guard: never inf/NaN
    # IoU only feeds 0.3/0.7 thresholds + the (consistent) argmax equality test:
    # approximate reciprocal (EUP slot) is fine, ~2^-12 relative error.
    ov = inter * pl.reciprocal(ua, approx=True)
    ov = jnp.where(gt_zero, 0.0, ov)                      # torch: zero-gt box -> 0
    ov = jnp.where(anc_zero, -1.0, ov)                    # torch: zero-anchor -> -1
    return ov


# ----------------------------- kernel 1: per-gt max IoU --------------------------
def _make_gtmax_kernel(G, n_chunks, ch):
    def kernel(gt_ref, im_ref, anc_ref, gmax_ref):
        # gt_ref: (B*G*5,) SMEM  im_ref: (B*3,) SMEM  anc_ref: (4, S_blk, L) VMEM
        # gmax_ref: (1, 1, 1, L) output block; lane g = running max IoU for gt g.
        b = pl.program_id(0)
        # The torch layer reads im_info[0] (batch 0) only -- replicated on purpose.
        im_h = jnp.floor(im_ref[0])
        im_w = jnp.floor(im_ref[1])
        base = b * (G * 5)
        lane = lax.broadcasted_iota(jnp.int32, (1, LANE), 1)     # hoisted once
        gmax_ref[0, 0, :, :] = jnp.full((1, LANE), -1e30, jnp.float32)

        @pl.loop(0, n_chunks)
        def _(c):
            off = pl.multiple_of(c * ch, ch)
            ax1, ay1, ax2, ay2, aw, ah, a_area, anc_zero, inside = \
                _anchor_chunk(anc_ref, off, ch, im_w, im_h)
            row = gmax_ref[0, 0, :, :]                           # (1, LANE)
            for g in range(G):                                   # static & small -> unrolled
                o = base + 5 * g
                ov = _iou_chunk(ax1, ay1, ax2, ay2, a_area, anc_zero,
                                gt_ref[o], gt_ref[o + 1], gt_ref[o + 2], gt_ref[o + 3])
                # gt_max over *inside* anchors only (torch computed overlaps for
                # inside anchors only).
                m_g = jnp.max(jnp.where(inside, ov, -1e30))      # scalar (XLU slot)
                row = jnp.where(lane == g, jnp.maximum(row, m_g), row)
            gmax_ref[0, 0, :, :] = row
    return kernel


# ----------------------------- kernel 2: labels + regression targets -------------
def _make_label_target_kernel(G, n_chunks, ch):
    def kernel(gt_ref, im_ref, gmax_ref, anc_ref, labels_ref, tgt_ref):
        # gmax_ref: (B*LANE,) SMEM, already gt_max==0 -> 1e-5 adjusted.
        b = pl.program_id(0)
        im_h = jnp.floor(im_ref[0])
        im_w = jnp.floor(im_ref[1])
        base = b * (G * 5)
        gbase = b * LANE

        @pl.loop(0, n_chunks)
        def _(c):
            off = pl.multiple_of(c * ch, ch)
            sl = pl.ds(off, ch)
            ax1, ay1, ax2, ay2, aw, ah, a_area, anc_zero, inside = \
                _anchor_chunk(anc_ref, off, ch, im_w, im_h)

            # ---- gt loop: carry only {max_ov, keep, best_g} (3 vregs) ----
            # (static Python loop == fori_loop(unroll=True); G is small & static)
            max_ov = jnp.full_like(aw, -1e30)
            keep = jnp.zeros_like(anc_zero)
            best_g = jnp.zeros_like(aw)
            for g in range(G):
                o = base + 5 * g
                ov = _iou_chunk(ax1, ay1, ax2, ay2, a_area, anc_zero,
                                gt_ref[o], gt_ref[o + 1], gt_ref[o + 2], gt_ref[o + 3])
                # anchor(s) achieving the per-gt max get label 1.  Outside anchors
                # may spuriously match; harmless -- the `inside` mask below resets
                # their label to -1 (same as the torch inside-only computation).
                keep = jnp.logical_or(keep, ov == gmax_ref[gbase + g])
                better = ov > max_ov                 # strict '>' keeps first-max tie-break
                max_ov = jnp.where(better, ov, max_ov)
                best_g = jnp.where(better, jnp.float32(g), best_g)

            # ---- label assignment (pre random subsampling) ----
            lab = jnp.full_like(aw, -1.0)
            if not RPN_CLOBBER_POSITIVES:
                lab = jnp.where(max_ov < RPN_NEGATIVE_OVERLAP, 0.0, lab)
            lab = jnp.where(keep, 1.0, lab)
            lab = jnp.where(max_ov >= RPN_POSITIVE_OVERLAP, 1.0, lab)
            if RPN_CLOBBER_POSITIVES:
                lab = jnp.where(max_ov < RPN_NEGATIVE_OVERLAP, 0.0, lab)
            lab = jnp.where(inside, lab, -1.0)       # _unmap fill = -1
            labels_ref[0, sl, :] = lab

            # ---- gather argmax-gt coords: G-way select chain from SMEM scalars ----
            sx1 = jnp.zeros_like(aw)
            sy1 = jnp.zeros_like(aw)
            sx2 = jnp.zeros_like(aw)
            sy2 = jnp.zeros_like(aw)
            for g in range(G):
                o = base + 5 * g
                sel = best_g == jnp.float32(g)
                sx1 = jnp.where(sel, gt_ref[o], sx1)
                sy1 = jnp.where(sel, gt_ref[o + 1], sy1)
                sx2 = jnp.where(sel, gt_ref[o + 2], sx2)
                sy2 = jnp.where(sel, gt_ref[o + 3], sy2)

            # ---- bbox_transform_batch; hoisted reciprocals reused for dx/dw, dy/dh ----
            inv_aw = pl.reciprocal(aw)
            inv_ah = pl.reciprocal(ah)
            ex_cx = ax1 + 0.5 * aw
            ex_cy = ay1 + 0.5 * ah
            gw_s = sx2 - sx1 + 1.0
            gh_s = sy2 - sy1 + 1.0
            g_cx = sx1 + 0.5 * gw_s
            g_cy = sy1 + 0.5 * gh_s
            z = jnp.zeros_like(aw)                   # _unmap fill = 0
            tgt_ref[0, 0, sl, :] = jnp.where(inside, (g_cx - ex_cx) * inv_aw, z)
            tgt_ref[0, 1, sl, :] = jnp.where(inside, (g_cy - ex_cy) * inv_ah, z)
            tgt_ref[0, 2, sl, :] = jnp.where(inside, jnp.log(gw_s * inv_aw), z)
            tgt_ref[0, 3, sl, :] = jnp.where(inside, jnp.log(gh_s * inv_ah), z)
    return kernel


# ----------------------------- jitted post-kernel glue --------------------------
@functools.partial(jax.jit, static_argnames=("A", "T", "S_pad", "H", "W"))
def _anchor_target_impl(anc, gt_boxes, im_info, rng_key, *, A, T, S_pad, H, W):
    B, G = gt_boxes.shape[0], gt_boxes.shape[1]
    Tp = S_pad * LANE
    S_blk = S_pad // NSPLIT
    n_chunks = S_blk // CHUNK

    gt_flat = gt_boxes.reshape(-1).astype(jnp.float32)   # (B*G*5,)  -> SMEM
    im_flat = im_info.reshape(-1).astype(jnp.float32)    # (B*3,)    -> SMEM

    # ---- pass 1: per-gt max IoU over inside anchors (chunked, split-parallel) ----
    gmax_part = pl.pallas_call(
        _make_gtmax_kernel(G, n_chunks, CHUNK),
        out_shape=jax.ShapeDtypeStruct((B, NSPLIT, 1, LANE), jnp.float32),
        grid_spec=pltpu.PrefetchScalarGridSpec(
            num_scalar_prefetch=0, grid=(B, NSPLIT),
            in_specs=[pl.BlockSpec(memory_space=pltpu.MemorySpace.SMEM),
                      pl.BlockSpec(memory_space=pltpu.MemorySpace.SMEM),
                      pl.BlockSpec((4, S_blk, LANE), lambda b, s: (0, s, 0))],
            out_specs=pl.BlockSpec((1, 1, 1, LANE), lambda b, s: (b, s, 0, 0))),
        compiler_params=pltpu.CompilerParams(
            dimension_semantics=("parallel", "parallel")),
    )(gt_flat, im_flat, anc)

    gmax = jnp.max(gmax_part[:, :, 0, :], axis=1)                 # (B, LANE)
    gmax = jnp.where(gmax == 0.0, 1e-5, gmax)                     # torch: gt_max==0 -> 1e-5
    gmax_flat = gmax.reshape(-1)                                  # (B*LANE,) -> SMEM

    # ---- pass 2: labels + regression targets ----
    labels_p, targets_p = pl.pallas_call(
        _make_label_target_kernel(G, n_chunks, CHUNK),
        out_shape=(jax.ShapeDtypeStruct((B, S_pad, LANE), jnp.float32),
                   jax.ShapeDtypeStruct((B, 4, S_pad, LANE), jnp.float32)),
        grid_spec=pltpu.PrefetchScalarGridSpec(
            num_scalar_prefetch=0, grid=(B, NSPLIT),
            in_specs=[pl.BlockSpec(memory_space=pltpu.MemorySpace.SMEM),   # gt
                      pl.BlockSpec(memory_space=pltpu.MemorySpace.SMEM),   # im_info
                      pl.BlockSpec(memory_space=pltpu.MemorySpace.SMEM),   # gt_max
                      pl.BlockSpec((4, S_blk, LANE), lambda b, s: (0, s, 0))],
            out_specs=[pl.BlockSpec((1, S_blk, LANE), lambda b, s: (b, s, 0)),
                       pl.BlockSpec((1, 4, S_blk, LANE), lambda b, s: (b, 0, s, 0))]),
        compiler_params=pltpu.CompilerParams(
            dimension_semantics=("parallel", "parallel")),
    )(gt_flat, im_flat, gmax_flat, anc)

    labels_pre = labels_p.reshape(B, Tp)[:, :T]                   # (B, T)

    # ---- random fg/bg subsampling via top_k (no full sorts) ----
    # TODO(synk): the PyTorch layer uses np.random.permutation (host RNG,
    # non-deterministic); jax.random with a fixed key gives the same
    # uniform-random-subset distribution, deterministically.
    num_fg = int(RPN_FG_FRACTION * RPN_BATCHSIZE)

    def _subsample(lab, key):
        kf, kb = jax.random.split(key)
        fg = lab == 1.0
        sum_fg = jnp.sum(fg)
        rf = jax.random.uniform(kf, lab.shape)
        kfg = min(num_fg, T)
        small_f = -lax.top_k(-jnp.where(fg, rf, 2.0), kfg)[0]     # kfg smallest, ascending
        thr_f = small_f[kfg - 1]
        lab = jnp.where(fg & (rf > thr_f) & (sum_fg > num_fg), -1.0, lab)

        num_bg = RPN_BATCHSIZE - jnp.sum(lab == 1.0)
        bg = lab == 0.0
        sum_bg = jnp.sum(bg)
        rb = jax.random.uniform(kb, lab.shape)
        kbg = min(RPN_BATCHSIZE, T)
        small_b = -lax.top_k(-jnp.where(bg, rb, 2.0), kbg)[0]
        idx = jnp.clip(num_bg - 1, 0, kbg - 1)
        thr_b = jnp.where(num_bg > 0, small_b[idx], -1.0)
        lab = jnp.where(bg & (rb > thr_b) & (sum_bg > num_bg), -1.0, lab)
        return lab

    keys = jax.random.split(rng_key, B)
    labels = jax.vmap(_subsample)(labels_pre, keys)               # (B, T)

    # positive/negative weights (reproduces the torch code, including its use of
    # the leftover loop index i == batch_size - 1)
    num_examples = jnp.sum(labels[B - 1] >= 0)
    pos_w = 1.0 / num_examples.astype(jnp.float32)
    neg_w = pos_w

    # ---- final layout: one transpose each; weights built directly in NCHW ----
    lab_nchw = labels.reshape(B, H, W, A).transpose(0, 3, 1, 2)   # (B, A, H, W)
    labels_out = lab_nchw.reshape(B, 1, A * H, W)

    inw_a = jnp.where(lab_nchw == 1.0, RPN_BBOX_INSIDE_WEIGHT, 0.0).astype(jnp.float32)
    outw_a = jnp.where(lab_nchw == 1.0, pos_w,
                       jnp.where(lab_nchw == 0.0, neg_w, 0.0)).astype(jnp.float32)
    inw_out = jnp.repeat(inw_a, 4, axis=1)                        # (B, 4A, H, W)
    outw_out = jnp.repeat(outw_a, 4, axis=1)

    targets_out = (targets_p.reshape(B, 4, Tp)[:, :, :T]
                   .reshape(B, 4, H, W, A)
                   .transpose(0, 4, 1, 2, 3)                      # (B, A, 4, H, W)
                   .reshape(B, 4 * A, H, W))

    return labels_out, targets_out, inw_out, outw_out


# ----------------------------- public wrapper ------------------------------------
def anchor_target_layer(rpn_cls_score, gt_boxes, im_info, num_boxes,
                        feat_stride=16, scales=(8, 16, 32),
                        ratios=(0.5, 1.0, 2.0), rng_key=None):
    del num_boxes  # unused by the torch forward as well
    assert RPN_POSITIVE_WEIGHT < 0
    assert gt_boxes.shape[1] <= LANE, "per-image gt box count must be <= 128"
    if rng_key is None:
        rng_key = jax.random.PRNGKey(1234)

    H, W = int(rpn_cls_score.shape[2]), int(rpn_cls_score.shape[3])
    anc, A, T, S_pad = _prepare_anchors(H, W, int(feat_stride),
                                        tuple(float(s) for s in scales),
                                        tuple(float(r) for r in ratios))
    outs = _anchor_target_impl(anc,
                               jnp.asarray(gt_boxes, jnp.float32),
                               jnp.asarray(im_info, jnp.float32),
                               rng_key, A=A, T=T, S_pad=S_pad, H=H, W=W)
    return list(outs)


# ----------------------------- demo ---------------------------------------------
if __name__ == "__main__":
    key = jax.random.PRNGKey(0)
    B, H, W = 2, 16, 16
    A = 9                       # 3 scales x 3 ratios
    feat_stride = 16
    G = 5                       # gt boxes per image
    im_h, im_w = 256.0, 256.0

    k1, k2, k3, k4, k5 = jax.random.split(key, 5)
    rpn_cls_score = jax.random.normal(k1, (B, 2 * A, H, W), jnp.float32)

    cx = jax.random.uniform(k2, (B, G), minval=32.0, maxval=224.0)
    cy = jax.random.uniform(k3, (B, G), minval=32.0, maxval=224.0)
    bw = jax.random.uniform(k4, (B, G), minval=16.0, maxval=96.0)
    bh = jax.random.uniform(k5, (B, G), minval=16.0, maxval=96.0)
    x1 = jnp.clip(cx - bw / 2, 0.0, im_w - 1.0)
    x2 = jnp.clip(cx + bw / 2, 0.0, im_w - 1.0)
    y1 = jnp.clip(cy - bh / 2, 0.0, im_h - 1.0)
    y2 = jnp.clip(cy + bh / 2, 0.0, im_h - 1.0)
    cls = jnp.ones((B, G), jnp.float32)
    gt_boxes = jnp.stack([x1, y1, x2, y2, cls], axis=-1).astype(jnp.float32)

    im_info = jnp.array([[im_h, im_w, 1.0]] * B, jnp.float32)
    num_boxes = jnp.array([G] * B, jnp.int32)

    outs = anchor_target_layer(rpn_cls_score, gt_boxes, im_info, num_boxes,
                               feat_stride=feat_stride,
                               scales=(8, 16, 32), ratios=(0.5, 1.0, 2.0),
                               rng_key=jax.random.PRNGKey(7))
    for o in outs:
        jax.block_until_ready(o)

    assert outs[0].shape == (B, 1, A * H, W)
    assert outs[1].shape == (B, 4 * A, H, W)
    assert outs[2].shape == (B, 4 * A, H, W)
    assert outs[3].shape == (B, 4 * A, H, W)
    assert bool(jnp.all(jnp.isfinite(outs[1])))
    print("KERNEL_OK")
</pallas_src>

<mosaic_0001>
module attributes {stable_mosaic.version = 11 : i64} {
  func.func @kernel(%arg0: i32, %arg1: i32, %arg2: memref<50xf32, #tpu.memory_space<smem>>, %arg3: memref<6xf32, #tpu.memory_space<smem>>, %arg4: memref<4x16x128xf32, #tpu.memory_space<vmem>>, %arg5: memref<1x1x1x128xf32, #tpu.memory_space<vmem>>) attributes {dimension_semantics = [#tpu.dimension_semantics<parallel>, #tpu.dimension_semantics<parallel>], iteration_bounds = array<i64: 2, 2>, scalar_prefetch = 0 : i64, scratch_operands = 0 : i64, tpu.core_type = #tpu.core_type<tc>, window_params = [{transform_indices = @transform_0, window_bounds = array<i64: 50>}, {transform_indices = @transform_1, window_bounds = array<i64: 6>}, {transform_indices = @transform_2, window_bounds = array<i64: 4, 16, 128>}, {transform_indices = @transform_3, window_bounds = array<i64: 1, 1, 1, 128>}]} {
    %c0 = arith.constant 0 : index
    %0 = memref.load %arg3[%c0] : memref<6xf32, #tpu.memory_space<smem>>
    %1 = math.floor %0 : f32
    %c1 = arith.constant 1 : index
    %2 = memref.load %arg3[%c1] : memref<6xf32, #tpu.memory_space<smem>>
    %3 = math.floor %2 : f32
    %c25_i32 = arith.constant 25 : i32
    %4 = arith.muli %arg0, %c25_i32 : i32
    %5 = tpu.iota {dimensions = array<i32: 1>} : vector<1x128xi32>
    %cst = arith.constant -1.000000e+30 : f32
    %6 = vector.broadcast %cst : f32 to vector<1x128xf32>
    %c0_0 = arith.constant 0 : index
    %c0_1 = arith.constant 0 : index
    %c0_2 = arith.constant 0 : index
    %c0_3 = arith.constant 0 : index
    %7 = vector.load %arg5[%c0_0, %c0_1, %c0_2, %c0_3] : memref<1x1x1x128xf32, #tpu.memory_space<vmem>>, vector<1x1x1x128xf32>
    %8 = vector.shape_cast %7 : vector<1x1x1x128xf32> to vector<1x128xf32>
    %9 = vector.shape_cast %6 : vector<1x128xf32> to vector<1x1x1x128xf32>
    tpu.vector_store %arg5[%c0_0, %c0_1, %c0_2, %c0_3], %9 {strides = array<i32>} : memref<1x1x1x128xf32, #tpu.memory_space<vmem>>, vector<1x1x1x128xf32>,
    %c0_i32 = arith.constant 0 : i32
    %c2_i32 = arith.constant 2 : i32
    %10 = arith.addi %c0_i32, %c2_i32 : i32
    %c1_i32 = arith.constant 1 : i32
    scf.for %arg6 = %c0_i32 to %10 step %c1_i32  : i32 {
      %c1_i32_5 = arith.constant 1 : i32
      %11 = arith.muli %arg6, %c1_i32_5 : i32
      %c0_i32_6 = arith.constant 0 : i32
      %12 = arith.addi %c0_i32_6, %11 : i32
      %c8_i32 = arith.constant 8 : i32
      %13 = arith.muli %12, %c8_i32 : i32
      %14 = tpu.assume_multiple %13, 8 : i32
      %c0_7 = arith.constant 0 : index
      %15 = arith.index_cast %14 : i32 to index
      %c0_8 = arith.constant 0 : index
      %16 = vector.load %arg4[%c0_7, %15, %c0_8] : memref<4x16x128xf32, #tpu.memory_space<vmem>>, vector<1x8x128xf32>
      %17 = vector.shape_cast %16 : vector<1x8x128xf32> to vector<8x128xf32>
      %c1_9 = arith.constant 1 : index
      %18 = arith.index_cast %14 : i32 to index
      %c0_10 = arith.constant 0 : index
      %19 = vector.load %arg4[%c1_9, %18, %c0_10] : memref<4x16x128xf32, #tpu.memory_space<vmem>>, vector<1x8x128xf32>
      %20 = vector.shape_cast %19 : vector<1x8x128xf32> to vector<8x128xf32>
      %c2 = arith.constant 2 : index
      %21 = arith.index_cast %14 : i32 to index
      %c0_11 = arith.constant 0 : index
      %22 = vector.load %arg4[%c2, %21, %c0_11] : memref<4x16x128xf32, #tpu.memory_space<vmem>>, vector<1x8x128xf32>
      %23 = vector.shape_cast %22 : vector<1x8x128xf32> to vector<8x128xf32>
      %c3 = arith.constant 3 : index
      %24 = arith.index_cast %14 : i32 to index
      %c0_12 = arith.constant 0 : index
      %25 = vector.load %arg4[%c3, %24, %c0_12] : memref<4x16x128xf32, #tpu.memory_space<vmem>>, vector<1x8x128xf32>
      %26 = vector.shape_cast %25 : vector<1x8x128xf32> to vector<8x128xf32>
      %27 = arith.subf %23, %17 : vector<8x128xf32>
      %cst_13 = arith.constant 1.000000e+00 : f32
      %28 = vector.broadcast %cst_13 : f32 to vector<8x128xf32>
      %29 = arith.addf %27, %28 : vector<8x128xf32>
      %30 = arith.subf %26, %20 : vector<8x128xf32>
      %cst_14 = arith.constant 1.000000e+00 : f32
      %31 = vector.broadcast %cst_14 : f32 to vector<8x128xf32>
      %32 = arith.addf %30, %31 : vector<8x128xf32>
      %33 = arith.mulf %29, %32 : vector<8x128xf32>
      %cst_15 = arith.constant 1.000000e+00 : f32
      %34 = vector.broadcast %cst_15 : f32 to vector<8x128xf32>
      %35 = arith.cmpf oeq, %29, %34 : vector<8x128xf32>
      %cst_16 = arith.constant 1.000000e+00 : f32
      %36 = vector.broadcast %cst_16 : f32 to vector<8x128xf32>
      %37 = arith.cmpf oeq, %32, %36 : vector<8x128xf32>
      %38 = arith.andi %35, %37 : vector<8x128xi1>
      %cst_17 = arith.constant 0.000000e+00 : f32
      %39 = vector.broadcast %cst_17 : f32 to vector<8x128xf32>
      %40 = arith.cmpf oge, %17, %39 : vector<8x128xf32>
      %cst_18 = arith.constant 0.000000e+00 : f32
      %41 = vector.broadcast %cst_18 : f32 to vector<8x128xf32>
      %42 = arith.cmpf oge, %20, %41 : vector<8x128xf32>
      %43 = arith.andi %40, %42 : vector<8x128xi1>
      %44 = vector.broadcast %3 : f32 to vector<8x128xf32>
      %45 = arith.cmpf olt, %23, %44 : vector<8x128xf32>
      %46 = arith.andi %43, %45 : vector<8x128xi1>
      %47 = vector.broadcast %1 : f32 to vector<8x128xf32>
      %48 = arith.cmpf olt, %26, %47 : vector<8x128xf32>
      %49 = arith.andi %46, %48 : vector<8x128xi1>
      %c0_19 = arith.constant 0 : index
      %c0_20 = arith.constant 0 : index
      %c0_21 = arith.constant 0 : index
      %c0_22 = arith.constant 0 : index
      %50 = vector.load %arg5[%c0_19, %c0_20, %c0_21, %c0_22] : memref<1x1x1x128xf32, #tpu.memory_space<vmem>>, vector<1x1x1x128xf32>
      %51 = vector.shape_cast %50 : vector<1x1x1x128xf32> to vector<1x128xf32>
      %c0_i32_23 = arith.constant 0 : i32
      %52 = arith.addi %4, %c0_i32_23 : i32
      %53 = arith.index_cast %52 : i32 to index
      %54 = memref.load %arg2[%53] : memref<50xf32, #tpu.memory_space<smem>>
      %c1_i32_24 = arith.constant 1 : i32
      %55 = arith.addi %52, %c1_i32_24 : i32
      %56 = arith.index_cast %55 : i32 to index
      %57 = memref.load %arg2[%56] : memref<50xf32, #tpu.memory_space<smem>>
      %c2_i32_25 = arith.constant 2 : i32
      %58 = arith.addi %52, %c2_i32_25 : i32
      %59 = arith.index_cast %58 : i32 to index
      %60 = memref.load %arg2[%59] : memref<50xf32, #tpu.memory_space<smem>>
      %c3_i32 = arith.constant 3 : i32
      %61 = arith.addi %52, %c3_i32 : i32
      %62 = arith.index_cast %61 : i32 to index
      %63 = memref.load %arg2[%62] : memref<50xf32, #tpu.memory_space<smem>>
      %64 = arith.subf %60, %54 : f32
      %cst_26 = arith.constant 1.000000e+00 : f32
      %65 = arith.addf %64, %cst_26 : f32
      %66 = arith.subf %63, %57 : f32
      %cst_27 = arith.constant 1.000000e+00 : f32
      %67 = arith.addf %66, %cst_27 : f32
      %68 = arith.mulf %65, %67 : f32
      %cst_28 = arith.constant 1.000000e+00 : f32
      %69 = arith.cmpf oeq, %65, %cst_28 : f32
      %cst_29 = arith.constant 1.000000e+00 : f32
      %70 = arith.cmpf oeq, %67, %cst_29 : f32
      %71 = arith.andi %69, %70 : i1
      %72 = vector.broadcast %60 : f32 to vector<8x128xf32>
      %73 = arith.minimumf %23, %72 : vector<8x128xf32>
      %74 = vector.broadcast %54 : f32 to vector<8x128xf32>
      %75 = arith.maximumf %17, %74 : vector<8x128xf32>
      %76 = arith.subf %73, %75 : vector<8x128xf32>
      %cst_30 = arith.constant 1.000000e+00 : f32
      %77 = vector.broadcast %cst_30 : f32 to vector<8x128xf32>
      %78 = arith.addf %76, %77 : vector<8x128xf32>
      %cst_31 = arith.constant 0.000000e+00 : f32
      %79 = vector.broadcast %cst_31 : f32 to vector<8x128xf32>
      %80 = arith.maximumf %78, %79 : vector<8x128xf32>
      %81 = vector.broadcast %63 : f32 to vector<8x128xf32>
      %82 = arith.minimumf %26, %81 : vector<8x128xf32>
      %83 = vector.broadcast %57 : f32 to vector<8x128xf32>
      %84 = arith.maximumf %20, %83 : vector<8x128xf32>
      %85 = arith.subf %82, %84 : vector<8x128xf32>
      %cst_32 = arith.constant 1.000000e+00 : f32
      %86 = vector.broadcast %cst_32 : f32 to vector<8x128xf32>
      %87 = arith.addf %85, %86 : vector<8x128xf32>
      %cst_33 = arith.constant 0.000000e+00 : f32
      %88 = vector.broadcast %cst_33 : f32 to vector<8x128xf32>
      %89 = arith.maximumf %87, %88 : vector<8x128xf32>
      %90 = arith.mulf %80, %89 : vector<8x128xf32>
      %91 = vector.broadcast %68 : f32 to vector<8x128xf32>
      %92 = arith.addf %33, %91 : vector<8x128xf32>
      %93 = arith.subf %92, %90 : vector<8x128xf32>
      %cst_34 = arith.constant 1.000000e-10 : f32
      %94 = vector.broadcast %cst_34 : f32 to vector<8x128xf32>
      %95 = arith.maximumf %93, %94 : vector<8x128xf32>
      %96 = tpu.reciprocal %95 {approx = true} : vector<8x128xf32> -> vector<8x128xf32>
      %97 = arith.mulf %90, %96 : vector<8x128xf32>
      %cst_35 = arith.constant 0.000000e+00 : f32
      %98 = vector.broadcast %cst_35 : f32 to vector<8x128xf32>
      %99 = arith.select %71, %98, %97 : vector<8x128xf32>
      %cst_36 = arith.constant -1.000000e+00 : f32
      %100 = vector.broadcast %cst_36 : f32 to vector<8x128xf32>
      %101 = arith.select %38, %100, %99 : vector<8x128xi1>, vector<8x128xf32>
      %cst_37 = arith.constant -1.000000e+30 : f32
      %102 = vector.broadcast %cst_37 : f32 to vector<8x128xf32>
      %103 = arith.select %49, %101, %102 : vector<8x128xi1>, vector<8x128xf32>
      %104 = vector.shape_cast %103 : vector<8x128xf32> to vector<1x8x128xf32>
      %cst_38 = arith.constant dense<0xFF800000> : vector<1xf32>
      %105 = vector.multi_reduction <maximumf>, %104, %cst_38 [1, 2] : vector<1x8x128xf32> to vector<1xf32>
      %106 = vector.shape_cast %105 : vector<1xf32> to vector<1x1x1xf32>
      %107 = vector.extract %106[0, 0, 0] : f32 from vector<1x1x1xf32>
      %c0_i32_39 = arith.constant 0 : i32
      %108 = vector.broadcast %c0_i32_39 : i32 to vector<1x128xi32>
      %109 = arith.cmpi eq, %5, %108 : vector<1x128xi32>
      %110 = vector.broadcast %107 : f32 to vector<1x128xf32>
      %111 = arith.maximumf %51, %110 : vector<1x128xf32>
      %112 = arith.select %109, %111, %51 : vector<1x128xi1>, vector<1x128xf32>
      %c5_i32 = arith.constant 5 : i32
      %113 = arith.addi %4, %c5_i32 : i32
      %114 = arith.index_cast %113 : i32 to index
      %115 = memref.load %arg2[%114] : memref<50xf32, #tpu.memory_space<smem>>
      %c1_i32_40 = arith.constant 1 : i32
      %116 = arith.addi %113, %c1_i32_40 : i32
      %117 = arith.index_cast %116 : i32 to index
      %118 = memref.load %arg2[%117] : memref<50xf32, #tpu.memory_space<smem>>
      %c2_i32_41 = arith.constant 2 : i32
      %119 = arith.addi %113, %c2_i32_41 : i32
      %120 = arith.index_cast %119 : i32 to index
      %121 = memref.load %arg2[%120] : memref<50xf32, #tpu.memory_space<smem>>
      %c3_i32_42 = arith.constant 3 : i32
      %122 = arith.addi %113, %c3_i32_42 : i32
      %123 = arith.index_cast %122 : i32 to index
      %124 = memref.load %arg2[%123] : memref<50xf32, #tpu.memory_space<smem>>
      %125 = arith.subf %121, %115 : f32
      %cst_43 = arith.constant 1.000000e+00 : f32
      %126 = arith.addf %125, %cst_43 : f32
      %127 = arith.subf %124, %118 : f32
      %cst_44 = arith.constant 1.000000e+00 : f32
      %128 = arith.addf %127, %cst_44 : f32
      %129 = arith.mulf %126, %128 : f32
      %cst_45 = arith.constant 1.000000e+00 : f32
      %130 = arith.cmpf oeq, %126, %cst_45 : f32
      %cst_46 = arith.constant 1.000000e+00 : f32
      %131 = arith.cmpf oeq, %128, %cst_46 : f32
      %132 = arith.andi %130, %131 : i1
      %133 = vector.broadcast %121 : f32 to vector<8x128xf32>
      %134 = arith.minimumf %23, %133 : vector<8x128xf32>
      %135 = vector.broadcast %115 : f32 to vector<8x128xf32>
      %136 = arith.maximumf %17, %135 : vector<8x128xf32>
      %137 = arith.subf %134, %136 : vector<8x128xf32>
      %cst_47 = arith.constant 1.000000e+00 : f32
      %138 = vector.broadcast %cst_47 : f32 to vector<8x128xf32>
      %139 = arith.addf %137, %138 : vector<8x128xf32>
      %cst_48 = arith.constant 0.000000e+00 : f32
      %140 = vector.broadcast %cst_48 : f32 to vector<8x128xf32>
      %141 = arith.maximumf %139, %140 : vector<8x128xf32>
      %142 = vector.broadcast %124 : f32 to vector<8x128xf32>
      %143 = arith.minimumf %26, %142 : vector<8x128xf32>
      %144 = vector.broadcast %118 : f32 to vector<8x128xf32>
      %145 = arith.maximumf %20, %144 : vector<8x128xf32>
      %146 = arith.subf %143, %145 : vector<8x128xf32>
      %cst_49 = arith.constant 1.000000e+00 : f32
      %147 = vector.broadcast %cst_49 : f32 to vector<8x128xf32>
      %148 = arith.addf %146, %147 : vector<8x128xf32>
      %cst_50 = arith.constant 0.000000e+00 : f32
      %149 = vector.broadcast %cst_50 : f32 to vector<8x128xf32>
      %150 = arith.maximumf %148, %149 : vector<8x128xf32>
      %151 = arith.mulf %141, %150 : vector<8x128xf32>
      %152 = vector.broadcast %129 : f32 to vector<8x128xf32>
      %153 = arith.addf %33, %152 : vector<8x128xf32>
      %154 = arith.subf %153, %151 : vector<8x128xf32>
      %cst_51 = arith.constant 1.000000e-10 : f32
      %155 = vector.broadcast %cst_51 : f32 to vector<8x128xf32>
      %156 = arith.maximumf %154, %155 : vector<8x128xf32>
      %157 = tpu.reciprocal %156 {approx = true} : vector<8x128xf32> -> vector<8x128xf32>
      %158 = arith.mulf %151, %157 : vector<8x128xf32>
      %cst_52 = arith.constant 0.000000e+00 : f32
      %159 = vector.broadcast %cst_52 : f32 to vector<8x128xf32>
      %160 = arith.select %132, %159, %158 : vector<8x128xf32>
      %cst_53 = arith.constant -1.000000e+00 : f32
      %161 = vector.broadcast %cst_53 : f32 to vector<8x128xf32>
      %162 = arith.select %38, %161, %160 : vector<8x128xi1>, vector<8x128xf32>
      %cst_54 = arith.constant -1.000000e+30 : f32
      %163 = vector.broadcast %cst_54 : f32 to vector<8x128xf32>
      %164 = arith.select %49, %162, %163 : vector<8x128xi1>, vector<8x128xf32>
      %165 = vector.shape_cast %164 : vector<8x128xf32> to vector<1x8x128xf32>
      %cst_55 = arith.constant dense<0xFF800000> : vector<1xf32>
      %166 = vector.multi_reduction <maximumf>, %165, %cst_55 [1, 2] : vector<1x8x128xf32> to vector<1xf32>
      %167 = vector.shape_cast %166 : vector<1xf32> to vector<1x1x1xf32>
      %168 = vector.extract %167[0, 0, 0] : f32 from vector<1x1x1xf32>
      %c1_i32_56 = arith.constant 1 : i32
      %169 = vector.broadcast %c1_i32_56 : i32 to vector<1x128xi32>
      %170 = arith.cmpi eq, %5, %169 : vector<1x128xi32>
      %171 = vector.broadcast %168 : f32 to vector<1x128xf32>
      %172 = arith.maximumf %112, %171 : vector<1x128xf32>
      %173 = arith.select %170, %172, %112 : vector<1x128xi1>, vector<1x128xf32>
      %c10_i32 = arith.constant 10 : i32
      %174 = arith.addi %4, %c10_i32 : i32
      %175 = arith.index_cast %174 : i32 to index
      %176 = memref.load %arg2[%175] : memref<50xf32, #tpu.memory_space<smem>>
      %c1_i32_57 = arith.constant 1 : i32
      %177 = arith.addi %174, %c1_i32_57 : i32
      %178 = arith.index_cast %177 : i32 to index
      %179 = memref.load %arg2[%178] : memref<50xf32, #tpu.memory_space<smem>>
      %c2_i32_58 = arith.constant 2 : i32
      %180 = arith.addi %174, %c2_i32_58 : i32
      %181 = arith.index_cast %180 : i32 to index
      %182 = memref.load %arg2[%181] : memref<50xf32, #tpu.memory_space<smem>>
      %c3_i32_59 = arith.constant 3 : i32
      %183 = arith.addi %174, %c3_i32_59 : i32
      %184 = arith.index_cast %183 : i32 to index
      %185 = memref.load %arg2[%184] : memref<50xf32, #tpu.memory_space<smem>>
      %186 = arith.subf %182, %176 : f32
      %cst_60 = arith.constant 1.000000e+00 : f32
      %187 = arith.addf %186, %cst_60 : f32
      %188 = arith.subf %185, %179 : f32
      %cst_61 = arith.constant 1.000000e+00 : f32
      %189 = arith.addf %188, %cst_61 : f32
      %190 = arith.mulf %187, %189 : f32
      %cst_62 = arith.constant 1.000000e+00 : f32
      %191 = arith.cmpf oeq, %187, %cst_62 : f32
      %cst_63 = arith.constant 1.000000e+00 : f32
      %192 = arith.cmpf oeq, %189, %cst_63 : f32
      %193 = arith.andi %191, %192 : i1
      %194 = vector.broadcast %182 : f32 to vector<8x128xf32>
      %195 = arith.minimumf %23, %194 : vector<8x128xf32>
      %196 = vector.broadcast %176 : f32 to vector<8x128xf32>
      %197 = arith.maximumf %17, %196 : vector<8x128xf32>
      %198 = arith.subf %195, %197 : vector<8x128xf32>
      %cst_64 = arith.constant 1.000000e+00 : f32
      %199 = vector.broadcast %cst_64 : f32 to vector<8x128xf32>
      %200 = arith.addf %198, %199 : vector<8x128xf32>
      %cst_65 = arith.constant 0.000000e+00 : f32
      %201 = vector.broadcast %cst_65 : f32 to vector<8x128xf32>
      %202 = arith.maximumf %200, %201 : vector<8x128xf32>
      %203 = vector.broadcast %185 : f32 to vector<8x128xf32>
      %204 = arith.minimumf %26, %203 : vector<8x128xf32>
      %205 = vector.broadcast %179 : f32 to vector<8x128xf32>
      %206 = arith.maximumf %20, %205 : vector<8x128xf32>
      %207 = arith.subf %204, %206 : vector<8x128xf32>
      %cst_66 = arith.constant 1.000000e+00 : f32
      %208 = vector.broadcast %cst_66 : f32 to vector<8x128xf32>
      %209 = arith.addf %207, %208 : vector<8x128xf32>
      %cst_67 = arith.constant 0.000000e+00 : f32
      %210 = vector.broadcast %cst_67 : f32 to vector<8x128xf32>
      %211 = arith.maximumf %209, %210 : vector<8x128xf32>
      %212 = arith.mulf %202, %211 : vector<8x128xf32>
      %213 = vector.broadcast %190 : f32 to vector<8x128xf32>
      %214 = arith.addf %33, %213 : vector<8x128xf32>
      %215 = arith.subf %214, %212 : vector<8x128xf32>
      %cst_68 = arith.constant 1.000000e-10 : f32
      %216 = vector.broadcast %cst_68 : f32 to vector<8x128xf32>
      %217 = arith.maximumf %215, %216 : vector<8x128xf32>
      %218 = tpu.reciprocal %217 {approx = true} : vector<8x128xf32> -> vector<8x128xf32>
      %219 = arith.mulf %212, %218 : vector<8x128xf32>
      %cst_69 = arith.constant 0.000000e+00 : f32
      %220 = vector.broadcast %cst_69 : f32 to vector<8x128xf32>
      %221 = arith.select %193, %220, %219 : vector<8x128xf32>
      %cst_70 = arith.constant -1.000000e+00 : f32
      %222 = vector.broadcast %cst_70 : f32 to vector<8x128xf32>
      %223 = arith.select %38, %222, %221 : vector<8x128xi1>, vector<8x128xf32>
      %cst_71 = arith.constant -1.000000e+30 : f32
      %224 = vector.broadcast %cst_71 : f32 to vector<8x128xf32>
      %225 = arith.select %49, %223, %224 : vector<8x128xi1>, vector<8x128xf32>
      %226 = vector.shape_cast %225 : vector<8x128xf32> to vector<1x8x128xf32>
      %cst_72 = arith.constant dense<0xFF800000> : vector<1xf32>
      %227 = vector.multi_reduction <maximumf>, %226, %cst_72 [1, 2] : vector<1x8x128xf32> to vector<1xf32>
      %228 = vector.shape_cast %227 : vector<1xf32> to vector<1x1x1xf32>
      %229 = vector.extract %228[0, 0, 0] : f32 from vector<1x1x1xf32>
      %c2_i32_73 = arith.constant 2 : i32
      %230 = vector.broadcast %c2_i32_73 : i32 to vector<1x128xi32>
      %231 = arith.cmpi eq, %5, %230 : vector<1x128xi32>
      %232 = vector.broadcast %229 : f32 to vector<1x128xf32>
      %233 = arith.maximumf %173, %232 : vector<1x128xf32>
      %234 = arith.select %231, %233, %173 : vector<1x128xi1>, vector<1x128xf32>
      %c15_i32 = arith.constant 15 : i32
      %235 = arith.addi %4, %c15_i32 : i32
      %236 = arith.index_cast %235 : i32 to index
      %237 = memref.load %arg2[%236] : memref<50xf32, #tpu.memory_space<smem>>
      %c1_i32_74 = arith.constant 1 : i32
      %238 = arith.addi %235, %c1_i32_74 : i32
      %239 = arith.index_cast %238 : i32 to index
      %240 = memref.load %arg2[%239] : memref<50xf32, #tpu.memory_space<smem>>
      %c2_i32_75 = arith.constant 2 : i32
      %241 = arith.addi %235, %c2_i32_75 : i32
      %242 = arith.index_cast %241 : i32 to index
      %243 = memref.load %arg2[%242] : memref<50xf32, #tpu.memory_space<smem>>
      %c3_i32_76 = arith.constant 3 : i32
      %244 = arith.addi %235, %c3_i32_76 : i32
      %245 = arith.index_cast %244 : i32 to index
      %246 = memref.load %arg2[%245] : memref<50xf32, #tpu.memory_space<smem>>
      %247 = arith.subf %243, %237 : f32
      %cst_77 = arith.constant 1.000000e+00 : f32
      %248 = arith.addf %247, %cst_77 : f32
      %249 = arith.subf %246, %240 : f32
      %cst_78 = arith.constant 1.000000e+00 : f32
      %250 = arith.addf %249, %cst_78 : f32
      %251 = arith.mulf %248, %250 : f32
      %cst_79 = arith.constant 1.000000e+00 : f32
      %252 = arith.cmpf oeq, %248, %cst_79 : f32
      %cst_80 = arith.constant 1.000000e+00 : f32
      %253 = arith.cmpf oeq, %250, %cst_80 : f32
      %254 = arith.andi %252, %253 : i1
      %255 = vector.broadcast %243 : f32 to vector<8x128xf32>
      %256 = arith.minimumf %23, %255 : vector<8x128xf32>
      %257 = vector.broadcast %237 : f32 to vector<8x128xf32>
      %258 = arith.maximumf %17, %257 : vector<8x128xf32>
      %259 = arith.subf %256, %258 : vector<8x128xf32>
      %cst_81 = arith.constant 1.000000e+00 : f32
      %260 = vector.broadcast %cst_81 : f32 to vector<8x128xf32>
      %261 = arith.addf %259, %260 : vector<8x128xf32>
      %cst_82 = arith.constant 0.000000e+00 : f32
      %262 = vector.broadcast %cst_82 : f32 to vector<8x128xf32>
      %263 = arith.maximumf %261, %262 : vector<8x128xf32>
      %264 = vector.broadcast %246 : f32 to vector<8x128xf32>
      %265 = arith.minimumf %26, %264 : vector<8x128xf32>
      %266 = vector.broadcast %240 : f32 to vector<8x128xf32>
      %267 = arith.maximumf %20, %266 : vector<8x128xf32>
      %268 = arith.subf %265, %267 : vector<8x128xf32>
      %cst_83 = arith.constant 1.000000e+00 : f32
      %269 = vector.broadcast %cst_83 : f32 to vector<8x128xf32>
      %270 = arith.addf %268, %269 : vector<8x128xf32>
      %cst_84 = arith.constant 0.000000e+00 : f32
      %271 = vector.broadcast %cst_84 : f32 to vector<8x128xf32>
      %272 = arith.maximumf %270, %271 : vector<8x128xf32>
      %273 = arith.mulf %263, %272 : vector<8x128xf32>
      %274 = vector.broadcast %251 : f32 to vector<8x128xf32>
      %275 = arith.addf %33, %274 : vector<8x128xf32>
      %276 = arith.subf %275, %273 : vector<8x128xf32>
      %cst_85 = arith.constant 1.000000e-10 : f32
      %277 = vector.broadcast %cst_85 : f32 to vector<8x128xf32>
      %278 = arith.maximumf %276, %277 : vector<8x128xf32>
      %279 = tpu.reciprocal %278 {approx = true} : vector<8x128xf32> -> vector<8x128xf32>
      %280 = arith.mulf %273, %279 : vector<8x128xf32>
      %cst_86 = arith.constant 0.000000e+00 : f32
      %281 = vector.broadcast %cst_86 : f32 to vector<8x128xf32>
      %282 = arith.select %254, %281, %280 : vector<8x128xf32>
      %cst_87 = arith.constant -1.000000e+00 : f32
      %283 = vector.broadcast %cst_87 : f32 to vector<8x128xf32>
      %284 = arith.select %38, %283, %282 : vector<8x128xi1>, vector<8x128xf32>
      %cst_88 = arith.constant -1.000000e+30 : f32
      %285 = vector.broadcast %cst_88 : f32 to vector<8x128xf32>
      %286 = arith.select %49, %284, %285 : vector<8x128xi1>, vector<8x128xf32>
      %287 = vector.shape_cast %286 : vector<8x128xf32> to vector<1x8x128xf32>
      %cst_89 = arith.constant dense<0xFF800000> : vector<1xf32>
      %288 = vector.multi_reduction <maximumf>, %287, %cst_89 [1, 2] : vector<1x8x128xf32> to vector<1xf32>
      %289 = vector.shape_cast %288 : vector<1xf32> to vector<1x1x1xf32>
      %290 = vector.extract %289[0, 0, 0] : f32 from vector<1x1x1xf32>
      %c3_i32_90 = arith.constant 3 : i32
      %291 = vector.broadcast %c3_i32_90 : i32 to vector<1x128xi32>
      %292 = arith.cmpi eq, %5, %291 : vector<1x128xi32>
      %293 = vector.broadcast %290 : f32 to vector<1x128xf32>
      %294 = arith.maximumf %234, %293 : vector<1x128xf32>
      %295 = arith.select %292, %294, %234 : vector<1x128xi1>, vector<1x128xf32>
      %c20_i32 = arith.constant 20 : i32
      %296 = arith.addi %4, %c20_i32 : i32
      %297 = arith.index_cast %296 : i32 to index
      %298 = memref.load %arg2[%297] : memref<50xf32, #tpu.memory_space<smem>>
      %c1_i32_91 = arith.constant 1 : i32
      %299 = arith.addi %296, %c1_i32_91 : i32
      %300 = arith.index_cast %299 : i32 to index
      %301 = memref.load %arg2[%300] : memref<50xf32, #tpu.memory_space<smem>>
      %c2_i32_92 = arith.constant 2 : i32
      %302 = arith.addi %296, %c2_i32_92 : i32
      %303 = arith.index_cast %302 : i32 to index
      %304 = memref.load %arg2[%303] : memref<50xf32, #tpu.memory_space<smem>>
      %c3_i32_93 = arith.constant 3 : i32
      %305 = arith.addi %296, %c3_i32_93 : i32
      %306 = arith.index_cast %305 : i32 to index
      %307 = memref.load %arg2[%306] : memref<50xf32, #tpu.memory_space<smem>>
      %308 = arith.subf %304, %298 : f32
      %cst_94 = arith.constant 1.000000e+00 : f32
      %309 = arith.addf %308, %cst_94 : f32
      %310 = arith.subf %307, %301 : f32
      %cst_95 = arith.constant 1.000000e+00 : f32
      %311 = arith.addf %310, %cst_95 : f32
      %312 = arith.mulf %309, %311 : f32
      %cst_96 = arith.constant 1.000000e+00 : f32
      %313 = arith.cmpf oeq, %309, %cst_96 : f32
      %cst_97 = arith.constant 1.000000e+00 : f32
      %314 = arith.cmpf oeq, %311, %cst_97 : f32
      %315 = arith.andi %313, %314 : i1
      %316 = vector.broadcast %304 : f32 to vector<8x128xf32>
      %317 = arith.minimumf %23, %316 : vector<8x128xf32>
      %318 = vector.broadcast %298 : f32 to vector<8x128xf32>
      %319 = arith.maximumf %17, %318 : vector<8x128xf32>
      %320 = arith.subf %317, %319 : vector<8x128xf32>
      %cst_98 = arith.constant 1.000000e+00 : f32
      %321 = vector.broadcast %cst_98 : f32 to vector<8x128xf32>
      %322 = arith.addf %320, %321 : vector<8x128xf32>
      %cst_99 = arith.constant 0.000000e+00 : f32
      %323 = vector.broadcast %cst_99 : f32 to vector<8x128xf32>
      %324 = arith.maximumf %322, %323 : vector<8x128xf32>
      %325 = vector.broadcast %307 : f32 to vector<8x128xf32>
      %326 = arith.minimumf %26, %325 : vector<8x128xf32>
      %327 = vector.broadcast %301 : f32 to vector<8x128xf32>
      %328 = arith.maximumf %20, %327 : vector<8x128xf32>
      %329 = arith.subf %326, %328 : vector<8x128xf32>
      %cst_100 = arith.constant 1.000000e+00 : f32
      %330 = vector.broadcast %cst_100 : f32 to vector<8x128xf32>
      %331 = arith.addf %329, %330 : vector<8x128xf32>
      %cst_101 = arith.constant 0.000000e+00 : f32
      %332 = vector.broadcast %cst_101 : f32 to vector<8x128xf32>
      %333 = arith.maximumf %331, %332 : vector<8x128xf32>
      %334 = arith.mulf %324, %333 : vector<8x128xf32>
      %335 = vector.broadcast %312 : f32 to vector<8x128xf32>
      %336 = arith.addf %33, %335 : vector<8x128xf32>
      %337 = arith.subf %336, %334 : vector<8x128xf32>
      %cst_102 = arith.constant 1.000000e-10 : f32
      %338 = vector.broadcast %cst_102 : f32 to vector<8x128xf32>
      %339 = arith.maximumf %337, %338 : vector<8x128xf32>
      %340 = tpu.reciprocal %339 {approx = true} : vector<8x128xf32> -> vector<8x128xf32>
      %341 = arith.mulf %334, %340 : vector<8x128xf32>
      %cst_103 = arith.constant 0.000000e+00 : f32
      %342 = vector.broadcast %cst_103 : f32 to vector<8x128xf32>
      %343 = arith.select %315, %342, %341 : vector<8x128xf32>
      %cst_104 = arith.constant -1.000000e+00 : f32
      %344 = vector.broadcast %cst_104 : f32 to vector<8x128xf32>
      %345 = arith.select %38, %344, %343 : vector<8x128xi1>, vector<8x128xf32>
      %cst_105 = arith.constant -1.000000e+30 : f32
      %346 = vector.broadcast %cst_105 : f32 to vector<8x128xf32>
      %347 = arith.select %49, %345, %346 : vector<8x128xi1>, vector<8x128xf32>
      %348 = vector.shape_cast %347 : vector<8x128xf32> to vector<1x8x128xf32>
      %cst_106 = arith.constant dense<0xFF800000> : vector<1xf32>
      %349 = vector.multi_reduction <maximumf>, %348, %cst_106 [1, 2] : vector<1x8x128xf32> to vector<1xf32>
      %350 = vector.shape_cast %349 : vector<1xf32> to vector<1x1x1xf32>
      %351 = vector.extract %350[0, 0, 0] : f32 from vector<1x1x1xf32>
      %c4_i32 = arith.constant 4 : i32
      %352 = vector.broadcast %c4_i32 : i32 to vector<1x128xi32>
      %353 = arith.cmpi eq, %5, %352 : vector<1x128xi32>
      %354 = vector.broadcast %351 : f32 to vector<1x128xf32>
      %355 = arith.maximumf %295, %354 : vector<1x128xf32>
      %356 = arith.select %353, %355, %295 : vector<1x128xi1>, vector<1x128xf32>
      %c0_107 = arith.constant 0 : index
      %c0_108 = arith.constant 0 : index
      %c0_109 = arith.constant 0 : index
      %c0_110 = arith.constant 0 : index
      %357 = vector.load %arg5[%c0_107, %c0_108, %c0_109, %c0_110] : memref<1x1x1x128xf32, #tpu.memory_space<vmem>>, vector<1x1x1x128xf32>
      %358 = vector.shape_cast %357 : vector<1x1x1x128xf32> to vector<1x128xf32>
      %359 = vector.shape_cast %356 : vector<1x128xf32> to vector<1x1x1x128xf32>
      tpu.vector_store %arg5[%c0_107, %c0_108, %c0_109, %c0_110], %359 {strides = array<i32>} : memref<1x1x1x128xf32, #tpu.memory_space<vmem>>, vector<1x1x1x128xf32>,
    }
    %c2_i32_4 = arith.constant 2 : i32
    return
  }
  func.func @transform_0(%arg0: i32, %arg1: i32) -> i32 {
    %c0_i32 = arith.constant 0 : i32
    %c0_i32_0 = arith.constant 0 : i32
    return %c0_i32 : i32
  }
  func.func @transform_1(%arg0: i32, %arg1: i32) -> i32 {
    %c0_i32 = arith.constant 0 : i32
    %c0_i32_0 = arith.constant 0 : i32
    return %c0_i32 : i32
  }
  func.func @transform_2(%arg0: i32, %arg1: i32) -> (i32, i32, i32) {
    %c0_i32 = arith.constant 0 : i32
    %c0_i32_0 = arith.constant 0 : i32
    %c0_i32_1 = arith.constant 0 : i32
    return %c0_i32, %arg1, %c0_i32_0 : i32, i32, i32
  }
  func.func @transform_3(%arg0: i32, %arg1: i32) -> (i32, i32, i32, i32) {
    %c0_i32 = arith.constant 0 : i32
    %c0_i32_0 = arith.constant 0 : i32
    %c0_i32_1 = arith.constant 0 : i32
    return %arg0, %arg1, %c0_i32, %c0_i32_0 : i32, i32, i32, i32
  }
}

module attributes {stable_mosaic.version = 11 : i64} {
  func.func @kernel(%arg0: i32, %arg1: i32, %arg2: memref<50xf32, #tpu.memory_space<smem>>, %arg3: memref<6xf32, #tpu.memory_space<smem>>, %arg4: memref<256xf32, #tpu.memory_space<smem>>, %arg5: memref<4x16x128xf32, #tpu.memory_space<vmem>>, %arg6: memref<1x16x128xf32, #tpu.memory_space<vmem>>, %arg7: memref<1x4x16x128xf32, #tpu.memory_space<vmem>>) attributes {dimension_semantics = [#tpu.dimension_semantics<parallel>, #tpu.dimension_semantics<parallel>], iteration_bounds = array<i64: 2, 2>, scalar_prefetch = 0 : i64, scratch_operands = 0 : i64, tpu.core_type = #tpu.core_type<tc>, window_params = [{transform_indices = @transform_0, window_bounds = array<i64: 50>}, {transform_indices = @transform_1, window_bounds = array<i64: 6>}, {transform_indices = @transform_2, window_bounds = array<i64: 256>}, {transform_indices = @transform_3, window_bounds = array<i64: 4, 16, 128>}, {transform_indices = @transform_4, window_bounds = array<i64: 1, 16, 128>}, {transform_indices = @transform_5, window_bounds = array<i64: 1, 4, 16, 128>}]} {
    %c0 = arith.constant 0 : index
    %0 = memref.load %arg3[%c0] : memref<6xf32, #tpu.memory_space<smem>>
    %1 = math.floor %0 : f32
    %c1 = arith.constant 1 : index
    %2 = memref.load %arg3[%c1] : memref<6xf32, #tpu.memory_space<smem>>
    %3 = math.floor %2 : f32
    %c25_i32 = arith.constant 25 : i32
    %4 = arith.muli %arg0, %c25_i32 : i32
    %c128_i32 = arith.constant 128 : i32
    %5 = arith.muli %arg0, %c128_i32 : i32
    %c0_i32 = arith.constant 0 : i32
    %c2_i32 = arith.constant 2 : i32
    %6 = arith.addi %c0_i32, %c2_i32 : i32
    %c1_i32 = arith.constant 1 : i32
    scf.for %arg8 = %c0_i32 to %6 step %c1_i32  : i32 {
      %c1_i32_1 = arith.constant 1 : i32
      %7 = arith.muli %arg8, %c1_i32_1 : i32
      %c0_i32_2 = arith.constant 0 : i32
      %8 = arith.addi %c0_i32_2, %7 : i32
      %c8_i32 = arith.constant 8 : i32
      %9 = arith.muli %8, %c8_i32 : i32
      %10 = tpu.assume_multiple %9, 8 : i32
      %c0_3 = arith.constant 0 : index
      %11 = arith.index_cast %10 : i32 to index
      %c0_4 = arith.constant 0 : index
      %12 = vector.load %arg5[%c0_3, %11, %c0_4] : memref<4x16x128xf32, #tpu.memory_space<vmem>>, vector<1x8x128xf32>
      %13 = vector.shape_cast %12 : vector<1x8x128xf32> to vector<8x128xf32>
      %c1_5 = arith.constant 1 : index
      %14 = arith.index_cast %10 : i32 to index
      %c0_6 = arith.constant 0 : index
      %15 = vector.load %arg5[%c1_5, %14, %c0_6] : memref<4x16x128xf32, #tpu.memory_space<vmem>>, vector<1x8x128xf32>
      %16 = vector.shape_cast %15 : vector<1x8x128xf32> to vector<8x128xf32>
      %c2 = arith.constant 2 : index
      %17 = arith.index_cast %10 : i32 to index
      %c0_7 = arith.constant 0 : index
      %18 = vector.load %arg5[%c2, %17, %c0_7] : memref<4x16x128xf32, #tpu.memory_space<vmem>>, vector<1x8x128xf32>
      %19 = vector.shape_cast %18 : vector<1x8x128xf32> to vector<8x128xf32>
      %c3 = arith.constant 3 : index
      %20 = arith.index_cast %10 : i32 to index
      %c0_8 = arith.constant 0 : index
      %21 = vector.load %arg5[%c3, %20, %c0_8] : memref<4x16x128xf32, #tpu.memory_space<vmem>>, vector<1x8x128xf32>
      %22 = vector.shape_cast %21 : vector<1x8x128xf32> to vector<8x128xf32>
      %23 = arith.subf %19, %13 : vector<8x128xf32>
      %cst = arith.constant 1.000000e+00 : f32
      %24 = vector.broadcast %cst : f32 to vector<8x128xf32>
      %25 = arith.addf %23, %24 : vector<8x128xf32>
      %26 = arith.subf %22, %16 : vector<8x128xf32>
      %cst_9 = arith.constant 1.000000e+00 : f32
      %27 = vector.broadcast %cst_9 : f32 to vector<8x128xf32>
      %28 = arith.addf %26, %27 : vector<8x128xf32>
      %29 = arith.mulf %25, %28 : vector<8x128xf32>
      %cst_10 = arith.constant 1.000000e+00 : f32
      %30 = vector.broadcast %cst_10 : f32 to vector<8x128xf32>
      %31 = arith.cmpf oeq, %25, %30 : vector<8x128xf32>
      %cst_11 = arith.constant 1.000000e+00 : f32
      %32 = vector.broadcast %cst_11 : f32 to vector<8x128xf32>
      %33 = arith.cmpf oeq, %28, %32 : vector<8x128xf32>
      %34 = arith.andi %31, %33 : vector<8x128xi1>
      %cst_12 = arith.constant 0.000000e+00 : f32
      %35 = vector.broadcast %cst_12 : f32 to vector<8x128xf32>
      %36 = arith.cmpf oge, %13, %35 : vector<8x128xf32>
      %cst_13 = arith.constant 0.000000e+00 : f32
      %37 = vector.broadcast %cst_13 : f32 to vector<8x128xf32>
      %38 = arith.cmpf oge, %16, %37 : vector<8x128xf32>
      %39 = arith.andi %36, %38 : vector<8x128xi1>
      %40 = vector.broadcast %3 : f32 to vector<8x128xf32>
      %41 = arith.cmpf olt, %19, %40 : vector<8x128xf32>
      %42 = arith.andi %39, %41 : vector<8x128xi1>
      %43 = vector.broadcast %1 : f32 to vector<8x128xf32>
      %44 = arith.cmpf olt, %22, %43 : vector<8x128xf32>
      %45 = arith.andi %42, %44 : vector<8x128xi1>
      %cst_14 = arith.constant -1.000000e+30 : f32
      %46 = vector.broadcast %cst_14 : f32 to vector<8x128xf32>
      %false = arith.constant false
      %47 = vector.broadcast %false : i1 to vector<8x128xi1>
      %cst_15 = arith.constant 0.000000e+00 : f32
      %48 = vector.broadcast %cst_15 : f32 to vector<8x128xf32>
      %c0_i32_16 = arith.constant 0 : i32
      %49 = arith.addi %4, %c0_i32_16 : i32
      %50 = arith.index_cast %49 : i32 to index
      %51 = memref.load %arg2[%50] : memref<50xf32, #tpu.memory_space<smem>>
      %c1_i32_17 = arith.constant 1 : i32
      %52 = arith.addi %49, %c1_i32_17 : i32
      %53 = arith.index_cast %52 : i32 to index
      %54 = memref.load %arg2[%53] : memref<50xf32, #tpu.memory_space<smem>>
      %c2_i32_18 = arith.constant 2 : i32
      %55 = arith.addi %49, %c2_i32_18 : i32
      %56 = arith.index_cast %55 : i32 to index
      %57 = memref.load %arg2[%56] : memref<50xf32, #tpu.memory_space<smem>>
      %c3_i32 = arith.constant 3 : i32
      %58 = arith.addi %49, %c3_i32 : i32
      %59 = arith.index_cast %58 : i32 to index
      %60 = memref.load %arg2[%59] : memref<50xf32, #tpu.memory_space<smem>>
      %61 = arith.subf %57, %51 : f32
      %cst_19 = arith.constant 1.000000e+00 : f32
      %62 = arith.addf %61, %cst_19 : f32
      %63 = arith.subf %60, %54 : f32
      %cst_20 = arith.constant 1.000000e+00 : f32
      %64 = arith.addf %63, %cst_20 : f32
      %65 = arith.mulf %62, %64 : f32
      %cst_21 = arith.constant 1.000000e+00 : f32
      %66 = arith.cmpf oeq, %62, %cst_21 : f32
      %cst_22 = arith.constant 1.000000e+00 : f32
      %67 = arith.cmpf oeq, %64, %cst_22 : f32
      %68 = arith.andi %66, %67 : i1
      %69 = vector.broadcast %57 : f32 to vector<8x128xf32>
      %70 = arith.minimumf %19, %69 : vector<8x128xf32>
      %71 = vector.broadcast %51 : f32 to vector<8x128xf32>
      %72 = arith.maximumf %13, %71 : vector<8x128xf32>
      %73 = arith.subf %70, %72 : vector<8x128xf32>
      %cst_23 = arith.constant 1.000000e+00 : f32
      %74 = vector.broadcast %cst_23 : f32 to vector<8x128xf32>
      %75 = arith.addf %73, %74 : vector<8x128xf32>
      %cst_24 = arith.constant 0.000000e+00 : f32
      %76 = vector.broadcast %cst_24 : f32 to vector<8x128xf32>
      %77 = arith.maximumf %75, %76 : vector<8x128xf32>
      %78 = vector.broadcast %60 : f32 to vector<8x128xf32>
      %79 = arith.minimumf %22, %78 : vector<8x128xf32>
      %80 = vector.broadcast %54 : f32 to vector<8x128xf32>
      %81 = arith.maximumf %16, %80 : vector<8x128xf32>
      %82 = arith.subf %79, %81 : vector<8x128xf32>
      %cst_25 = arith.constant 1.000000e+00 : f32
      %83 = vector.broadcast %cst_25 : f32 to vector<8x128xf32>
      %84 = arith.addf %82, %83 : vector<8x128xf32>
      %cst_26 = arith.constant 0.000000e+00 : f32
      %85 = vector.broadcast %cst_26 : f32 to vector<8x128xf32>
      %86 = arith.maximumf %84, %85 : vector<8x128xf32>
      %87 = arith.mulf %77, %86 : vector<8x128xf32>
      %88 = vector.broadcast %65 : f32 to vector<8x128xf32>
      %89 = arith.addf %29, %88 : vector<8x128xf32>
      %90 = arith.subf %89, %87 : vector<8x128xf32>
      %cst_27 = arith.constant 1.000000e-10 : f32
      %91 = vector.broadcast %cst_27 : f32 to vector<8x128xf32>
      %92 = arith.maximumf %90, %91 : vector<8x128xf32>
      %93 = tpu.reciprocal %92 {approx = true} : vector<8x128xf32> -> vector<8x128xf32>
      %94 = arith.mulf %87, %93 : vector<8x128xf32>
      %cst_28 = arith.constant 0.000000e+00 : f32
      %95 = vector.broadcast %cst_28 : f32 to vector<8x128xf32>
      %96 = arith.select %68, %95, %94 : vector<8x128xf32>
      %cst_29 = arith.constant -1.000000e+00 : f32
      %97 = vector.broadcast %cst_29 : f32 to vector<8x128xf32>
      %98 = arith.select %34, %97, %96 : vector<8x128xi1>, vector<8x128xf32>
      %c0_i32_30 = arith.constant 0 : i32
      %99 = arith.addi %5, %c0_i32_30 : i32
      %100 = arith.index_cast %99 : i32 to index
      %101 = memref.load %arg4[%100] : memref<256xf32, #tpu.memory_space<smem>>
      %102 = vector.broadcast %101 : f32 to vector<8x128xf32>
      %103 = arith.cmpf oeq, %98, %102 : vector<8x128xf32>
      %104 = arith.ori %47, %103 : vector<8x128xi1>
      %105 = arith.cmpf ogt, %98, %46 : vector<8x128xf32>
      %106 = arith.select %105, %98, %46 : vector<8x128xi1>, vector<8x128xf32>
      %cst_31 = arith.constant 0.000000e+00 : f32
      %107 = vector.broadcast %cst_31 : f32 to vector<8x128xf32>
      %108 = arith.select %105, %107, %48 : vector<8x128xi1>, vector<8x128xf32>
      %c5_i32 = arith.constant 5 : i32
      %109 = arith.addi %4, %c5_i32 : i32
      %110 = arith.index_cast %109 : i32 to index
      %111 = memref.load %arg2[%110] : memref<50xf32, #tpu.memory_space<smem>>
      %c1_i32_32 = arith.constant 1 : i32
      %112 = arith.addi %109, %c1_i32_32 : i32
      %113 = arith.index_cast %112 : i32 to index
      %114 = memref.load %arg2[%113] : memref<50xf32, #tpu.memory_space<smem>>
      %c2_i32_33 = arith.constant 2 : i32
      %115 = arith.addi %109, %c2_i32_33 : i32
      %116 = arith.index_cast %115 : i32 to index
      %117 = memref.load %arg2[%116] : memref<50xf32, #tpu.memory_space<smem>>
      %c3_i32_34 = arith.constant 3 : i32
      %118 = arith.addi %109, %c3_i32_34 : i32
      %119 = arith.index_cast %118 : i32 to index
      %120 = memref.load %arg2[%119] : memref<50xf32, #tpu.memory_space<smem>>
      %121 = arith.subf %117, %111 : f32
      %cst_35 = arith.constant 1.000000e+00 : f32
      %122 = arith.addf %121, %cst_35 : f32
      %123 = arith.subf %120, %114 : f32
      %cst_36 = arith.constant 1.000000e+00 : f32
      %124 = arith.addf %123, %cst_36 : f32
      %125 = arith.mulf %122, %124 : f32
      %cst_37 = arith.constant 1.000000e+00 : f32
      %126 = arith.cmpf oeq, %122, %cst_37 : f32
      %cst_38 = arith.constant 1.000000e+00 : f32
      %127 = arith.cmpf oeq, %124, %cst_38 : f32
      %128 = arith.andi %126, %127 : i1
      %129 = vector.broadcast %117 : f32 to vector<8x128xf32>
      %130 = arith.minimumf %19, %129 : vector<8x128xf32>
      %131 = vector.broadcast %111 : f32 to vector<8x128xf32>
      %132 = arith.maximumf %13, %131 : vector<8x128xf32>
      %133 = arith.subf %130, %132 : vector<8x128xf32>
      %cst_39 = arith.constant 1.000000e+00 : f32
      %134 = vector.broadcast %cst_39 : f32 to vector<8x128xf32>
      %135 = arith.addf %133, %134 : vector<8x128xf32>
      %cst_40 = arith.constant 0.000000e+00 : f32
      %136 = vector.broadcast %cst_40 : f32 to vector<8x128xf32>
      %137 = arith.maximumf %135, %136 : vector<8x128xf32>
      %138 = vector.broadcast %120 : f32 to vector<8x128xf32>
      %139 = arith.minimumf %22, %138 : vector<8x128xf32>
      %140 = vector.broadcast %114 : f32 to vector<8x128xf32>
      %141 = arith.maximumf %16, %140 : vector<8x128xf32>
      %142 = arith.subf %139, %141 : vector<8x128xf32>
      %cst_41 = arith.constant 1.000000e+00 : f32
      %143 = vector.broadcast %cst_41 : f32 to vector<8x128xf32>
      %144 = arith.addf %142, %143 : vector<8x128xf32>
      %cst_42 = arith.constant 0.000000e+00 : f32
      %145 = vector.broadcast %cst_42 : f32 to vector<8x128xf32>
      %146 = arith.maximumf %144, %145 : vector<8x128xf32>
      %147 = arith.mulf %137, %146 : vector<8x128xf32>
      %148 = vector.broadcast %125 : f32 to vector<8x128xf32>
      %149 = arith.addf %29, %148 : vector<8x128xf32>
      %150 = arith.subf %149, %147 : vector<8x128xf32>
      %cst_43 = arith.constant 1.000000e-10 : f32
      %151 = vector.broadcast %cst_43 : f32 to vector<8x128xf32>
      %152 = arith.maximumf %150, %151 : vector<8x128xf32>
      %153 = tpu.reciprocal %152 {approx = true} : vector<8x128xf32> -> vector<8x128xf32>
      %154 = arith.mulf %147, %153 : vector<8x128xf32>
      %cst_44 = arith.constant 0.000000e+00 : f32
      %155 = vector.broadcast %cst_44 : f32 to vector<8x128xf32>
      %156 = arith.select %128, %155, %154 : vector<8x128xf32>
      %cst_45 = arith.constant -1.000000e+00 : f32
      %157 = vector.broadcast %cst_45 : f32 to vector<8x128xf32>
      %158 = arith.select %34, %157, %156 : vector<8x128xi1>, vector<8x128xf32>
      %c1_i32_46 = arith.constant 1 : i32
      %159 = arith.addi %5, %c1_i32_46 : i32
      %160 = arith.index_cast %159 : i32 to index
      %161 = memref.load %arg4[%160] : memref<256xf32, #tpu.memory_space<smem>>
      %162 = vector.broadcast %161 : f32 to vector<8x128xf32>
      %163 = arith.cmpf oeq, %158, %162 : vector<8x128xf32>
      %164 = arith.ori %104, %163 : vector<8x128xi1>
      %165 = arith.cmpf ogt, %158, %106 : vector<8x128xf32>
      %166 = arith.select %165, %158, %106 : vector<8x128xi1>, vector<8x128xf32>
      %cst_47 = arith.constant 1.000000e+00 : f32
      %167 = vector.broadcast %cst_47 : f32 to vector<8x128xf32>
      %168 = arith.select %165, %167, %108 : vector<8x128xi1>, vector<8x128xf32>
      %c10_i32 = arith.constant 10 : i32
      %169 = arith.addi %4, %c10_i32 : i32
      %170 = arith.index_cast %169 : i32 to index
      %171 = memref.load %arg2[%170] : memref<50xf32, #tpu.memory_space<smem>>
      %c1_i32_48 = arith.constant 1 : i32
      %172 = arith.addi %169, %c1_i32_48 : i32
      %173 = arith.index_cast %172 : i32 to index
      %174 = memref.load %arg2[%173] : memref<50xf32, #tpu.memory_space<smem>>
      %c2_i32_49 = arith.constant 2 : i32
      %175 = arith.addi %169, %c2_i32_49 : i32
      %176 = arith.index_cast %175 : i32 to index
      %177 = memref.load %arg2[%176] : memref<50xf32, #tpu.memory_space<smem>>
      %c3_i32_50 = arith.constant 3 : i32
      %178 = arith.addi %169, %c3_i32_50 : i32
      %179 = arith.index_cast %178 : i32 to index
      %180 = memref.load %arg2[%179] : memref<50xf32, #tpu.memory_space<smem>>
      %181 = arith.subf %177, %171 : f32
      %cst_51 = arith.constant 1.000000e+00 : f32
      %182 = arith.addf %181, %cst_51 : f32
      %183 = arith.subf %180, %174 : f32
      %cst_52 = arith.constant 1.000000e+00 : f32
      %184 = arith.addf %183, %cst_52 : f32
      %185 = arith.mulf %182, %184 : f32
      %cst_53 = arith.constant 1.000000e+00 : f32
      %186 = arith.cmpf oeq, %182, %cst_53 : f32
      %cst_54 = arith.constant 1.000000e+00 : f32
      %187 = arith.cmpf oeq, %184, %cst_54 : f32
      %188 = arith.andi %186, %187 : i1
      %189 = vector.broadcast %177 : f32 to vector<8x128xf32>
      %190 = arith.minimumf %19, %189 : vector<8x128xf32>
      %191 = vector.broadcast %171 : f32 to vector<8x128xf32>
      %192 = arith.maximumf %13, %191 : vector<8x128xf32>
      %193 = arith.subf %190, %192 : vector<8x128xf32>
      %cst_55 = arith.constant 1.000000e+00 : f32
      %194 = vector.broadcast %cst_55 : f32 to vector<8x128xf32>
      %195 = arith.addf %193, %194 : vector<8x128xf32>
      %cst_56 = arith.constant 0.000000e+00 : f32
      %196 = vector.broadcast %cst_56 : f32 to vector<8x128xf32>
      %197 = arith.maximumf %195, %196 : vector<8x128xf32>
      %198 = vector.broadcast %180 : f32 to vector<8x128xf32>
      %199 = arith.minimumf %22, %198 : vector<8x128xf32>
      %200 = vector.broadcast %174 : f32 to vector<8x128xf32>
      %201 = arith.maximumf %16, %200 : vector<8x128xf32>
      %202 = arith.subf %199, %201 : vector<8x128xf32>
      %cst_57 = arith.constant 1.000000e+00 : f32
      %203 = vector.broadcast %cst_57 : f32 to vector<8x128xf32>
      %204 = arith.addf %202, %203 : vector<8x128xf32>
      %cst_58 = arith.constant 0.000000e+00 : f32
      %205 = vector.broadcast %cst_58 : f32 to vector<8x128xf32>
      %206 = arith.maximumf %204, %205 : vector<8x128xf32>
      %207 = arith.mulf %197, %206 : vector<8x128xf32>
      %208 = vector.broadcast %185 : f32 to vector<8x128xf32>
      %209 = arith.addf %29, %208 : vector<8x128xf32>
      %210 = arith.subf %209, %207 : vector<8x128xf32>
      %cst_59 = arith.constant 1.000000e-10 : f32
      %211 = vector.broadcast %cst_59 : f32 to vector<8x128xf32>
      %212 = arith.maximumf %210, %211 : vector<8x128xf32>
      %213 = tpu.reciprocal %212 {approx = true} : vector<8x128xf32> -> vector<8x128xf32>
      %214 = arith.mulf %207, %213 : vector<8x128xf32>
      %cst_60 = arith.constant 0.000000e+00 : f32
      %215 = vector.broadcast %cst_60 : f32 to vector<8x128xf32>
      %216 = arith.select %188, %215, %214 : vector<8x128xf32>
      %cst_61 = arith.constant -1.000000e+00 : f32
      %217 = vector.broadcast %cst_61 : f32 to vector<8x128xf32>
      %218 = arith.select %34, %217, %216 : vector<8x128xi1>, vector<8x128xf32>
      %c2_i32_62 = arith.constant 2 : i32
      %219 = arith.addi %5, %c2_i32_62 : i32
      %220 = arith.index_cast %219 : i32 to index
      %221 = memref.load %arg4[%220] : memref<256xf32, #tpu.memory_space<smem>>
      %222 = vector.broadcast %221 : f32 to vector<8x128xf32>
      %223 = arith.cmpf oeq, %218, %222 : vector<8x128xf32>
      %224 = arith.ori %164, %223 : vector<8x128xi1>
      %225 = arith.cmpf ogt, %218, %166 : vector<8x128xf32>
      %226 = arith.select %225, %218, %166 : vector<8x128xi1>, vector<8x128xf32>
      %cst_63 = arith.constant 2.000000e+00 : f32
      %227 = vector.broadcast %cst_63 : f32 to vector<8x128xf32>
      %228 = arith.select %225, %227, %168 : vector<8x128xi1>, vector<8x128xf32>
      %c15_i32 = arith.constant 15 : i32
      %229 = arith.addi %4, %c15_i32 : i32
      %230 = arith.index_cast %229 : i32 to index
      %231 = memref.load %arg2[%230] : memref<50xf32, #tpu.memory_space<smem>>
      %c1_i32_64 = arith.constant 1 : i32
      %232 = arith.addi %229, %c1_i32_64 : i32
      %233 = arith.index_cast %232 : i32 to index
      %234 = memref.load %arg2[%233] : memref<50xf32, #tpu.memory_space<smem>>
      %c2_i32_65 = arith.constant 2 : i32
      %235 = arith.addi %229, %c2_i32_65 : i32
      %236 = arith.index_cast %235 : i32 to index
      %237 = memref.load %arg2[%236] : memref<50xf32, #tpu.memory_space<smem>>
      %c3_i32_66 = arith.constant 3 : i32
      %238 = arith.addi %229, %c3_i32_66 : i32
      %239 = arith.index_cast %238 : i32 to index
      %240 = memref.load %arg2[%239] : memref<50xf32, #tpu.memory_space<smem>>
      %241 = arith.subf %237, %231 : f32
      %cst_67 = arith.constant 1.000000e+00 : f32
      %242 = arith.addf %241, %cst_67 : f32
      %243 = arith.subf %240, %234 : f32
      %cst_68 = arith.constant 1.000000e+00 : f32
      %244 = arith.addf %243, %cst_68 : f32
      %245 = arith.mulf %242, %244 : f32
      %cst_69 = arith.constant 1.000000e+00 : f32
      %246 = arith.cmpf oeq, %242, %cst_69 : f32
      %cst_70 = arith.constant 1.000000e+00 : f32
      %247 = arith.cmpf oeq, %244, %cst_70 : f32
      %248 = arith.andi %246, %247 : i1
      %249 = vector.broadcast %237 : f32 to vector<8x128xf32>
      %250 = arith.minimumf %19, %249 : vector<8x128xf32>
      %251 = vector.broadcast %231 : f32 to vector<8x128xf32>
      %252 = arith.maximumf %13, %251 : vector<8x128xf32>
      %253 = arith.subf %250, %252 : vector<8x128xf32>
      %cst_71 = arith.constant 1.000000e+00 : f32
      %254 = vector.broadcast %cst_71 : f32 to vector<8x128xf32>
      %255 = arith.addf %253, %254 : vector<8x128xf32>
      %cst_72 = arith.constant 0.000000e+00 : f32
      %256 = vector.broadcast %cst_72 : f32 to vector<8x128xf32>
      %257 = arith.maximumf %255, %256 : vector<8x128xf32>
      %258 = vector.broadcast %240 : f32 to vector<8x128xf32>
      %259 = arith.minimumf %22, %258 : vector<8x128xf32>
      %260 = vector.broadcast %234 : f32 to vector<8x128xf32>
      %261 = arith.maximumf %16, %260 : vector<8x128xf32>
      %262 = arith.subf %259, %261 : vector<8x128xf32>
      %cst_73 = arith.constant 1.000000e+00 : f32
      %263 = vector.broadcast %cst_73 : f32 to vector<8x128xf32>
      %264 = arith.addf %262, %263 : vector<8x128xf32>
      %cst_74 = arith.constant 0.000000e+00 : f32
      %265 = vector.broadcast %cst_74 : f32 to vector<8x128xf32>
      %266 = arith.maximumf %264, %265 : vector<8x128xf32>
      %267 = arith.mulf %257, %266 : vector<8x128xf32>
      %268 = vector.broadcast %245 : f32 to vector<8x128xf32>
      %269 = arith.addf %29, %268 : vector<8x128xf32>
      %270 = arith.subf %269, %267 : vector<8x128xf32>
      %cst_75 = arith.constant 1.000000e-10 : f32
      %271 = vector.broadcast %cst_75 : f32 to vector<8x128xf32>
      %272 = arith.maximumf %270, %271 : vector<8x128xf32>
      %273 = tpu.reciprocal %272 {approx = true} : vector<8x128xf32> -> vector<8x128xf32>
      %274 = arith.mulf %267, %273 : vector<8x128xf32>
      %cst_76 = arith.constant 0.000000e+00 : f32
      %275 = vector.broadcast %cst_76 : f32 to vector<8x128xf32>
      %276 = arith.select %248, %275, %274 : vector<8x128xf32>
      %cst_77 = arith.constant -1.000000e+00 : f32
      %277 = vector.broadcast %cst_77 : f32 to vector<8x128xf32>
      %278 = arith.select %34, %277, %276 : vector<8x128xi1>, vector<8x128xf32>
      %c3_i32_78 = arith.constant 3 : i32
      %279 = arith.addi %5, %c3_i32_78 : i32
      %280 = arith.index_cast %279 : i32 to index
      %281 = memref.load %arg4[%280] : memref<256xf32, #tpu.memory_space<smem>>
      %282 = vector.broadcast %281 : f32 to vector<8x128xf32>
      %283 = arith.cmpf oeq, %278, %282 : vector<8x128xf32>
      %284 = arith.ori %224, %283 : vector<8x128xi1>
      %285 = arith.cmpf ogt, %278, %226 : vector<8x128xf32>
      %286 = arith.select %285, %278, %226 : vector<8x128xi1>, vector<8x128xf32>
      %cst_79 = arith.constant 3.000000e+00 : f32
      %287 = vector.broadcast %cst_79 : f32 to vector<8x128xf32>
      %288 = arith.select %285, %287, %228 : vector<8x128xi1>, vector<8x128xf32>
      %c20_i32 = arith.constant 20 : i32
      %289 = arith.addi %4, %c20_i32 : i32
      %290 = arith.index_cast %289 : i32 to index
      %291 = memref.load %arg2[%290] : memref<50xf32, #tpu.memory_space<smem>>
      %c1_i32_80 = arith.constant 1 : i32
      %292 = arith.addi %289, %c1_i32_80 : i32
      %293 = arith.index_cast %292 : i32 to index
      %294 = memref.load %arg2[%293] : memref<50xf32, #tpu.memory_space<smem>>
      %c2_i32_81 = arith.constant 2 : i32
      %295 = arith.addi %289, %c2_i32_81 : i32
      %296 = arith.index_cast %295 : i32 to index
      %297 = memref.load %arg2[%296] : memref<50xf32, #tpu.memory_space<smem>>
      %c3_i32_82 = arith.constant 3 : i32
      %298 = arith.addi %289, %c3_i32_82 : i32
      %299 = arith.index_cast %298 : i32 to index
      %300 = memref.load %arg2[%299] : memref<50xf32, #tpu.memory_space<smem>>
      %301 = arith.subf %297, %291 : f32
      %cst_83 = arith.constant 1.000000e+00 : f32
      %302 = arith.addf %301, %cst_83 : f32
      %303 = arith.subf %300, %294 : f32
      %cst_84 = arith.constant 1.000000e+00 : f32
      %304 = arith.addf %303, %cst_84 : f32
      %305 = arith.mulf %302, %304 : f32
      %cst_85 = arith.constant 1.000000e+00 : f32
      %306 = arith.cmpf oeq, %302, %cst_85 : f32
      %cst_86 = arith.constant 1.000000e+00 : f32
      %307 = arith.cmpf oeq, %304, %cst_86 : f32
      %308 = arith.andi %306, %307 : i1
      %309 = vector.broadcast %297 : f32 to vector<8x128xf32>
      %310 = arith.minimumf %19, %309 : vector<8x128xf32>
      %311 = vector.broadcast %291 : f32 to vector<8x128xf32>
      %312 = arith.maximumf %13, %311 : vector<8x128xf32>
      %313 = arith.subf %310, %312 : vector<8x128xf32>
      %cst_87 = arith.constant 1.000000e+00 : f32
      %314 = vector.broadcast %cst_87 : f32 to vector<8x128xf32>
      %315 = arith.addf %313, %314 : vector<8x128xf32>
      %cst_88 = arith.constant 0.000000e+00 : f32
      %316 = vector.broadcast %cst_88 : f32 to vector<8x128xf32>
      %317 = arith.maximumf %315, %316 : vector<8x128xf32>
      %318 = vector.broadcast %300 : f32 to vector<8x128xf32>
      %319 = arith.minimumf %22, %318 : vector<8x128xf32>
      %320 = vector.broadcast %294 : f32 to vector<8x128xf32>
      %321 = arith.maximumf %16, %320 : vector<8x128xf32>
      %322 = arith.subf %319, %321 : vector<8x128xf32>
      %cst_89 = arith.constant 1.000000e+00 : f32
      %323 = vector.broadcast %cst_89 : f32 to vector<8x128xf32>
      %324 = arith.addf %322, %323 : vector<8x128xf32>
      %cst_90 = arith.constant 0.000000e+00 : f32
      %325 = vector.broadcast %cst_90 : f32 to vector<8x128xf32>
      %326 = arith.maximumf %324, %325 : vector<8x128xf32>
      %327 = arith.mulf %317, %326 : vector<8x128xf32>
      %328 = vector.broadcast %305 : f32 to vector<8x128xf32>
      %329 = arith.addf %29, %328 : vector<8x128xf32>
      %330 = arith.subf %329, %327 : vector<8x128xf32>
      %cst_91 = arith.constant 1.000000e-10 : f32
      %331 = vector.broadcast %cst_91 : f32 to vector<8x128xf32>
      %332 = arith.maximumf %330, %331 : vector<8x128xf32>
      %333 = tpu.reciprocal %332 {approx = true} : vector<8x128xf32> -> vector<8x128xf32>
      %334 = arith.mulf %327, %333 : vector<8x128xf32>
      %cst_92 = arith.constant 0.000000e+00 : f32
      %335 = vector.broadcast %cst_92 : f32 to vector<8x128xf32>
      %336 = arith.select %308, %335, %334 : vector<8x128xf32>
      %cst_93 = arith.constant -1.000000e+00 : f32
      %337 = vector.broadcast %cst_93 : f32 to vector<8x128xf32>
      %338 = arith.select %34, %337, %336 : vector<8x128xi1>, vector<8x128xf32>
      %c4_i32 = arith.constant 4 : i32
      %339 = arith.addi %5, %c4_i32 : i32
      %340 = arith.index_cast %339 : i32 to index
      %341 = memref.load %arg4[%340] : memref<256xf32, #tpu.memory_space<smem>>
      %342 = vector.broadcast %341 : f32 to vector<8x128xf32>
      %343 = arith.cmpf oeq, %338, %342 : vector<8x128xf32>
      %344 = arith.ori %284, %343 : vector<8x128xi1>
      %345 = arith.cmpf ogt, %338, %286 : vector<8x128xf32>
      %346 = arith.select %345, %338, %286 : vector<8x128xi1>, vector<8x128xf32>
      %cst_94 = arith.constant 4.000000e+00 : f32
      %347 = vector.broadcast %cst_94 : f32 to vector<8x128xf32>
      %348 = arith.select %345, %347, %288 : vector<8x128xi1>, vector<8x128xf32>
      %cst_95 = arith.constant -1.000000e+00 : f32
      %349 = vector.broadcast %cst_95 : f32 to vector<8x128xf32>
      %cst_96 = arith.constant 3.000000e-01 : f32
      %350 = vector.broadcast %cst_96 : f32 to vector<8x128xf32>
      %351 = arith.cmpf olt, %346, %350 : vector<8x128xf32>
      %cst_97 = arith.constant 0.000000e+00 : f32
      %352 = vector.broadcast %cst_97 : f32 to vector<8x128xf32>
      %353 = arith.select %351, %352, %349 : vector<8x128xi1>, vector<8x128xf32>
      %cst_98 = arith.constant 1.000000e+00 : f32
      %354 = vector.broadcast %cst_98 : f32 to vector<8x128xf32>
      %355 = arith.select %344, %354, %353 : vector<8x128xi1>, vector<8x128xf32>
      %cst_99 = arith.constant 0.699999988 : f32
      %356 = vector.broadcast %cst_99 : f32 to vector<8x128xf32>
      %357 = arith.cmpf oge, %346, %356 : vector<8x128xf32>
      %cst_100 = arith.constant 1.000000e+00 : f32
      %358 = vector.broadcast %cst_100 : f32 to vector<8x128xf32>
      %359 = arith.select %357, %358, %355 : vector<8x128xi1>, vector<8x128xf32>
      %cst_101 = arith.constant -1.000000e+00 : f32
      %360 = vector.broadcast %cst_101 : f32 to vector<8x128xf32>
      %361 = arith.select %45, %359, %360 : vector<8x128xi1>, vector<8x128xf32>
      %c0_102 = arith.constant 0 : index
      %362 = arith.index_cast %10 : i32 to index
      %c0_103 = arith.constant 0 : index
      %363 = vector.load %arg6[%c0_102, %362, %c0_103] : memref<1x16x128xf32, #tpu.memory_space<vmem>>, vector<1x8x128xf32>
      %364 = vector.shape_cast %363 : vector<1x8x128xf32> to vector<8x128xf32>
      %365 = vector.shape_cast %361 : vector<8x128xf32> to vector<1x8x128xf32>
      tpu.vector_store %arg6[%c0_102, %362, %c0_103], %365 {strides = array<i32>} : memref<1x16x128xf32, #tpu.memory_space<vmem>>, vector<1x8x128xf32>,
      %cst_104 = arith.constant 0.000000e+00 : f32
      %366 = vector.broadcast %cst_104 : f32 to vector<8x128xf32>
      %cst_105 = arith.constant 0.000000e+00 : f32
      %367 = vector.broadcast %cst_105 : f32 to vector<8x128xf32>
      %cst_106 = arith.constant 0.000000e+00 : f32
      %368 = vector.broadcast %cst_106 : f32 to vector<8x128xf32>
      %cst_107 = arith.constant 0.000000e+00 : f32
      %369 = vector.broadcast %cst_107 : f32 to vector<8x128xf32>
      %c0_i32_108 = arith.constant 0 : i32
      %370 = arith.addi %4, %c0_i32_108 : i32
      %cst_109 = arith.constant 0.000000e+00 : f32
      %371 = vector.broadcast %cst_109 : f32 to vector<8x128xf32>
      %372 = arith.cmpf oeq, %348, %371 : vector<8x128xf32>
      %373 = arith.index_cast %370 : i32 to index
      %374 = memref.load %arg2[%373] : memref<50xf32, #tpu.memory_space<smem>>
      %375 = vector.broadcast %374 : f32 to vector<8x128xf32>
      %376 = arith.select %372, %375, %366 : vector<8x128xi1>, vector<8x128xf32>
      %c1_i32_110 = arith.constant 1 : i32
      %377 = arith.addi %370, %c1_i32_110 : i32
      %378 = arith.index_cast %377 : i32 to index
      %379 = memref.load %arg2[%378] : memref<50xf32, #tpu.memory_space<smem>>
      %380 = vector.broadcast %379 : f32 to vector<8x128xf32>
      %381 = arith.select %372, %380, %367 : vector<8x128xi1>, vector<8x128xf32>
      %c2_i32_111 = arith.constant 2 : i32
      %382 = arith.addi %370, %c2_i32_111 : i32
      %383 = arith.index_cast %382 : i32 to index
      %384 = memref.load %arg2[%383] : memref<50xf32, #tpu.memory_space<smem>>
      %385 = vector.broadcast %384 : f32 to vector<8x128xf32>
      %386 = arith.select %372, %385, %368 : vector<8x128xi1>, vector<8x128xf32>
      %c3_i32_112 = arith.constant 3 : i32
      %387 = arith.addi %370, %c3_i32_112 : i32
      %388 = arith.index_cast %387 : i32 to index
      %389 = memref.load %arg2[%388] : memref<50xf32, #tpu.memory_space<smem>>
      %390 = vector.broadcast %389 : f32 to vector<8x128xf32>
      %391 = arith.select %372, %390, %369 : vector<8x128xi1>, vector<8x128xf32>
      %c5_i32_113 = arith.constant 5 : i32
      %392 = arith.addi %4, %c5_i32_113 : i32
      %cst_114 = arith.constant 1.000000e+00 : f32
      %393 = vector.broadcast %cst_114 : f32 to vector<8x128xf32>
      %394 = arith.cmpf oeq, %348, %393 : vector<8x128xf32>
      %395 = arith.index_cast %392 : i32 to index
      %396 = memref.load %arg2[%395] : memref<50xf32, #tpu.memory_space<smem>>
      %397 = vector.broadcast %396 : f32 to vector<8x128xf32>
      %398 = arith.select %394, %397, %376 : vector<8x128xi1>, vector<8x128xf32>
      %c1_i32_115 = arith.constant 1 : i32
      %399 = arith.addi %392, %c1_i32_115 : i32
      %400 = arith.index_cast %399 : i32 to index
      %401 = memref.load %arg2[%400] : memref<50xf32, #tpu.memory_space<smem>>
      %402 = vector.broadcast %401 : f32 to vector<8x128xf32>
      %403 = arith.select %394, %402, %381 : vector<8x128xi1>, vector<8x128xf32>
      %c2_i32_116 = arith.constant 2 : i32
      %404 = arith.addi %392, %c2_i32_116 : i32
      %405 = arith.index_cast %404 : i32 to index
      %406 = memref.load %arg2[%405] : memref<50xf32, #tpu.memory_space<smem>>
      %407 = vector.broadcast %406 : f32 to vector<8x128xf32>
      %408 = arith.select %394, %407, %386 : vector<8x128xi1>, vector<8x128xf32>
      %c3_i32_117 = arith.constant 3 : i32
      %409 = arith.addi %392, %c3_i32_117 : i32
      %410 = arith.index_cast %409 : i32 to index
      %411 = memref.load %arg2[%410] : memref<50xf32, #tpu.memory_space<smem>>
      %412 = vector.broadcast %411 : f32 to vector<8x128xf32>
      %413 = arith.select %394, %412, %391 : vector<8x128xi1>, vector<8x128xf32>
      %c10_i32_118 = arith.constant 10 : i32
      %414 = arith.addi %4, %c10_i32_118 : i32
      %cst_119 = arith.constant 2.000000e+00 : f32
      %415 = vector.broadcast %cst_119 : f32 to vector<8x128xf32>
      %416 = arith.cmpf oeq, %348, %415 : vector<8x128xf32>
      %417 = arith.index_cast %414 : i32 to index
      %418 = memref.load %arg2[%417] : memref<50xf32, #tpu.memory_space<smem>>
      %419 = vector.broadcast %418 : f32 to vector<8x128xf32>
      %420 = arith.select %416, %419, %398 : vector<8x128xi1>, vector<8x128xf32>
      %c1_i32_120 = arith.constant 1 : i32
      %421 = arith.addi %414, %c1_i32_120 : i32
      %422 = arith.index_cast %421 : i32 to index
      %423 = memref.load %arg2[%422] : memref<50xf32, #tpu.memory_space<smem>>
      %424 = vector.broadcast %423 : f32 to vector<8x128xf32>
      %425 = arith.select %416, %424, %403 : vector<8x128xi1>, vector<8x128xf32>
      %c2_i32_121 = arith.constant 2 : i32
      %426 = arith.addi %414, %c2_i32_121 : i32
      %427 = arith.index_cast %426 : i32 to index
      %428 = memref.load %arg2[%427] : memref<50xf32, #tpu.memory_space<smem>>
      %429 = vector.broadcast %428 : f32 to vector<8x128xf32>
      %430 = arith.select %416, %429, %408 : vector<8x128xi1>, vector<8x128xf32>
      %c3_i32_122 = arith.constant 3 : i32
      %431 = arith.addi %414, %c3_i32_122 : i32
      %432 = arith.index_cast %431 : i32 to index
      %433 = memref.load %arg2[%432] : memref<50xf32, #tpu.memory_space<smem>>
      %434 = vector.broadcast %433 : f32 to vector<8x128xf32>
      %435 = arith.select %416, %434, %413 : vector<8x128xi1>, vector<8x128xf32>
      %c15_i32_123 = arith.constant 15 : i32
      %436 = arith.addi %4, %c15_i32_123 : i32
      %cst_124 = arith.constant 3.000000e+00 : f32
      %437 = vector.broadcast %cst_124 : f32 to vector<8x128xf32>
      %438 = arith.cmpf oeq, %348, %437 : vector<8x128xf32>
      %439 = arith.index_cast %436 : i32 to index
      %440 = memref.load %arg2[%439] : memref<50xf32, #tpu.memory_space<smem>>
      %441 = vector.broadcast %440 : f32 to vector<8x128xf32>
      %442 = arith.select %438, %441, %420 : vector<8x128xi1>, vector<8x128xf32>
      %c1_i32_125 = arith.constant 1 : i32
      %443 = arith.addi %436, %c1_i32_125 : i32
      %444 = arith.index_cast %443 : i32 to index
      %445 = memref.load %arg2[%444] : memref<50xf32, #tpu.memory_space<smem>>
      %446 = vector.broadcast %445 : f32 to vector<8x128xf32>
      %447 = arith.select %438, %446, %425 : vector<8x128xi1>, vector<8x128xf32>
      %c2_i32_126 = arith.constant 2 : i32
      %448 = arith.addi %436, %c2_i32_126 : i32
      %449 = arith.index_cast %448 : i32 to index
      %450 = memref.load %arg2[%449] : memref<50xf32, #tpu.memory_space<smem>>
      %451 = vector.broadcast %450 : f32 to vector<8x128xf32>
      %452 = arith.select %438, %451, %430 : vector<8x128xi1>, vector<8x128xf32>
      %c3_i32_127 = arith.constant 3 : i32
      %453 = arith.addi %436, %c3_i32_127 : i32
      %454 = arith.index_cast %453 : i32 to index
      %455 = memref.load %arg2[%454] : memref<50xf32, #tpu.memory_space<smem>>
      %456 = vector.broadcast %455 : f32 to vector<8x128xf32>
      %457 = arith.select %438, %456, %435 : vector<8x128xi1>, vector<8x128xf32>
      %c20_i32_128 = arith.constant 20 : i32
      %458 = arith.addi %4, %c20_i32_128 : i32
      %cst_129 = arith.constant 4.000000e+00 : f32
      %459 = vector.broadcast %cst_129 : f32 to vector<8x128xf32>
      %460 = arith.cmpf oeq, %348, %459 : vector<8x128xf32>
      %461 = arith.index_cast %458 : i32 to index
      %462 = memref.load %arg2[%461] : memref<50xf32, #tpu.memory_space<smem>>
      %463 = vector.broadcast %462 : f32 to vector<8x128xf32>
      %464 = arith.select %460, %463, %442 : vector<8x128xi1>, vector<8x128xf32>
      %c1_i32_130 = arith.constant 1 : i32
      %465 = arith.addi %458, %c1_i32_130 : i32
      %466 = arith.index_cast %465 : i32 to index
      %467 = memref.load %arg2[%466] : memref<50xf32, #tpu.memory_space<smem>>
      %468 = vector.broadcast %467 : f32 to vector<8x128xf32>
      %469 = arith.select %460, %468, %447 : vector<8x128xi1>, vector<8x128xf32>
      %c2_i32_131 = arith.constant 2 : i32
      %470 = arith.addi %458, %c2_i32_131 : i32
      %471 = arith.index_cast %470 : i32 to index
      %472 = memref.load %arg2[%471] : memref<50xf32, #tpu.memory_space<smem>>
      %473 = vector.broadcast %472 : f32 to vector<8x128xf32>
      %474 = arith.select %460, %473, %452 : vector<8x128xi1>, vector<8x128xf32>
      %c3_i32_132 = arith.constant 3 : i32
      %475 = arith.addi %458, %c3_i32_132 : i32
      %476 = arith.index_cast %475 : i32 to index
      %477 = memref.load %arg2[%476] : memref<50xf32, #tpu.memory_space<smem>>
      %478 = vector.broadcast %477 : f32 to vector<8x128xf32>
      %479 = arith.select %460, %478, %457 : vector<8x128xi1>, vector<8x128xf32>
      %480 = tpu.reciprocal %25 : vector<8x128xf32> -> vector<8x128xf32>
      %481 = tpu.reciprocal %28 : vector<8x128xf32> -> vector<8x128xf32>
      %cst_133 = arith.constant 5.000000e-01 : f32
      %482 = vector.broadcast %cst_133 : f32 to vector<8x128xf32>
      %483 = arith.mulf %482, %25 : vector<8x128xf32>
      %484 = arith.addf %13, %483 : vector<8x128xf32>
      %cst_134 = arith.constant 5.000000e-01 : f32
      %485 = vector.broadcast %cst_134 : f32 to vector<8x128xf32>
      %486 = arith.mulf %485, %28 : vector<8x128xf32>
      %487 = arith.addf %16, %486 : vector<8x128xf32>
      %488 = arith.subf %474, %464 : vector<8x128xf32>
      %cst_135 = arith.constant 1.000000e+00 : f32
      %489 = vector.broadcast %cst_135 : f32 to vector<8x128xf32>
      %490 = arith.addf %488, %489 : vector<8x128xf32>
      %491 = arith.subf %479, %469 : vector<8x128xf32>
      %cst_136 = arith.constant 1.000000e+00 : f32
      %492 = vector.broadcast %cst_136 : f32 to vector<8x128xf32>
      %493 = arith.addf %491, %492 : vector<8x128xf32>
      %cst_137 = arith.constant 5.000000e-01 : f32
      %494 = vector.broadcast %cst_137 : f32 to vector<8x128xf32>
      %495 = arith.mulf %494, %490 : vector<8x128xf32>
      %496 = arith.addf %464, %495 : vector<8x128xf32>
      %cst_138 = arith.constant 5.000000e-01 : f32
      %497 = vector.broadcast %cst_138 : f32 to vector<8x128xf32>
      %498 = arith.mulf %497, %493 : vector<8x128xf32>
      %499 = arith.addf %469, %498 : vector<8x128xf32>
      %cst_139 = arith.constant 0.000000e+00 : f32
      %500 = vector.broadcast %cst_139 : f32 to vector<8x128xf32>
      %501 = arith.subf %496, %484 : vector<8x128xf32>
      %502 = arith.mulf %501, %480 : vector<8x128xf32>
      %503 = arith.select %45, %502, %500 : vector<8x128xi1>, vector<8x128xf32>
      %c0_140 = arith.constant 0 : index
      %c0_141 = arith.constant 0 : index
      %504 = arith.index_cast %10 : i32 to index
      %c0_142 = arith.constant 0 : index
      %505 = vector.load %arg7[%c0_140, %c0_141, %504, %c0_142] : memref<1x4x16x128xf32, #tpu.memory_space<vmem>>, vector<1x1x8x128xf32>
      %506 = vector.shape_cast %505 : vector<1x1x8x128xf32> to vector<8x128xf32>
      %507 = vector.shape_cast %503 : vector<8x128xf32> to vector<1x1x8x128xf32>
      tpu.vector_store %arg7[%c0_140, %c0_141, %504, %c0_142], %507 {strides = array<i32>} : memref<1x4x16x128xf32, #tpu.memory_space<vmem>>, vector<1x1x8x128xf32>,
      %508 = arith.subf %499, %487 : vector<8x128xf32>
      %509 = arith.mulf %508, %481 : vector<8x128xf32>
      %510 = arith.select %45, %509, %500 : vector<8x128xi1>, vector<8x128xf32>
      %c0_143 = arith.constant 0 : index
      %c1_144 = arith.constant 1 : index
      %511 = arith.index_cast %10 : i32 to index
      %c0_145 = arith.constant 0 : index
      %512 = vector.load %arg7[%c0_143, %c1_144, %511, %c0_145] : memref<1x4x16x128xf32, #tpu.memory_space<vmem>>, vector<1x1x8x128xf32>
      %513 = vector.shape_cast %512 : vector<1x1x8x128xf32> to vector<8x128xf32>
      %514 = vector.shape_cast %510 : vector<8x128xf32> to vector<1x1x8x128xf32>
      tpu.vector_store %arg7[%c0_143, %c1_144, %511, %c0_145], %514 {strides = array<i32>} : memref<1x4x16x128xf32, #tpu.memory_space<vmem>>, vector<1x1x8x128xf32>,
      %515 = arith.mulf %490, %480 : vector<8x128xf32>
      %516 = math.log %515 : vector<8x128xf32>
      %517 = arith.select %45, %516, %500 : vector<8x128xi1>, vector<8x128xf32>
      %c0_146 = arith.constant 0 : index
      %c2_147 = arith.constant 2 : index
      %518 = arith.index_cast %10 : i32 to index
      %c0_148 = arith.constant 0 : index
      %519 = vector.load %arg7[%c0_146, %c2_147, %518, %c0_148] : memref<1x4x16x128xf32, #tpu.memory_space<vmem>>, vector<1x1x8x128xf32>
      %520 = vector.shape_cast %519 : vector<1x1x8x128xf32> to vector<8x128xf32>
      %521 = vector.shape_cast %517 : vector<8x128xf32> to vector<1x1x8x128xf32>
      tpu.vector_store %arg7[%c0_146, %c2_147, %518, %c0_148], %521 {strides = array<i32>} : memref<1x4x16x128xf32, #tpu.memory_space<vmem>>, vector<1x1x8x128xf32>,
      %522 = arith.mulf %493, %481 : vector<8x128xf32>
      %523 = math.log %522 : vector<8x128xf32>
      %524 = arith.select %45, %523, %500 : vector<8x128xi1>, vector<8x128xf32>
      %c0_149 = arith.constant 0 : index
      %c3_150 = arith.constant 3 : index
      %525 = arith.index_cast %10 : i32 to index
      %c0_151 = arith.constant 0 : index
      %526 = vector.load %arg7[%c0_149, %c3_150, %525, %c0_151] : memref<1x4x16x128xf32, #tpu.memory_space<vmem>>, vector<1x1x8x128xf32>
      %527 = vector.shape_cast %526 : vector<1x1x8x128xf32> to vector<8x128xf32>
      %528 = vector.shape_cast %524 : vector<8x128xf32> to vector<1x1x8x128xf32>
      tpu.vector_store %arg7[%c0_149, %c3_150, %525, %c0_151], %528 {strides = array<i32>} : memref<1x4x16x128xf32, #tpu.memory_space<vmem>>, vector<1x1x8x128xf32>,
    }
    %c2_i32_0 = arith.constant 2 : i32
    return
  }
  func.func @transform_0(%arg0: i32, %arg1: i32) -> i32 {
    %c0_i32 = arith.constant 0 : i32
    %c0_i32_0 = arith.constant 0 : i32
    return %c0_i32 : i32
  }
  func.func @transform_1(%arg0: i32, %arg1: i32) -> i32 {
    %c0_i32 = arith.constant 0 : i32
    %c0_i32_0 = arith.constant 0 : i32
    return %c0_i32 : i32
  }
  func.func @transform_2(%arg0: i32, %arg1: i32) -> i32 {
    %c0_i32 = arith.constant 0 : i32
    %c0_i32_0 = arith.constant 0 : i32
    return %c0_i32 : i32
  }
  func.func @transform_3(%arg0: i32, %arg1: i32) -> (i32, i32, i32) {
    %c0_i32 = arith.constant 0 : i32
    %c0_i32_0 = arith.constant 0 : i32
    %c0_i32_1 = arith.constant 0 : i32
    return %c0_i32, %arg1, %c0_i32_0 : i32, i32, i32
  }
  func.func @transform_4(%arg0: i32, %arg1: i32) -> (i32, i32, i32) {
    %c0_i32 = arith.constant 0 : i32
    %c0_i32_0 = arith.constant 0 : i32
    return %arg0, %arg1, %c0_i32 : i32, i32, i32
  }
  func.func @transform_5(%arg0: i32, %arg1: i32) -> (i32, i32, i32, i32) {
    %c0_i32 = arith.constant 0 : i32
    %c0_i32_0 = arith.constant 0 : i32
    %c0_i32_1 = arith.constant 0 : i32
    return %arg0, %c0_i32, %arg1, %c0_i32_0 : i32, i32, i32, i32
  }
}

</mosaic_0001>

<bundles_post_ra>
// kernel: _anchor_target_impl.6
= control target key start
LH: loop header
LB: loop body
LE: loop exit
PB: predicated region body
PF: predicated region fallthrough
CT: control target
= control target key end

     0   :  { %s1430_s0 = inlined_call_operand.vmem [shape: f32[50], index: 0, kind: input, shape index: {}]   ;;  %s1431_s1 = inlined_call_operand.vmem [shape: f32[6], index: 1, kind: input, shape index: {}]   ;;  %s1432_s2 = inlined_call_operand.vmem [shape: f32[4,32,128], index: 2, kind: input, shape index: {}]   ;;  %s1433_s3 = inlined_call_operand.vmem [shape: f32[2,2,1,128], index: 3, kind: output, shape index: {}]  }
   0x1   :  { %1437 = sst [smem:[#allocation9_spill]] %s1430_s0 }
   0x2   :  { %8 = vsyncpa [#allocation3], 0 }
   0x3   :  { %9 = vsyncpa [#allocation5], 0  ;;  %s989_s12 = smov 0   ;;  %s991_s13 = smov 0  }
   0x4   :  { %s993_s14 = smov 0   ;;  %s995_s15 = smov 0  }
   0x5   :  { %s997_s16 = smov 0   ;;  %s999_s17 = smov 0  }
   0x6   :  { %s1001_s18 = smov 0  }
   0x7 LB: > { %s728_s19 = sadd.s32 4294967295, %s960_s18   ;;  %s24_s20 = sadd.s32 1, %s952_s16  ;;  %s960_s18 = sphi %s1001_s18, %s15_s18   ;;  %s956_s17 = sphi %s999_s17, %s1467_s17   ;;  %s952_s16 = sphi %s997_s16, %s1466_s16   ;;  %s948_s15 = sphi %s995_s15, %s1465_s15   ;;  %s944_s14 = sphi %s993_s14, %s1464_s14   ;;  %s940_s13 = sphi %s991_s13, %s1463_s13   ;;  %s936_s12 = sphi %s989_s12, %s1462_s12  }
   0x8   : > { %p25_p0 = scmp.ge.s32.totalorder %s24_s20, 2  ;;  %s27_s21 = sadd.s32 1, %s956_s17 }
   0x9   : > { %s76_s22 = sadd.s32 1, %s940_s13  ;;  %p83_p1 = scmp.ne.s32.totalorder %s940_s13, %s936_s12 }
   0xa   : > { %s1469_s20 = smov (%p25_p0, %s24_s20), 0  ;;  %s1471_s21 = smov (!%p25_p0, %s27_s21), %s956_s17 }
   0xb   : > { %s73_s23 = ssub.s32 %s952_s16, %s1469_s20  ;;  %p84_p2 = scmp.eq.s32.totalorder %s960_s18, 0 }
   0xc   : > { %p29_p3 = scmp.ge.s32.totalorder %s1471_s21, 2  ;;  %p74_p4 = scmp.eq.s32.totalorder %s73_s23, 0 }
   0xd   : > { %p1036_p5 = por %p84_p2, %p83_p1  ;;  %p730_p6 = scmp.ge.s32.totalorder %s960_s18, 1 }
   0xe   : > { %s1473_s21 = smov (%p29_p3, %s1471_s21), 0  ;;  %p128_p7 = scmp.lt.s32.totalorder %s960_s18, 5 }
   0xf   : > { %s1438_s24 = scalar_select %p1036_p5, 1, 0 }
  0x10   : > { %s1044_s25 = scalar_select %p74_p4, %s940_s13, %s76_s22  }
  0x11   : > { %p1047_p8 = scmp.eq.s32.totalorder %s728_s19, 0  ;;  %p1051_p9 = pnand %p730_p6, %p128_p7 }
  0x12   : > { %s1441_s0 = sld [smem:[#allocation9_spill]]  ;;  %s152_s6 = sshll.u32 %s1431_s1, 4  ;;  %s153_s6 = int_to_ptr.vmem [resolvable:$true] %s152_s6 }
  0x13   : > { %s1439_s26 = scalar_select %p1047_p8, 1, 0 }
  0x14   : > { %s1440_s27 = scalar_select %p1051_p9, 1, 0 }
  0x15   : > { %p776_p10 = pneg %p1051_p9 }
  0x17   : > { %p1065_p11 = pnand %p1047_p8, %p776_p10 }
  0x18   : > { %s141_s30 = sshll.u32 %s1441_s0, 4  ;;  %s142_s30 = int_to_ptr.vmem [resolvable:$true] %s141_s30 }
  0x19   : > { %s864_s8 = scalar_lea.vmem %s142_s30, 16  ;;  %p866_p13 = pneg %p1065_p11 }
  0x1a   : > { %p865_p12 = scmp.ne.s32.totalorder %s142_s30, %s864_s8  ;;  %p872_p2 = scmp.lt.s32.totalorder %s142_s30, %s142_s30 }
  0x1b   : > { %p873_p3 = scmp.lt.s32.totalorder %s864_s8, %s864_s8 }
  0x1c   : > { %p867_p0 = pnand %p866_p13, %p865_p12 }
  0x1d   : > { %p874_p4 = por %p873_p3, %p872_p2 }
  0x1e   : > { %p868_p1 = pneg %p867_p0 }
  0x20   : > { %p875_p6 = pnand %p874_p4, %p868_p1 }
  0x22   : > { %878 = shalt.err (!%p875_p6)
}
  0x23   : > { %s966_s9 = smov [#allocation2]   ;;  %s879_s10 = scalar_lea.vmem %s153_s6, 16 }
  0x24   : > { %779 = dma.vmem_to_smem (!%p1065_p11), %s142_s30, 16, %s966_s9, [#allocation3]  }
  0x25   : > { %p880_p7 = scmp.ne.s32.totalorder %s153_s6, %s879_s10  ;;  %p887_p9 = scmp.lt.s32.totalorder %s153_s6, %s153_s6 }
  0x26   : > { %p888_p5 = scmp.lt.s32.totalorder %s879_s10, %s879_s10 }
  0x27   : > { %p882_p10 = pnand %p880_p7, %p866_p13 }
  0x28   : > { %p889_p12 = por %p888_p5, %p887_p9 }
  0x29   : > { %p883_p8 = pneg %p882_p10 }
  0x2b   : > { %p890_p0 = pnand %p889_p12, %p883_p8 }
  0x2d   : > { %893 = shalt.err (!%p890_p0)
}
  0x2e   : > { %s967_s11 = smov [#allocation4]   ;;  %p733_p1 = scmp.ge.s32.totalorder %s960_s18, 4 }
  0x2f   : > { %782 = dma.vmem_to_smem (!%p1065_p11), %s153_s6, 16, %s967_s11, [#allocation5]  }
  0x30   : > { %159 = sbr.rel (%p733_p1) target bundleno = 63 (0x3f), region = 24  ;;  %p1443_p2 = scmp.ne.s32.totalorder (!%p733_p1), %s1438_s24, 0 }
  0x37   : > { %162 = sbr.rel (!%p1443_p2) target bundleno = 63 (0x3f), region = 28  ;;  %s164_s19 = sand.u32 (%p1443_p2), 1, %s940_s13  }
  0x38   : > { %s757_s22 = sshll.u32 (%p1443_p2), %s952_s16, 4  ;;  %s734_s23 = sshll.u32 (%p1443_p2), %s164_s19, 6 }
  0x39   : > { %s169_s30 = scalar_lea.vmem (%p1443_p2), %s1432_s2, %s757_s22  ;;  %s166_s4 = scalar_lea.vmem (%p1443_p2), [#allocation6], %s734_s23 }
  0x3a   : > { %v211_v0 = vld [vmem:[%s169_s30] sm:$0xff] (%p1443_p2)  ;;  %v213_v1 = vld [vmem:[%s169_s30 + $0x8] sm:$0xff] (%p1443_p2) }
  0x3b   : > { %v215_v2 = vld [vmem:[%s169_s30 + $0x20] sm:$0xff] (%p1443_p2)  ;;  %212 = vst [vmem:[%s166_s4] sm:$0xff] (%p1443_p2), %v211_v0  ;;  %214 = vst [vmem:[%s166_s4 + $0x8] sm:$0xff] (%p1443_p2), %v213_v1  ;;  %v217_v3 = vld [vmem:[%s169_s30 + $0x28] sm:$0xff] (%p1443_p2) }
  0x3c   : > { %216 = vst [vmem:[%s166_s4 + $0x10] sm:$0xff] (%p1443_p2), %v215_v2  ;;  %v219_v4 = vld [vmem:[%s169_s30 + $0x40] sm:$0xff] (%p1443_p2)  ;;  %v221_v5 = vld [vmem:[%s169_s30 + $0x48] sm:$0xff] (%p1443_p2)  ;;  %218 = vst [vmem:[%s166_s4 + $0x18] sm:$0xff] (%p1443_p2), %v217_v3 }
  0x3d   : > { %220 = vst [vmem:[%s166_s4 + $0x20] sm:$0xff] (%p1443_p2), %v219_v4  ;;  %222 = vst [vmem:[%s166_s4 + $0x28] sm:$0xff] (%p1443_p2), %v221_v5  ;;  %v223_v6 = vld [vmem:[%s169_s30 + $0x60] sm:$0xff] (%p1443_p2)  ;;  %v225_v7 = vld [vmem:[%s169_s30 + $0x68] sm:$0xff] (%p1443_p2) }
  0x3e   : > { %224 = vst [vmem:[%s166_s4 + $0x30] sm:$0xff] %v223_v6  ;;  %226 = vst [vmem:[%s166_s4 + $0x38] sm:$0xff] %v225_v7 }
  0x3f PF: > { %p1444_p5 = scmp.ne.s32.totalorder %s1440_s27, 0 }
  0x40   : > { %p1445_p8 = scmp.ne.s32.totalorder (!%p1444_p5), %s1439_s26, 0 }
  0x41   : > { %235 = sbr.rel (%p1444_p5) target bundleno = 371 (0x173), region = 66 }
  0x48   : > { %927 = dma.done.wait (%p1445_p8), [#allocation3], 16  }
  0x49   : > { %929 = vsyncadd (%p1445_p8), [#allocation3], 4294967280 }
  0x4a   : > { %931 = dma.done.wait (%p1445_p8), [#allocation5], 16  }
  0x4b   : > { %933 = vsyncadd (%p1445_p8), [#allocation5], 4294967280  ;;  %s246_s24 = sand.u32 1, %s936_s12  }
  0x4c   : > { %s1094_s5 = sshll.u32 %s246_s24, 6 }
  0x4d   : > { %252 = sfence }
  0x4e   : > { %p273_p9 = scmp.lt.s32.totalorder %s948_s15, 1  ;;  %p275_p11 = scmp.lt.s32.totalorder %s944_s14, 1  ;;  %v285_v8 = vlaneseq  ;;  %v968_v10 = vmov -1e+30  }
  0x4f   : > { %s1099_s27 = sld [smem:[#allocation4]]  ;;  %s1101_s26 = sld [smem:[#allocation4 + $0x1]] }
  0x50   : > { %s274_s12 = scalar_select %p273_p9, %s948_s15, 1  ;;  %v1104_v9 = vand.u32 127, %v285_v8 }
  0x51   : > { %s1475_s14 = smov (!%p275_p11, %s944_s14), 1  ;;  %s1108_s8 = smul.u32 25, %s948_s15 }
  0x52   : > { %s741_s7 = sshll.u32 %s274_s12, 1  ;;  %s1118_s28 = smov 0  }
  0x53   : > { %s278_s9 = sadd.s32 %s741_s7, %s1475_s14 }
  0x54   : > { %s1113_s19 = scalar_lea.vmem %s1433_s3, %s278_s9 }
  0x55   : > { %287 = vst [vmem:[%s1113_s19] sm:$0x1] %v968_v10 }
  0x56 LB: >> { %s437_s14 = sadd.s32 10, %s1108_s8  ;;  %s743_s29 = sshll.u32 %s964_s28, 3  ;;  %vm376_vm15 = vcmp.eq.s32.totalorder %v1104_v9, 0  ;;  %s964_s28 = sphi %s1118_s28, %s293_s28  }
  0x57   : >> { %s1124_s15 = sld [smem:[#allocation2 + %s437_s14]]  ;;  %s439_s30 = sadd.s32 11, %s1108_s8 }
  0x58   : >> { %s1446_s6 = scalar_lea.vmem [#allocation6], %s1094_s5  ;;  %s1130_s24 = sld [smem:[#allocation2 + %s439_s30]] }
  0x59   : >> { %s295_s4 = scalar_lea.vmem %s1446_s6, %s743_s29 [#allocation6]  ;;  %s441_s12 = sadd.s32 12, %s1108_s8 }
  0x5a   : >> { %s443_s7 = sadd.s32 13, %s1108_s8  ;;  %v1134_v11 = vld [vmem:[%s295_s4] sm:$0xff]  ;;  %s1136_s9 = sld [smem:[#allocation2 + %s441_s12]]  ;;  %v1140_v12 = vld [vmem:[%s295_s4 + $0x10] sm:$0xff] }
  0x5b   : >> { %s1138_s10 = sld [smem:[#allocation2 + %s443_s7]]  ;;  %v1142_v13 = vld [vmem:[%s295_s4 + $0x20] sm:$0xff]  ;;  %v1144_v14 = vld [vmem:[%s295_s4 + $0x30] sm:$0xff]  ;;  %s325_s14 = sadd.s32 1, %s1108_s8  ;;  %vm314_vm0 = vcmp.ge.f32.partialorder %v1134_v11, 0.0  ;;  %vm315_vm1 = vcmp.ge.f32.partialorder %v1140_v12, 0.0 }
  0x5c   : >> { %s1147_s11 = sld [smem:[#allocation2 + %s1108_s8]]  ;;  %v306_v15 = vsub.f32 %v1142_v13, %v1134_v11  ;;  %v308_v16 = vsub.f32 %v1144_v14, %v1140_v12  ;;  %s327_s30 = sadd.s32 2, %s1108_s8  ;;  %vm1269_vm2 = vmand %vm314_vm0, %vm315_vm1  ;;  %vm433_vm0 = vcmp.eq.s32.totalorder %v1104_v9, 1  ;;  %vm490_vm1 = vcmp.eq.s32.totalorder %v1104_v9, 2 }
  0x5d   : >> { %v456_v17 = vstv %s1124_s15  ;;  %s1155_s29 = sld [smem:[#allocation2 + %s325_s14]]  ;;  %s329_s12 = sadd.s32 3, %s1108_s8 }
  0x5e   : >> { %s1158_s4 = sld [smem:[#allocation2 + %s327_s30]]  ;;  %v463_v18 = vstv %s1130_s24  ;;  %s494_s6 = sadd.s32 15, %s1108_s8  ;;  %v457_v19 = vmax.f32 %v1134_v11, %v456_v17  ;;  %v1170_v21 = vadd.f32 1.0, %v306_v15  ;;  %v1172_v22 = vadd.f32 1.0, %v308_v16 }
  0x5f   : >> { %s1162_s7 = sld [smem:[#allocation2 + %s329_s12]]  ;;  %v464_v20 = vmax.f32 %v1140_v12, %v463_v18  ;;  %s496_s14 = sadd.s32 16, %s1108_s8 }
  0x60   : >> { %s1167_s22 = sld [smem:[#allocation2 + %s494_s6]]  ;;  %s445_s30 = ssub.f32 %s1136_s9, %s1124_s15  ;;  %v454_v23 = vstv %s1136_s9  ;;  %v1195_v34 = vmul.f32 %v1172_v22, %v1170_v21  ;;  %vm311_vm4 = vcmp.eq.f32.partialorder %v1170_v21, 1.0  ;;  %vm312_vm5 = vcmp.eq.f32.partialorder %v1172_v22, 1.0 }
  0x61   : >> { %v461_v24 = vstv %s1138_s10  ;;  %s1178_s12 = sld [smem:[#allocation2 + %s496_s14]]  ;;  %s447_s23 = ssub.f32 %s1138_s10, %s1130_s24  ;;  %v455_v25 = vmin.f32 %v1142_v13, %v454_v23  ;;  %vm1318_vm9 = vmand %vm311_vm4, %vm312_vm5 }
  0x62   : >> { %v462_v26 = vmin.f32 %v1144_v14, %v461_v24  ;;  %v342_v27 = vstv %s1147_s11  ;;  %s498_s6 = sadd.s32 17, %s1108_s8  ;;  %s446_s0 = sadd.f32 1.0, %s445_s30 }
  0x63   : >> { %v343_v28 = vmax.f32 %v1134_v11, %v342_v27  ;;  %v349_v29 = vstv %s1155_s29  ;;  %s1188_s15 = sld [smem:[#allocation2 + %s498_s6]]  ;;  %s448_s9 = sadd.f32 1.0, %s447_s23  ;;  %v458_v30 = vsub.f32 %v455_v25, %v457_v19 }
  0x64   : >> { %v465_v31 = vsub.f32 %v462_v26, %v464_v20  ;;  %v340_v32 = vstv %s1158_s4  ;;  %v350_v33 = vmax.f32 %v1140_v12, %v349_v29  ;;  %s500_s24 = sadd.s32 18, %s1108_s8  ;;  %p450_p13 = scmp.eq.f32.partialorder %s446_s0, 1.0 }
  0x65   : >> { %s331_s10 = ssub.f32 %s1158_s4, %s1147_s11  ;;  %v341_v35 = vmin.f32 %v1142_v13, %v340_v32  ;;  %v347_v36 = vstv %s1162_s7  ;;  %s449_s14 = smul.f32 %s448_s9, %s446_s0  ;;  %v459_v37 = vadd.f32 1.0, %v458_v30 }
  0x66   : >> { %p451_p3 = scmp.eq.f32.partialorder %s448_s9, 1.0  ;;  %v466_v38 = vadd.f32 1.0, %v465_v31  ;;  %v348_v39 = vmin.f32 %v1144_v14, %v347_v36  ;;  %v513_v40 = vstv %s1167_s22  ;;  %s1205_s11 = sld [smem:[#allocation2 + %s500_s24]] }
  0x67   : >> { %s1203_s23 = sadd.f32 1.0, %s331_s10  ;;  %v344_v41 = vsub.f32 %v341_v35, %v343_v28  ;;  %v514_v42 = vmax.f32 %v1134_v11, %v513_v40  ;;  %v460_v43 = vmax.f32 %v459_v37, 0.0  ;;  %v469_v45 = vstv %s449_s14  ;;  %s382_s14 = sadd.s32 6, %s1108_s8 }
  0x68   : >> { %p1209_p4 = pnand %p451_p3, %p450_p13  ;;  %v467_v44 = vmax.f32 %v466_v38, 0.0  ;;  %s333_s30 = ssub.f32 %s1162_s7, %s1155_s29  ;;  %v351_v46 = vsub.f32 %v348_v39, %v350_v33  ;;  %v470_v47 = vadd.f32 %v469_v45, %v1195_v34  ;;  %v520_v50 = vstv %s1178_s12 }
  0x69   : >> { %p336_p6 = scmp.eq.f32.partialorder %s1203_s23, 1.0  ;;  %v345_v48 = vadd.f32 1.0, %v344_v41  ;;  %s502_s6 = ssub.f32 %s1188_s15, %s1167_s22  ;;  %v511_v49 = vstv %s1188_s15  ;;  %v521_v58 = vmax.f32 %v1140_v12, %v520_v50 }
  0x6a   : >> { %v1221_v51 = vmul.f32 %v467_v44, %v460_v43  ;;  %s752_s0 = scalar_select %p1209_p4, 0, 1  ;;  %v352_v52 = vadd.f32 1.0, %v351_v46  ;;  %v512_v53 = vmin.f32 %v1142_v13, %v511_v49 }
  0x6b   : >> { %s334_s29 = sadd.f32 1.0, %s333_s30  ;;  %v346_v54 = vmax.f32 %v345_v48, 0.0  ;;  %s380_s7 = sadd.s32 5, %s1108_s8 }
  0x6c   : >> { %v471_v55 = vsub.f32 %v470_v47, %v1221_v51  ;;  %v353_v56 = vmax.f32 %v352_v52, 0.0  ;;  %s1228_s22 = sadd.f32 1.0, %s502_s6  ;;  %v515_v57 = vsub.f32 %v512_v53, %v514_v42  ;;  %s1231_s15 = sld [smem:[#allocation2 + %s380_s7]]  ;;  %v518_v59 = vstv %s1205_s11 }
  0x6d   : >> { %s335_s9 = smul.f32 %s334_s29, %s1203_s23  ;;  %p337_p7 = scmp.eq.f32.partialorder %s334_s29, 1.0  ;;  %v519_v63 = vmin.f32 %v1144_v14, %v518_v59  ;;  %v476_v20 = vstv %s752_s0 }
  0x6e   : >> { %v472_v60 = vmax.f32 %v471_v55, 1e-10  ;;  %v1235_v61 = vmul.f32 %v353_v56, %v346_v54  ;;  %s504_s24 = ssub.f32 %s1205_s11, %s1178_s12  ;;  %p507_p10 = scmp.eq.f32.partialorder %s1228_s22, 1.0  ;;  %v516_v62 = vadd.f32 1.0, %v515_v57  ;;  %vm477_vm8 = vcmp.eq.s32.totalorder %v476_v20, 1 }
  0x6f   : >> { %p1243_p12 = pnand %p337_p7, %p336_p6  ;;  %v355_v0 = vstv %s335_s9  ;;  %v522_v2 = vsub.f32 %v519_v63, %v521_v58  ;;  %s1249_s12 = sld [smem:[#allocation2 + %s382_s14]] }
  0x70   : >> { %854 = vrcp.f32 %v472_v60  ;;  %v356_v1 = vadd.f32 %v355_v0, %v1195_v34  ;;  %s505_s30 = sadd.f32 1.0, %s504_s24  ;;  %v517_v4 = vmax.f32 %v516_v62, 0.0  ;;  %s1449_s6 = sfloor.f32 %s1101_s26 }
  0x71   : >> { %v523_v5 = vadd.f32 1.0, %v522_v2  ;;  %v317_v6 = vstv %s1449_s6  ;;  %s384_s29 = sadd.s32 7, %s1108_s8  ;;  %s386_s7 = sadd.s32 8, %s1108_s8 }
  0x72   : >> { %v357_v3 = vsub.f32 %v356_v1, %v1235_v61  ;;  %s506_s11 = smul.f32 %s505_s30, %s1228_s22  ;;  %p508_p0 = scmp.eq.f32.partialorder %s505_s30, 1.0  ;;  %vm318_vm3 = vcmp.lt.f32.partialorder %v1142_v13, %v317_v6  ;;  %v399_v19 = vstv %s1231_s15 }
  0x73   : >> { %v524_v8 = vmax.f32 %v523_v5, 0.0  ;;  %s1261_s9 = sld [smem:[#allocation2 + %s384_s29]]  ;;  %s1450_s24 = sfloor.f32 %s1099_s27  ;;  %vm1299_vm6 = vmand %vm1269_vm2, %vm318_vm3  ;;  %v400_v26 = vmax.f32 %v1134_v11, %v399_v19  ;;  %vm547_vm2 = vcmp.eq.s32.totalorder %v1104_v9, 3  ;;  %vm604_vm3 = vcmp.eq.s32.totalorder %v1104_v9, 4 }
  0x74   : >> { %v358_v7 = vmax.f32 %v357_v3, 1e-10  ;;  %v526_v10 = vstv %s506_s11  ;;  %v320_v15 = vstv %s1450_s24  ;;  %s1266_s14 = sld [smem:[#allocation2 + %s386_s7]]  ;;  %s551_s23 = sadd.s32 20, %s1108_s8 }
  0x75   : >> { %v527_v16 = vadd.f32 %v526_v10, %v1195_v34  ;;  %p1277_p1 = pnand %p508_p0, %p507_p10  ;;  %v1281_v18 = vmul.f32 %v524_v8, %v517_v4  ;;  %v406_v23 = vstv %s1249_s12  ;;  %s1288_s6 = sld [smem:[#allocation2 + %s551_s23]]  ;;  %vm321_vm7 = vcmp.lt.f32.partialorder %v1144_v14, %v320_v15 }
  0x76   : >> { %856 = vrcp.f32 %v358_v7  ;;  %s553_s29 = sadd.s32 21, %s1108_s8  ;;  %s555_s4 = sadd.s32 22, %s1108_s8  ;;  %v407_v30 = vmax.f32 %v1140_v12, %v406_v23  ;;  %vm1331_vm10 = vmand %vm1299_vm6, %vm321_vm7 }
  0x77   : >> { %v528_v24 = vsub.f32 %v527_v16, %v1281_v18  ;;  %s1294_s22 = sld [smem:[#allocation2 + %s553_s29]]  ;;  %s557_s30 = sadd.s32 23, %s1108_s8 }
  0x78   : >> { %s1305_s0 = sld [smem:[#allocation2 + %s555_s4]]  ;;  %s293_s28 = sadd.s32 1, %s964_s28  }
  0x79   : >> { %v529_v28 = vmax.f32 %v528_v24, 1e-10  ;;  %s388_s23 = ssub.f32 %s1261_s9, %s1231_s15  ;;  %v397_v29 = vstv %s1261_s9  ;;  %s1312_s7 = sld [smem:[#allocation2 + %s557_s30]] }
  0x7a   : >> { %v855_v27 = vpop.eup %854  ;;  %s390_s24 = ssub.f32 %s1266_s14, %s1249_s12  ;;  %v398_v33 = vmin.f32 %v1142_v13, %v397_v29  ;;  %v404_v35 = vstv %s1266_s14  ;;  %p290_p3 = scmp.ge.s32.totalorder %s293_s28, 2  }
  0x7b   : >> { %v474_v32 = vmul.f32 %v855_v27, %v1221_v51  ;;  %858 = vrcp.f32 %v529_v28  ;;  %s1335_s15 = sadd.f32 1.0, %s388_s23  ;;  %v405_v21 = vmin.f32 %v1144_v14, %v404_v35  ;;  %v570_v39 = vstv %s1288_s6 }
  0x7c   : >> { %s1460_s12 = scalar_select %p1243_p12, 0, 1  ;;  %v401_v38 = vsub.f32 %v398_v33, %v400_v26  ;;  %v571_v42 = vmax.f32 %v1134_v11, %v570_v39 }
  0x7d   : >> { %v478_v36 = vsel %vm477_vm8, 0.0, %v474_v32  ;;  %s1341_s9 = sadd.f32 1.0, %s390_s24  ;;  %v408_v41 = vsub.f32 %v405_v21, %v407_v30  ;;  %v577_v43 = vstv %s1294_s22  ;;  %p393_p2 = scmp.eq.f32.partialorder %s1335_s15, 1.0 }
  0x7e   : >> { %v362_v37 = vstv %s1460_s12  ;;  %v479_v40 = vsel %vm1318_vm9, -1.0, %v478_v36  ;;  %s753_s14 = scalar_select %p1277_p1, 0, 1  ;;  %v402_v45 = vadd.f32 1.0, %v401_v38  ;;  %v568_v46 = vstv %s1305_s0 }
  0x7f   : >> { %v480_v44 = vsel %vm1331_vm10, %v479_v40, -1e+30  ;;  %s392_s10 = smul.f32 %s1341_s9, %s1335_s15  ;;  %v578_v47 = vmax.f32 %v1140_v12, %v577_v43  ;;  %vm363_vm11 = vcmp.eq.s32.totalorder %v362_v37, 1  ;;  %v409_v49 = vadd.f32 1.0, %v408_v41  ;;  %s559_s11 = ssub.f32 %s1305_s0, %s1288_s6 }
  0x80   : >> { %v857_v48 = vpop.eup %856  ;;  %481 = vmax.xlane.f32.xlu1 %v480_v44  ;;  %v569_v50 = vmin.f32 %v1142_v13, %v568_v46  ;;  %v575_v51 = vstv %s1312_s7  ;;  %v403_v52 = vmax.f32 %v402_v45, 0.0  ;;  %s561_s29 = ssub.f32 %s1312_s7, %s1294_s22  ;;  %v533_v58 = vstv %s753_s14  ;;  %p394_p5 = scmp.eq.f32.partialorder %s1341_s9, 1.0 }
  0x81   : >> { %v360_v11 = vmul.f32 %v857_v48, %v1235_v61  ;;  %v412_v53 = vstv %s392_s10  ;;  %v576_v54 = vmin.f32 %v1144_v14, %v575_v51  ;;  %v410_v55 = vmax.f32 %v409_v49, 0.0  ;;  %s1365_s4 = sadd.f32 1.0, %s559_s11 }
  0x82   : >> { %v413_v12 = vadd.f32 %v412_v53, %v1195_v34  ;;  %v572_v56 = vsub.f32 %v569_v50, %v571_v42  ;;  %s562_s6 = sadd.f32 1.0, %s561_s29  ;;  %vm534_vm12 = vcmp.eq.s32.totalorder %v533_v58, 1  ;;  %p1379_p8 = pnand %p394_p5, %p393_p2 }
  0x83   : >> { %v364_v57 = vsel %vm363_vm11, 0.0, %v360_v11  ;;  %v579_v13 = vsub.f32 %v576_v54, %v578_v47  ;;  %v411_v60 = vmul.f32 %v410_v55, %v403_v52  ;;  %p564_p9 = scmp.eq.f32.partialorder %s1365_s4, 1.0 }
  0x84   : >> { %v365_v59 = vsel %vm1318_vm9, -1.0, %v364_v57  ;;  %v573_v61 = vadd.f32 1.0, %v572_v56  ;;  %s563_s22 = smul.f32 %s562_s6, %s1365_s4  ;;  %p565_p11 = scmp.eq.f32.partialorder %s562_s6, 1.0 }
  0x85   : >> { %v366_v14 = vsel %vm1331_vm10, %v365_v59, -1e+30  ;;  %v580_v62 = vadd.f32 1.0, %v579_v13  ;;  %v859_v63 = vpop.eup %858  ;;  %v414_v0 = vsub.f32 %v413_v12, %v411_v60  ;;  %s751_s30 = scalar_select %p1379_p8, 0, 1 }
  0x86   : >> { %367 = vmax.xlane.f32.xlu0 %v366_v14  ;;  %v574_v1 = vmax.f32 %v573_v61, 0.0  ;;  %v531_v2 = vmul.f32 %v859_v63, %v1281_v18  ;;  %v583_v5 = vstv %s563_s22  ;;  %p566_p13 = pnand %p565_p11, %p564_p9  ;;  %v323_v14 = vld [vmem:[%s1113_s19] sm:$0x1] }
  0x87   : >> { %v581_v3 = vmax.f32 %v580_v62, 0.0  ;;  %v415_v4 = vmax.f32 %v414_v0, 1e-10  ;;  %v584_v8 = vadd.f32 %v583_v5, %v1195_v34  ;;  %v419_v18 = vstv %s751_s30 }
  0x88   : >> { %v535_v6 = vsel %vm534_vm12, 0.0, %v531_v2  ;;  %s754_s23 = scalar_select %p566_p13, 0, 1  ;;  %vm420_vm13 = vcmp.eq.s32.totalorder %v419_v18, 1 }
  0x89   : >> { %v582_v7 = vmul.f32 %v581_v3, %v574_v1  ;;  %v536_v10 = vsel %vm1318_vm9, -1.0, %v535_v6  ;;  %860 = vrcp.f32 %v415_v4 }
  0x8a   : >> { %v537_v15 = vsel %vm1331_vm10, %v536_v10, -1e+30  ;;  %v590_v20 = vstv %s754_s23 }
  0x8b   : >> { %v585_v16 = vsub.f32 %v584_v8, %v582_v7  ;;  %538 = vmax.xlane.f32.xlu1 %v537_v15  ;;  %vm591_vm14 = vcmp.eq.s32.totalorder %v590_v20, 1 }
  0x8d   : >> { %v586_v17 = vmax.f32 %v585_v16, 1e-10 }
  0x8f   : >> { %862 = vrcp.f32 %v586_v17 }
  0x93   : >> { %v861_v19 = vpop.eup %860 }
  0x94   : >> { %v417_v34 = vmul.f32 %v861_v19, %v411_v60 }
  0x96   : >> { %v421_v23 = vsel %vm420_vm13, 0.0, %v417_v34 }
  0x97   : >> { %v422_v24 = vsel %vm1318_vm9, -1.0, %v421_v23 }
  0x98   : >> { %v423_v26 = vsel %vm1331_vm10, %v422_v24, -1e+30 }
  0x99   : >> { %v863_v25 = vpop.eup %862  ;;  %424 = vmax.xlane.f32.xlu0 %v423_v26 }
  0x9a   : >> { %v588_v27 = vmul.f32 %v863_v25, %v582_v7 }
  0x9c   : >> { %v592_v28 = vsel %vm591_vm14, 0.0, %v588_v27 }
  0x9d   : >> { %v593_v29 = vsel %vm1318_vm9, -1.0, %v592_v28 }
  0x9e   : >> { %v594_v30 = vsel %vm1331_vm10, %v593_v29, -1e+30 }
  0x9f   : >> { %595 = vmax.xlane.f32.xlu0 %v594_v30 }
 0x10d   : >> { %v482_v35 = vpop.xlane.xlu1 %481 }
 0x10e   : >> { %v483_v42 = vrot.slane %v482_v35, 4 }
 0x110   : >> { %v484_v44 = vmax.f32 %v482_v35, %v483_v42 }
 0x112   : >> { %v485_v45 = vrot.slane %v484_v44, 2 }
 0x113   : >> { %v368_v32 = vpop.xlane.xlu0 %367 }
 0x114   : >> { %v369_v33 = vrot.slane %v368_v32, 4  ;;  %v486_v49 = vmax.f32 %v484_v44, %v485_v45 }
 0x116   : >> { %v370_v21 = vmax.f32 %v368_v32, %v369_v33  ;;  %v487_v55 = vrot.slane %v486_v49, 1 }
 0x118   : >> { %v371_v36 = vrot.slane %v370_v21, 2  ;;  %v539_v38 = vpop.xlane.xlu1 %538  ;;  %v488_v59 = vmax.f32 %v486_v49, %v487_v55 }
 0x119   : >> { %v540_v40 = vrot.slane %v539_v38, 4 }
 0x11a   : >> { %v372_v37 = vmax.f32 %v370_v21, %v371_v36 }
 0x11b   : >> { %v541_v43 = vmax.f32 %v539_v38, %v540_v40 }
 0x11c   : >> { %v373_v39 = vrot.slane %v372_v37, 1 }
 0x11d   : >> { %v542_v31 = vrot.slane %v541_v43, 2 }
 0x11e   : >> { %v374_v41 = vmax.f32 %v372_v37, %v373_v39 }
 0x11f   : >> { %v543_v47 = vmax.f32 %v541_v43, %v542_v31 }
 0x120   : >> { %758 = vpush %v374_v41 }
 0x121   : >> { %v544_v53 = vrot.slane %v543_v47, 1 }
 0x123   : >> { %v545_v58 = vmax.f32 %v543_v47, %v544_v53 }
 0x126   : >> { %v425_v46 = vpop.xlane.xlu0 %424 }
 0x127   : >> { %v426_v22 = vrot.slane %v425_v46, 4 }
 0x129   : >> { %v427_v48 = vmax.f32 %v425_v46, %v426_v22 }
 0x12b   : >> { %v428_v50 = vrot.slane %v427_v48, 2 }
 0x12c   : >> { %v596_v51 = vpop.xlane.xlu0 %595 }
 0x12d   : >> { %v597_v11 = vrot.slane %v596_v51, 4  ;;  %v429_v52 = vmax.f32 %v427_v48, %v428_v50 }
 0x12f   : >> { %v598_v54 = vmax.f32 %v596_v51, %v597_v11  ;;  %v430_v12 = vrot.slane %v429_v52, 1 }
 0x131   : >> { %v599_v56 = vrot.slane %v598_v54, 2  ;;  %v431_v57 = vmax.f32 %v429_v52, %v430_v12 }
 0x133   : >> { %v600_v13 = vmax.f32 %v598_v54, %v599_v56  ;;  %760 = vpush %v431_v57 }
 0x134   : >> { %762 = vpush %v488_v59 }
 0x135   : >> { %v601_v60 = vrot.slane %v600_v13, 1  ;;  %764 = vpush %v545_v58 }
 0x137   : >> { %v602_v61 = vmax.f32 %v600_v13, %v601_v60 }
 0x139   : >> { %766 = vpush %v602_v61 }
 0x151   : >> { %s759_s7 = spop %758 }
 0x152   : >> { %v377_v62 = vstv %s759_s7 }
 0x153   : >> { %v378_v63 = vmax.f32 %v323_v14, %v377_v62 }
 0x155   : >> { %v379_v0 = vsel %vm376_vm15, %v378_v63, %v323_v14 }
 0x164   : >> { %s761_s24 = spop %760 }
 0x165   : >> { %v434_v1 = vstv %s761_s24  ;;  %s763_s15 = spop %762 }
 0x166   : >> { %v435_v2 = vmax.f32 %v379_v0, %v434_v1  ;;  %v491_v4 = vstv %s763_s15  ;;  %s765_s12 = spop %764 }
 0x167   : >> { %v548_v7 = vstv %s765_s12 }
 0x168   : >> { %v436_v3 = vsel %vm433_vm0, %v435_v2, %v379_v0 }
 0x169   : >> { %v492_v5 = vmax.f32 %v436_v3, %v491_v4 }
 0x16a   : >> { %s767_s9 = spop %766 }
 0x16b   : >> { %v493_v6 = vsel %vm490_vm1, %v492_v5, %v436_v3  ;;  %v605_v15 = vstv %s767_s9 }
 0x16c   : >> { %v549_v8 = vmax.f32 %v493_v6, %v548_v7  ;;  %292 = sbr.rel (!%p290_p3) target bundleno = 86 (0x56), region = 125 }
 0x16e   : >> { %v550_v10 = vsel %vm547_vm2, %v549_v8, %v493_v6 }
 0x16f   : >> { %v606_v16 = vmax.f32 %v550_v10, %v605_v15 }
 0x171   : >> { %v607_v17 = vsel %vm604_vm3, %v606_v16, %v550_v10 }
 0x172   : >> { %608 = vst [vmem:[%s1113_s19] sm:$0x1] %v607_v17 }
 0x173 PF: > { %s15_s18 = sadd.s32 1, %s960_s18   ;;  %s1462_s12 = smov %s940_s13 }
 0x174   : > { %p12_p4 = scmp.ge.s32.totalorder %s15_s18, 6   ;;  %s1463_s13 = smov %s1044_s25 }
 0x175   : > { %s1464_s14 = smov %s952_s16  ;;  %s1465_s15 = smov %s956_s17 }
 0x176   : > { %s1466_s16 = smov %s1469_s20  ;;  %s1467_s17 = smov %s1473_s21 }
 0x177   :  { %14 = sbr.rel (!%p12_p4) target bundleno = 7 (0x7), region = 136 }
 0x17e   :  { %634 = vsyncpa [#allocation3], 1 }
 0x17f   :  { %636 = vsyncpa [#allocation3 + $0x1], 1 }
 0x180   :  { %637 = vsyncpa [#allocation5], 1 }

// kernel: _anchor_target_impl.7
= control target key start
LH: loop header
LB: loop body
LE: loop exit
PB: predicated region body
PF: predicated region fallthrough
CT: control target
= control target key end

     0   :  { %s2119_s0 = inlined_call_operand.vmem [shape: f32[50], index: 0, kind: input, shape index: {}]   ;;  %s2120_s1 = inlined_call_operand.vmem [shape: f32[6], index: 1, kind: input, shape index: {}]   ;;  %s2121_s2 = inlined_call_operand.vmem [shape: f32[256], index: 2, kind: input, shape index: {}]   ;;  %s2122_s3 = inlined_call_operand.vmem [shape: f32[4,32,128], index: 3, kind: input, shape index: {}]   ;;  %s2123_s4 = inlined_call_operand.vmem [shape: f32[2,32,128], index: 4, kind: output, shape index: {0}]   ;;  %s2124_s5 = inlined_call_operand.vmem [shape: f32[2,4,32,128], index: 5, kind: output, shape index: {1}]  }
   0x1   :  { %2162 = sst [smem:[#allocation28_spill]] %s2119_s0 }
   0x2   :  { %2163 = sst [smem:[#allocation29_spill]] %s2120_s1 }
   0x3   :  { %2164 = sst [smem:[#allocation30_spill]] %s2121_s2 }
   0x4   :  { %2165 = sst [smem:[#allocation31_spill]] %s2122_s3 }
   0x5   :  { %2166 = sst [smem:[#allocation32_spill]] %s2123_s4 }
   0x6   :  { %2167 = sst [smem:[#allocation33_spill]] %s2124_s5 }
   0x7   :  { %11 = vsyncpa [#allocation3], 0 }
   0x8   :  { %12 = vsyncpa [#allocation5], 0  ;;  %s1360_s18 = smov 0   ;;  %s1362_s19 = smov 0  }
   0x9   :  { %s1364_s20 = smov 0   ;;  %s1366_s21 = smov 0  }
   0xa   :  { %s1368_s22 = smov 0   ;;  %s1370_s23 = smov 0  }
   0xb   :  { %s1372_s24 = smov 0   ;;  %s1374_s25 = smov 0  }
   0xc   :  { %s1376_s26 = smov 0  }
   0xd LB: > { %2168 = sst [smem:[#allocation11_spill]] %s1291_s19  ;;  %s1015_s27 = sadd.s32 4294967295, %s1319_s26   ;;  %s1319_s26 = sphi %s1376_s26, %s18_s26   ;;  %s1315_s25 = sphi %s1374_s25, %s2262_s25   ;;  %s1311_s24 = sphi %s1372_s24, %s2261_s24   ;;  %s1307_s23 = sphi %s1370_s23, %s2260_s23   ;;  %s1303_s22 = sphi %s1368_s22, %s2259_s22   ;;  %s1299_s21 = sphi %s1366_s21, %s2258_s21   ;;  %s1295_s20 = sphi %s1364_s20, %s2257_s20   ;;  %s1291_s19 = sphi %s1362_s19, %s2256_s19   ;;  %s1287_s18 = sphi %s1360_s18, %s2255_s18  }
   0xe   : > { %2169 = sst [smem:[#allocation12_spill]] %s1299_s21  ;;  %s27_s28 = sadd.s32 1, %s1311_s24 }
   0xf   : > { %2170 = sst [smem:[#allocation13_spill]] %s1307_s23  ;;  %p28_p0 = scmp.ge.s32.totalorder %s27_s28, 2 }
  0x10   : > { %2171 = sst [smem:[#allocation14_spill]] %s1311_s24  ;;  %s30_s29 = sadd.s32 1, %s1315_s25 }
  0x11   : > { %2172 = sst [smem:[#allocation15_spill]] %s1315_s25  ;;  %s100_s30 = sadd.s32 1, %s1299_s21 }
  0x12   : > { %2173 = sst [smem:[#allocation16_spill]] %s1319_s26  ;;  %p107_p1 = scmp.ne.s32.totalorder %s1299_s21, %s1295_s20 }
  0x13   : > { %s2264_s28 = smov (%p28_p0, %s27_s28), 0  ;;  %s2266_s29 = smov (!%p28_p0, %s30_s29), %s1315_s25 }
  0x14   : > { %2174 = sst [smem:[#allocation17_spill]] %s2264_s28  ;;  %s97_s6 = ssub.s32 %s1311_s24, %s2264_s28 }
  0x15   : > { %p108_p2 = scmp.eq.s32.totalorder %s1319_s26, 0  ;;  %p32_p3 = scmp.ge.s32.totalorder %s2266_s29, 2 }
  0x16   : > { %p98_p4 = scmp.eq.s32.totalorder %s97_s6, 0  ;;  %s156_s8 = sadd.s32 1, %s1291_s19 }
  0x17   : > { %p1417_p5 = por %p108_p2, %p107_p1  ;;  %s2268_s29 = smov (%p32_p3, %s2266_s29), 0 }
  0x18   : > { %2176 = sst [smem:[#allocation18_spill]] %s2268_s29  ;;  %s151_s10 = ssub.s32 %s1315_s25, %s2268_s29 }
  0x19   : > { %s2175_s7 = scalar_select %p1417_p5, 1, 0 }
  0x1a   : > { %s1425_s9 = scalar_select %p98_p4, %s1299_s21, %s100_s30  }
  0x1b   : > { %p166_p6 = scmp.ne.s32.totalorder %s1291_s19, %s1287_s18  ;;  %s153_s11 = sor.u32 %s151_s10, %s97_s6 }
  0x1c   : > { %2177 = sst [smem:[#allocation19_spill]] %s1425_s9  ;;  %p167_p7 = scmp.eq.s32.totalorder %s1015_s27, 3 }
  0x1d   : > { %p154_p8 = scmp.eq.s32.totalorder %s153_s11, 0  ;;  %p1017_p9 = scmp.ge.s32.totalorder %s1319_s26, 1 }
  0x1e   : > { %p1432_p10 = por %p167_p7, %p166_p6  ;;  %p180_p11 = scmp.lt.s32.totalorder %s1319_s26, 5 }
  0x1f   : > { %s1438_s13 = scalar_select %p154_p8, %s1291_s19, %s156_s8  }
  0x20   : > { %s2178_s12 = scalar_select %p1432_p10, 1, 0 }
  0x21   : > { %2180 = sst [smem:[#allocation21_spill]] %s1438_s13  ;;  %p1440_p12 = pnand %p1017_p9, %p180_p11 }
  0x22   : > { %2179 = sst [smem:[#allocation20_spill]] %s2178_s12  ;;  %p1444_p13 = scmp.eq.s32.totalorder %s1015_s27, 0 }
  0x23   : > { %s2181_s14 = scalar_select %p1440_p12, 1, 0 }
  0x24   : > { %s2182_s15 = scalar_select %p1444_p13, 1, 0 }
  0x25   : > { %s2183_s1 = sld [smem:[#allocation29_spill]]  ;;  %p1073_p0 = pneg %p1440_p12 }
  0x26   : > { %s2185_s0 = sld [smem:[#allocation28_spill]] }
  0x27   : > { %p1455_p1 = pnand %p1444_p13, %p1073_p0 }
  0x29   : > { %p1194_p3 = pneg %p1455_p1 }
  0x2b   : > { %s204_s30 = sshll.u32 %s2183_s1, 4  ;;  %s205_s30 = int_to_ptr.vmem [resolvable:$true] %s204_s30 }
  0x2c   : > { %s193_s27 = sshll.u32 %s2185_s0, 4  ;;  %s1192_s11 = scalar_lea.vmem %s205_s30, 16  ;;  %s194_s27 = int_to_ptr.vmem [resolvable:$true] %s193_s27 }
  0x2d   : > { %p1193_p2 = scmp.ne.s32.totalorder %s205_s30, %s1192_s11  ;;  %p1200_p7 = scmp.lt.s32.totalorder %s205_s30, %s205_s30 }
  0x2e   : > { %p1201_p8 = scmp.lt.s32.totalorder %s1192_s11, %s1192_s11 }
  0x2f   : > { %p1195_p4 = pnand %p1194_p3, %p1193_p2 }
  0x30   : > { %p1202_p9 = por %p1201_p8, %p1200_p7 }
  0x31   : > { %p1196_p6 = pneg %p1195_p4 }
  0x33   : > { %p1203_p11 = pnand %p1202_p9, %p1196_p6 }
  0x35   : > { %1206 = shalt.err (!%p1203_p11)
}
  0x36   : > { %s1325_s16 = smov [#allocation4]   ;;  %s1207_s17 = scalar_lea.vmem %s194_s27, 16 }
  0x37   : > { %1079 = dma.vmem_to_smem (!%p1455_p1), %s205_s30, 16, %s1325_s16, [#allocation5]  }
  0x38   : > { %p1208_p0 = scmp.ne.s32.totalorder %s194_s27, %s1207_s17  ;;  %p1215_p12 = scmp.lt.s32.totalorder %s194_s27, %s194_s27 }
  0x39   : > { %p1216_p2 = scmp.lt.s32.totalorder %s1207_s17, %s1207_s17 }
  0x3a   : > { %p1210_p10 = pnand %p1208_p0, %p1194_p3 }
  0x3b   : > { %p1217_p4 = por %p1216_p2, %p1215_p12 }
  0x3c   : > { %p1211_p13 = pneg %p1210_p10 }
  0x3e   : > { %p1218_p5 = pnand %p1217_p4, %p1211_p13 }
  0x40   : > { %1221 = shalt.err (!%p1218_p5)
}
  0x41   : > { %s1326_s8 = smov [#allocation2]   ;;  %s2186_s2 = sld [smem:[#allocation30_spill]] }
  0x42   : > { %1076 = dma.vmem_to_smem (!%p1455_p1), %s194_s27, 16, %s1326_s8, [#allocation3]  }
  0x47   : > { %s215_s30 = sshll.u32 %s2186_s2, 4  ;;  %s216_s30 = int_to_ptr.vmem [resolvable:$true] %s215_s30 }
  0x48   : > { %s1222_s16 = scalar_lea.vmem %s216_s30, 32  ;;  %p1230_p8 = scmp.lt.s32.totalorder %s216_s30, %s216_s30 }
  0x49   : > { %p1223_p6 = scmp.ne.s32.totalorder %s216_s30, %s1222_s16  ;;  %p1231_p12 = scmp.lt.s32.totalorder %s1222_s16, %s1222_s16 }
  0x4b   : > { %p1225_p10 = pnand %p1223_p6, %p1194_p3  ;;  %p1232_p13 = por %p1231_p12, %p1230_p8 }
  0x4d   : > { %p1226_p7 = pneg %p1225_p10 }
  0x4f   : > { %p1233_p5 = pnand %p1232_p13, %p1226_p7 }
  0x51   : > { %1236 = shalt.err (!%p1233_p5)
}
  0x52   : > { %s1327_s17 = smov [#allocation6]   ;;  %p1021_p9 = scmp.ge.s32.totalorder %s1319_s26, 4 }
  0x53   : > { %1082 = dma.vmem_to_smem (!%p1455_p1), %s216_s30, 32, %s1327_s17, [#allocation5]  }
  0x54   : > { %222 = sbr.rel (%p1021_p9) target bundleno = 105 (0x69), region = 28  ;;  %p2187_p11 = scmp.ne.s32.totalorder (!%p1021_p9), %s2175_s7, 0 }
  0x5b   : > { %225 = sbr.rel (!%p2187_p11) target bundleno = 105 (0x69), region = 32  ;;  %s227_s27 = sand.u32 (%p2187_p11), 1, %s1299_s21  }
  0x5c   : > { %s1060_s8 = sshll.u32 (%p2187_p11), %s1311_s24, 4  ;;  %s1022_s10 = sshll.u32 (%p2187_p11), %s227_s27, 6 }
  0x5d   : > { %s2188_s3 = sld [smem:[#allocation31_spill]] (%p2187_p11)  ;;  %s229_s6 = scalar_lea.vmem (%p2187_p11), [#allocation7], %s1022_s10 }
  0x63   : > { %s232_s0 = scalar_lea.vmem %s2188_s3, %s1060_s8 }
  0x64   : > { %v274_v0 = vld [vmem:[%s232_s0] sm:$0xff]  ;;  %v276_v1 = vld [vmem:[%s232_s0 + $0x8] sm:$0xff] }
  0x65   : > { %v278_v2 = vld [vmem:[%s232_s0 + $0x20] sm:$0xff]  ;;  %275 = vst [vmem:[%s229_s6] sm:$0xff] %v274_v0  ;;  %277 = vst [vmem:[%s229_s6 + $0x8] sm:$0xff] %v276_v1  ;;  %v280_v3 = vld [vmem:[%s232_s0 + $0x28] sm:$0xff] }
  0x66   : > { %279 = vst [vmem:[%s229_s6 + $0x10] sm:$0xff] %v278_v2  ;;  %v282_v4 = vld [vmem:[%s232_s0 + $0x40] sm:$0xff]  ;;  %v284_v5 = vld [vmem:[%s232_s0 + $0x48] sm:$0xff]  ;;  %281 = vst [vmem:[%s229_s6 + $0x18] sm:$0xff] %v280_v3 }
  0x67   : > { %283 = vst [vmem:[%s229_s6 + $0x20] sm:$0xff] %v282_v4  ;;  %285 = vst [vmem:[%s229_s6 + $0x28] sm:$0xff] %v284_v5  ;;  %v286_v6 = vld [vmem:[%s232_s0 + $0x60] sm:$0xff]  ;;  %v288_v7 = vld [vmem:[%s232_s0 + $0x68] sm:$0xff] }
  0x68   : > { %287 = vst [vmem:[%s229_s6 + $0x30] sm:$0xff] %v286_v6  ;;  %289 = vst [vmem:[%s229_s6 + $0x38] sm:$0xff] %v288_v7 }
  0x69 PF: > { %p2189_p1 = scmp.ne.s32.totalorder %s2181_s14, 0 }
  0x6b   : > { %298 = sbr.rel (%p2189_p1) target bundleno = 257 (0x101), region = 70 }
  0x72   : > { %p2190_p3 = scmp.ne.s32.totalorder %s2182_s15, 0 }
  0x74   : > { %1278 = dma.done.wait (%p2190_p3), [#allocation3], 16  }
  0x75   : > { %1280 = vsyncadd (%p2190_p3), [#allocation3], 4294967280 }
  0x76   : > { %1282 = dma.done.wait (%p2190_p3), [#allocation5], 48  }
  0x77   : > { %1284 = vsyncadd (%p2190_p3), [#allocation5], 4294967248  ;;  %s313_s0 = sand.u32 1, %s1295_s20  }
  0x78   : > { %s1501_s7 = sshll.u32 %s313_s0, 6 }
  0x79   : > { %2191 = sst [smem:[#allocation22_spill]] %s1501_s7 }
  0x7a   : > { %319 = sfence }
  0x7b   : > { %s346_s14 = sand.u32 1, %s1287_s18   ;;  %s1506_s17 = sshll.u32 %s1303_s22, 1 }
  0x7c   : > { %2192 = sst [smem:[#allocation23_spill]] %s1506_s17  ;;  %s1030_s15 = sshll.u32 %s346_s14, 6 }
  0x7d   : > { %p351_p0 = scmp.lt.s32.totalorder %s1307_s23, 1  ;;  %p353_p2 = scmp.lt.s32.totalorder %s1506_s17, 3 }
  0x7e   : > { %s1512_s10 = sld [smem:[#allocation4]]  ;;  %s1514_s16 = sld [smem:[#allocation4 + $0x1]] }
  0x7f   : > { %s352_s20 = scalar_select %p351_p0, %s1307_s23, 1 }
  0x80   : > { %s354_s27 = scalar_select %p353_p2, %s1506_s17, 3 }
  0x81   : > { %s1032_s8 = sshll.u32 %s352_s20, 2  ;;  %s1517_s0 = smul.u32 25, %s1307_s23 }
  0x82   : > { %s356_s11 = sadd.s32 %s1032_s8, %s354_s27  ;;  %s2195_s4 = sld [smem:[#allocation32_spill]] }
  0x83   : > { %s1033_s6 = sshll.u32 %s356_s11, 3  ;;  %s1525_s14 = sshll.u32 %s1307_s23, 7 }
  0x84   : > { %2193 = sst [smem:[#allocation24_spill]] %s1512_s10  ;;  %s1529_s20 = scalar_lea.vmem [#allocation8], %s1030_s15 }
  0x85   : > { %2194 = sst [smem:[#allocation25_spill]] %s1514_s16  ;;  %s1531_s3 = smov 0  }
  0x86   : > { %2196 = sst [smem:[#allocation26_spill]] %s1525_s14 }
  0x88   : > { %s1522_s30 = scalar_lea.vmem %s2195_s4, %s1033_s6 }
  0x89 LB: >> { %s2197_s14 = sld [smem:[#allocation26_spill]]  ;;  %s2198_s7 = sld [smem:[#allocation22_spill]]  ;;  %s1323_s3 = sphi %s1531_s3, %s372_s3  }
  0x8a   : >> { %2199 = sst [smem:[#allocation27_spill]] %s1323_s3  ;;  %s2128_s27 = sadd.s32 1, %s1517_s0 }
  0x8b   : >> { %s1537_s15 = sld [smem:[#allocation2 + %s1517_s0]]  ;;  %s1541_s8 = sshll.u32 %s1323_s3, 3 }
  0x8c   : >> { %s1545_s11 = sld [smem:[#allocation2 + %s2128_s27]]  ;;  %s2130_s22 = sadd.s32 2, %s1517_s0 }
  0x8d   : >> { %s406_s1 = sld [smem:[#allocation2 + %s2130_s22]]  ;;  %s2129_s2 = sadd.s32 3, %s1517_s0 }
  0x8e   : >> { %s408_s4 = sld [smem:[#allocation2 + %s2129_s2]]  ;;  %s2135_s27 = sadd.s32 6, %s1517_s0 }
  0x8f   : >> { %s2200_s6 = scalar_lea.vmem [#allocation7], %s2198_s7  ;;  %s1577_s22 = sld [smem:[#allocation2 + %s2135_s27]] }
  0x90   : >> { %s374_s18 = scalar_lea.vmem %s2200_s6, %s1541_s8 [#allocation7]  ;;  %s2139_s6 = sadd.s32 5, %s1517_s0 }
  0x91   : >> { %v1554_v8 = vld [vmem:[%s374_s18] sm:$0xff]  ;;  %v1558_v9 = vld [vmem:[%s374_s18 + $0x10] sm:$0xff]  ;;  %v420_v12 = vstv %s1537_s15  ;;  %s1573_s2 = sld [smem:[#allocation2 + %s2139_s6]]  ;;  %s2138_s7 = sadd.s32 8, %s1517_s0 }
  0x92   : >> { %v1560_v10 = vld [vmem:[%s374_s18 + $0x20] sm:$0xff]  ;;  %v1562_v11 = vld [vmem:[%s374_s18 + $0x30] sm:$0xff]  ;;  %v427_v15 = vstv %s1545_s11  ;;  %s2136_s18 = sadd.s32 7, %s1517_s0  ;;  %v421_v16 = vmax.f32 %v1554_v8, %v420_v12  ;;  %s1589_s28 = sld [smem:[#allocation2 + %s2138_s7]]  ;;  %vm393_vm12 = vcmp.ge.f32.partialorder %v1554_v8, 0.0  ;;  %vm394_vm13 = vcmp.ge.f32.partialorder %v1558_v9, 0.0 }
  0x93   : >> { %v385_v13 = vsub.f32 %v1560_v10, %v1554_v8  ;;  %v387_v14 = vsub.f32 %v1562_v11, %v1558_v9  ;;  %s1585_s29 = sld [smem:[#allocation2 + %s2136_s18]]  ;;  %s409_s25 = ssub.f32 %s406_s1, %s1537_s15  ;;  %v418_v17 = vstv %s406_s1  ;;  %v428_v18 = vmax.f32 %v1558_v9, %v427_v15 }
  0x94   : >> { %s411_s27 = ssub.f32 %s408_s4, %s1545_s11  ;;  %v419_v21 = vmin.f32 %v1560_v10, %v418_v17  ;;  %v425_v22 = vstv %s408_s4  ;;  %s2137_s1 = sadd.s32 10, %s1517_s0 }
  0x95   : >> { %v1593_v19 = vadd.f32 1.0, %v385_v13  ;;  %v1595_v20 = vadd.f32 1.0, %v387_v14  ;;  %s1599_s18 = sadd.f32 1.0, %s409_s25  ;;  %v426_v23 = vmin.f32 %v1562_v11, %v425_v22  ;;  %v475_v26 = vstv %s1577_s22  ;;  %s1611_s4 = sld [smem:[#allocation2 + %s2137_s1]] }
  0x96   : >> { %s1603_s15 = sadd.f32 1.0, %s411_s27  ;;  %v422_v24 = vsub.f32 %v419_v21, %v421_v16  ;;  %v476_v29 = vmax.f32 %v1558_v9, %v475_v26  ;;  %s2142_s25 = sadd.s32 11, %s1517_s0 }
  0x97   : >> { %v468_v25 = vstv %s1573_s2  ;;  %v429_v27 = vsub.f32 %v426_v23, %v428_v18  ;;  %v1616_v30 = vmul.f32 %v1595_v20, %v1593_v19  ;;  %p414_p4 = scmp.eq.f32.partialorder %s1599_s18, 1.0  ;;  %s1632_s7 = sld [smem:[#allocation2 + %s2142_s25]]  ;;  %vm390_vm0 = vcmp.eq.f32.partialorder %v1593_v19, 1.0 }
  0x98   : >> { %v469_v28 = vmax.f32 %v1554_v8, %v468_v25  ;;  %s413_s27 = smul.f32 %s1603_s15, %s1599_s18  ;;  %v423_v31 = vadd.f32 1.0, %v422_v24  ;;  %v473_v33 = vstv %s1589_s28  ;;  %p415_p6 = scmp.eq.f32.partialorder %s1603_s15, 1.0  ;;  %vm391_vm1 = vcmp.eq.f32.partialorder %v1595_v20, 1.0 }
  0x99   : >> { %v466_v32 = vstv %s1585_s29  ;;  %v430_v34 = vadd.f32 1.0, %v429_v27  ;;  %s457_s11 = ssub.f32 %s1585_s29, %s1573_s2  ;;  %v474_v36 = vmin.f32 %v1562_v11, %v473_v33  ;;  %s2140_s2 = sadd.s32 12, %s1517_s0  ;;  %vm1781_vm3 = vmand %vm390_vm0, %vm391_vm1 }
  0x9a   : >> { %v467_v35 = vmin.f32 %v1560_v10, %v466_v32  ;;  %v424_v37 = vmax.f32 %v423_v31, 0.0  ;;  %v433_v38 = vstv %s413_s27  ;;  %s459_s1 = ssub.f32 %s1589_s28, %s1577_s22  ;;  %s505_s28 = sld [smem:[#allocation2 + %s2140_s2]] }
  0x9b   : >> { %v431_v39 = vmax.f32 %v430_v34, 0.0  ;;  %s1634_s6 = sadd.f32 1.0, %s457_s11  ;;  %v477_v41 = vsub.f32 %v474_v36, %v476_v29  ;;  %v434_v42 = vadd.f32 %v433_v38, %v1616_v30  ;;  %s2141_s22 = sadd.s32 13, %s1517_s0  ;;  %v519_v49 = vstv %s1611_s4 }
  0x9c   : >> { %v470_v40 = vsub.f32 %v467_v35, %v469_v28  ;;  %s1640_s29 = sadd.f32 1.0, %s459_s1  ;;  %p1649_p10 = pnand %p415_p6, %p414_p4  ;;  %v520_v54 = vmax.f32 %v1554_v8, %v519_v49 }
  0x9d   : >> { %v1638_v43 = vmul.f32 %v431_v39, %v424_v37  ;;  %v478_v45 = vadd.f32 1.0, %v477_v41  ;;  %s507_s1 = sld [smem:[#allocation2 + %s2141_s22]]  ;;  %v526_v53 = vstv %s1632_s7  ;;  %s2145_s18 = sadd.s32 15, %s1517_s0 }
  0x9e   : >> { %v471_v44 = vadd.f32 1.0, %v470_v40  ;;  %s461_s11 = smul.f32 %s1640_s29, %s1634_s6  ;;  %s2144_s15 = sadd.s32 16, %s1517_s0  ;;  %v527_v58 = vmax.f32 %v1558_v9, %v526_v53 }
  0x9f   : >> { %v479_v47 = vmax.f32 %v478_v45, 0.0  ;;  %v435_v48 = vsub.f32 %v434_v42, %v1638_v43  ;;  %s1677_s25 = sld [smem:[#allocation2 + %s2144_s15]]  ;;  %s2147_s24 = sadd.s32 17, %s1517_s0 }
  0xa0   : >> { %v472_v46 = vmax.f32 %v471_v44, 0.0  ;;  %v481_v50 = vstv %s461_s11  ;;  %s508_s22 = ssub.f32 %s505_s28, %s1611_s4  ;;  %v517_v56 = vstv %s505_s28  ;;  %s1671_s11 = sld [smem:[#allocation2 + %s2145_s18]] }
  0xa1   : >> { %v482_v52 = vadd.f32 %v481_v50, %v1616_v30  ;;  %v436_v55 = vmax.f32 %v435_v48, 1e-10  ;;  %v518_v57 = vmin.f32 %v1560_v10, %v517_v56  ;;  %s1685_s4 = sld [smem:[#allocation2 + %s2147_s24]]  ;;  %s2146_s15 = sadd.s32 18, %s1517_s0 }
  0xa2   : >> { %v1659_v51 = vmul.f32 %v479_v47, %v472_v46  ;;  %s1681_s2 = sadd.f32 1.0, %s508_s22  ;;  %s1692_s18 = sld [smem:[#allocation2 + %s2146_s15]] }
  0xa3   : >> { %v524_v60 = vstv %s507_s1  ;;  %s510_s28 = ssub.f32 %s507_s1, %s1632_s7  ;;  %v521_v61 = vsub.f32 %v518_v57, %v520_v54  ;;  %1174 = vrcp.f32 %v436_v55  ;;  %p462_p7 = scmp.eq.f32.partialorder %s1634_s6, 1.0 }
  0xa4   : >> { %v483_v59 = vsub.f32 %v482_v52, %v1659_v51  ;;  %v525_v62 = vmin.f32 %v1562_v11, %v524_v60  ;;  %s2149_s7 = sadd.s32 20, %s1517_s0  ;;  %p463_p8 = scmp.eq.f32.partialorder %s1640_s29, 1.0 }
  0xa5   : >> { %s1694_s22 = sadd.f32 1.0, %s510_s28  ;;  %v522_v63 = vadd.f32 1.0, %v521_v61  ;;  %v577_v6 = vstv %s1677_s25  ;;  %s1709_s15 = sld [smem:[#allocation2 + %s2149_s7]] }
  0xa6   : >> { %v528_v0 = vsub.f32 %v525_v62, %v527_v58  ;;  %v484_v1 = vmax.f32 %v483_v59, 1e-10  ;;  %v570_v2 = vstv %s1671_s11  ;;  %s2148_s24 = sadd.s32 21, %s1517_s0  ;;  %p513_p12 = scmp.eq.f32.partialorder %s1681_s2, 1.0  ;;  %v578_v17 = vmax.f32 %v1558_v9, %v577_v6 }
  0xa7   : >> { %s512_s1 = smul.f32 %s1694_s22, %s1681_s2  ;;  %v523_v3 = vmax.f32 %v522_v63, 0.0  ;;  %v571_v5 = vmax.f32 %v1554_v8, %v570_v2  ;;  %s559_s28 = ssub.f32 %s1685_s4, %s1671_s11  ;;  %v568_v7 = vstv %s1685_s4 }
  0xa8   : >> { %v529_v4 = vadd.f32 1.0, %v528_v0  ;;  %v569_v14 = vmin.f32 %v1560_v10, %v568_v7  ;;  %1176 = vrcp.f32 %v484_v1  ;;  %v575_v16 = vstv %s1692_s18  ;;  %s1719_s11 = sld [smem:[#allocation2 + %s2148_s24]]  ;;  %p514_p13 = scmp.eq.f32.partialorder %s1694_s22, 1.0 }
  0xa9   : >> { %v532_v13 = vstv %s512_s1  ;;  %s1724_s4 = sadd.f32 1.0, %s559_s28  ;;  %v576_v22 = vmin.f32 %v1562_v11, %v575_v16  ;;  %p1731_p5 = pnand %p463_p8, %p462_p7 }
  0xaa   : >> { %v530_v12 = vmax.f32 %v529_v4, 0.0  ;;  %v533_v15 = vadd.f32 %v532_v13, %v1616_v30  ;;  %v572_v21 = vsub.f32 %v569_v14, %v571_v5  ;;  %s561_s24 = ssub.f32 %s1692_s18, %s1677_s25  ;;  %s2151_s7 = sadd.s32 22, %s1517_s0 }
  0xab   : >> { %s2150_s28 = sadd.s32 23, %s1517_s0  ;;  %v579_v26 = vsub.f32 %v576_v22, %v578_v17  ;;  %s1744_s6 = sld [smem:[#allocation2 + %s2151_s7]]  ;;  %v621_v32 = vstv %s1709_s15 }
  0xac   : >> { %v1722_v18 = vmul.f32 %v530_v12, %v523_v3  ;;  %v573_v24 = vadd.f32 1.0, %v572_v21  ;;  %s1740_s9 = sadd.f32 1.0, %s561_s24  ;;  %p1753_p9 = pnand %p514_p13, %p513_p12  ;;  %v622_v38 = vmax.f32 %v1554_v8, %v621_v32 }
  0xad   : >> { %v1175_v25 = vpop.eup %1174  ;;  %s2203_s29 = scalar_select %p1649_p10, 0, 1  ;;  %v580_v31 = vadd.f32 1.0, %v579_v26 }
  0xae   : >> { %v534_v23 = vsub.f32 %v533_v15, %v1722_v18  ;;  %s1759_s18 = sld [smem:[#allocation2 + %s2150_s28]]  ;;  %s563_s24 = smul.f32 %s1740_s9, %s1724_s4  ;;  %v574_v29 = vmax.f32 %v573_v24, 0.0  ;;  %v438_v33 = vmul.f32 %v1175_v25, %v1638_v43  ;;  %v628_v34 = vstv %s1719_s11 }
  0xaf   : >> { %v440_v27 = vstv %s2203_s29  ;;  %s1044_s2 = scalar_select %p1731_p5, 0, 1  ;;  %v581_v35 = vmax.f32 %v580_v31, 0.0  ;;  %v629_v42 = vmax.f32 %v1558_v9, %v628_v34 }
  0xb0   : >> { %v535_v28 = vmax.f32 %v534_v23, 1e-10  ;;  %vm441_vm2 = vcmp.eq.s32.totalorder %v440_v27, 1  ;;  %v583_v36 = vstv %s563_s24  ;;  %s1045_s27 = scalar_select %p1753_p9, 0, 1  ;;  %v1328_v27 = vmov 0.0  }
  0xb1   : >> { %v584_v37 = vadd.f32 %v583_v36, %v1616_v30  ;;  %p564_p11 = scmp.eq.f32.partialorder %s1724_s4, 1.0  ;;  %v1775_v40 = vmul.f32 %v581_v35, %v574_v29  ;;  %v619_v41 = vstv %s1744_s6  ;;  %v442_v44 = vsel %vm441_vm2, 0.0, %v438_v33  ;;  %p565_p1 = scmp.eq.f32.partialorder %s1740_s9, 1.0 }
  0xb2   : >> { %1178 = vrcp.f32 %v535_v28  ;;  %v1177_v39 = vpop.eup %1176  ;;  %v488_v45 = vstv %s1044_s2  ;;  %s610_s22 = ssub.f32 %s1744_s6, %s1709_s15  ;;  %v620_v46 = vmin.f32 %v1560_v10, %v619_v41  ;;  %v1799_v53 = vsel %vm1781_vm3, -1.0, %v442_v44  ;;  %s492_s15 = sadd.s32 1, %s2197_s14 }
  0xb3   : >> { %v585_v48 = vsub.f32 %v584_v37, %v1775_v40  ;;  %v486_v50 = vmul.f32 %v1177_v39, %v1659_v51  ;;  %vm489_vm4 = vcmp.eq.s32.totalorder %v488_v45, 1  ;;  %p1808_p3 = pnand %p565_p1, %p564_p11  ;;  %s1815_s24 = sld [smem:[#allocation6 + %s2197_s14]]  ;;  %vm447_vm5 = vcmp.gt.f32.partialorder %v1799_v53, -1e+30 }
  0xb4   : >> { %v626_v47 = vstv %s1759_s18  ;;  %s612_s1 = ssub.f32 %s1759_s18, %s1719_s11  ;;  %v623_v52 = vsub.f32 %v620_v46, %v622_v38  ;;  %s1818_s2 = sld [smem:[#allocation6 + %s492_s15]]  ;;  %v539_v59 = vstv %s1045_s27  ;;  %v448_v1 = vsel %vm447_vm5, %v1799_v53, -1e+30 }
  0xb5   : >> { %v627_v49 = vmin.f32 %v1562_v11, %v626_v47  ;;  %s1795_s29 = sadd.f32 1.0, %s610_s22  ;;  %v586_v54 = vmax.f32 %v585_v48, 1e-10  ;;  %v490_v58 = vsel %vm489_vm4, 0.0, %v486_v50  ;;  %s543_s9 = sadd.s32 2, %s2197_s14  ;;  %vm540_vm6 = vcmp.eq.s32.totalorder %v539_v59, 1 }
  0xb6   : >> { %s1802_s11 = sadd.f32 1.0, %s612_s1  ;;  %v624_v51 = vadd.f32 1.0, %v623_v52  ;;  %s594_s4 = sadd.s32 3, %s2197_s14  ;;  %v491_v2 = vsel %vm1781_vm3, -1.0, %v490_v58  ;;  %v1979_v35 = vmul.f32 0.5, %v1593_v19 }
  0xb7   : >> { %v630_v55 = vsub.f32 %v627_v49, %v629_v42  ;;  %1180 = vrcp.f32 %v586_v54  ;;  %s1046_s22 = scalar_select %p1808_p3, 0, 1  ;;  %vm497_vm7 = vcmp.gt.f32.partialorder %v491_v2, %v448_v1 }
  0xb8   : >> { %s614_s18 = smul.f32 %s1802_s11, %s1795_s29  ;;  %v625_v60 = vmax.f32 %v624_v51, 0.0  ;;  %s645_s25 = sadd.s32 4, %s2197_s14  ;;  %v498_v12 = vsel %vm497_vm7, %v491_v2, %v448_v1  ;;  %v499_v28 = vsel %vm497_vm7, 1.0, %v1328_v27  ;;  %vm395_vm7 = vmand %vm393_vm12, %vm394_vm13 }
  0xb9   : >> { %v631_v56 = vadd.f32 1.0, %v630_v55  ;;  %p615_p0 = scmp.eq.f32.partialorder %s1795_s29, 1.0  ;;  %p616_p2 = scmp.eq.f32.partialorder %s1802_s11, 1.0  ;;  %v590_v5 = vstv %s1046_s22  ;;  %v445_v14 = vstv %s1815_s24 }
  0xba   : >> { %v634_v62 = vstv %s614_s18  ;;  %s1837_s27 = sld [smem:[#allocation6 + %s543_s9]]  ;;  %s2208_s11 = sadd.s32 1, %s1517_s0  ;;  %vm591_vm8 = vcmp.eq.s32.totalorder %v590_v5, 1  ;;  %v494_v15 = vstv %s1818_s2  ;;  %vm1906_vm10 = vcmp.eq.f32.partialorder %v1799_v53, %v445_v14 }
  0xbb   : >> { %v632_v61 = vmax.f32 %v631_v56, 0.0  ;;  %v635_v0 = vadd.f32 %v634_v62, %v1616_v30  ;;  %s1839_s1 = sld [smem:[#allocation6 + %s594_s4]]  ;;  %s2209_s9 = sadd.s32 2, %s1517_s0  ;;  %vm1910_vm11 = vcmp.eq.f32.partialorder %v491_v2, %v494_v15 }
  0xbc   : >> { %v1179_v57 = vpop.eup %1178  ;;  %s1842_s15 = sld [smem:[#allocation6 + %s645_s25]]  ;;  %p1857_p4 = pnand %p616_p2, %p615_p0  ;;  %vm496_vm0 = vmor %vm1906_vm10, %vm1910_vm11 }
  0xbd   : >> { %v537_v63 = vmul.f32 %v1179_v57, %v1722_v18  ;;  %v1832_v3 = vmul.f32 %v632_v61, %v625_v60  ;;  %s1845_s6 = sld [smem:[#allocation2 + %s1517_s0]]  ;;  %s2211_s22 = sadd.s32 3, %s1517_s0 }
  0xbe   : >> { %s1849_s18 = sld [smem:[#allocation2 + %s2208_s11]]  ;;  %s2214_s29 = sadd.s32 5, %s1517_s0 }
  0xbf   : >> { %v636_v30 = vsub.f32 %v635_v0, %v1832_v3  ;;  %v541_v4 = vsel %vm540_vm6, 0.0, %v537_v63  ;;  %s1853_s4 = sld [smem:[#allocation2 + %s2209_s9]]  ;;  %s2215_s9 = sadd.s32 6, %s1517_s0 }
  0xc0   : >> { %s2212_s16 = sld [smem:[#allocation25_spill]]  ;;  %s2213_s10 = sld [smem:[#allocation24_spill]]  ;;  %v542_v13 = vsel %vm1781_vm3, -1.0, %v541_v4  ;;  %v545_v24 = vstv %s1837_s27  ;;  %v1329_v4 = vmov -1.0  }
  0xc1   : >> { %v637_v6 = vmax.f32 %v636_v30, 1e-10  ;;  %s1863_s25 = sld [smem:[#allocation2 + %s2211_s22]]  ;;  %v1181_v7 = vpop.eup %1180  ;;  %s2216_s22 = sadd.s32 7, %s1517_s0  ;;  %vm548_vm9 = vcmp.gt.f32.partialorder %v542_v13, %v498_v12  ;;  %vm1954_vm1 = vcmp.eq.f32.partialorder %v542_v13, %v545_v24  ;;  %v596_v31 = vstv %s1839_s1 }
  0xc2   : >> { %s1870_s11 = sld [smem:[#allocation2 + %s2214_s29]]  ;;  %v588_v16 = vmul.f32 %v1181_v7, %v1775_v40  ;;  %s2217_s21 = sadd.s32 8, %s1517_s0  ;;  %v549_v25 = vsel %vm548_vm9, %v542_v13, %v498_v12  ;;  %v647_v33 = vstv %s1842_s15  ;;  %vm1991_vm4 = vmor %vm496_vm0, %vm1954_vm1 }
  0xc3   : >> { %1182 = vrcp.f32 %v637_v6  ;;  %s1874_s7 = sld [smem:[#allocation2 + %s2215_s9]]  ;;  %s2218_s19 = sadd.s32 10, %s1517_s0  ;;  %v663_v34 = vstv %s1845_s6 }
  0xc4   : >> { %s1881_s14 = sld [smem:[#allocation2 + %s2216_s22]]  ;;  %s2219_s26 = sadd.s32 11, %s1517_s0  ;;  %v592_v21 = vsel %vm591_vm8, 0.0, %v588_v16  ;;  %1184 = vrcp.f32 %v1593_v19  ;;  %v666_v36 = vstv %s1849_s18  ;;  %v550_v19 = vsel %vm548_vm9, 2.0, %v499_v28 }
  0xc5   : >> { %s1885_s13 = sld [smem:[#allocation2 + %s2217_s21]]  ;;  %s2228_s28 = sadd.s32 15, %s1517_s0  ;;  %v593_v26 = vsel %vm1781_vm3, -1.0, %v592_v21  ;;  %1186 = vrcp.f32 %v1595_v20  ;;  %v669_v37 = vstv %s1853_s4 }
  0xc6   : >> { %s1889_s29 = sld [smem:[#allocation2 + %s2218_s19]]  ;;  %s2220_s5 = sfloor.f32 %s2212_s16  ;;  %vm599_vm2 = vcmp.gt.f32.partialorder %v593_v26, %v549_v25  ;;  %vm1996_vm5 = vcmp.eq.f32.partialorder %v593_v26, %v596_v31 }
  0xc7   : >> { %s1893_s9 = sld [smem:[#allocation2 + %s2219_s26]]  ;;  %v1897_v17 = vstv %s2220_s5  ;;  %s2221_s24 = sfloor.f32 %s2213_s10  ;;  %v672_v38 = vstv %s1863_s25  ;;  %v600_v48 = vsel %vm599_vm2, %v593_v26, %v549_v25  ;;  %vm598_vm8 = vmor %vm1991_vm4, %vm1996_vm5  ;;  %v601_v53 = vsel %vm599_vm2, 3.0, %v550_v19 }
  0xc8   : >> { %v1901_v18 = vstv %s2221_s24  ;;  %s1047_s21 = scalar_select %p1857_p4, 0, 1  ;;  %vm397_vm14 = vcmp.lt.f32.partialorder %v1560_v10, %v1897_v17  ;;  %v676_v42 = vstv %s1870_s11  ;;  %v730_v26 = vmul.f32 0.5, %v1595_v20 }
  0xc9   : >> { %s2226_s5 = sadd.s32 12, %s1517_s0  ;;  %s2227_s26 = sadd.s32 13, %s1517_s0  ;;  %vm400_vm15 = vcmp.lt.f32.partialorder %v1562_v11, %v1901_v18  ;;  %v679_v45 = vstv %s1874_s7  ;;  %vm2028_vm9 = vmand %vm395_vm7, %vm397_vm14  ;;  %v729_v19 = vadd.f32 %v1979_v35, %v1554_v8 }
  0xca   : >> { %s1917_s19 = sld [smem:[#allocation2 + %s2226_s5]]  ;;  %s2229_s24 = sadd.s32 16, %s1517_s0  ;;  %v641_v32 = vstv %s1047_s21  ;;  %v682_v46 = vstv %s1881_s14  ;;  %vm2050_vm1 = vmand %vm2028_vm9, %vm400_vm15  ;;  %v731_v41 = vadd.f32 %v1558_v9, %v730_v26 }
  0xcb   : >> { %s1921_s2 = sld [smem:[#allocation2 + %s2227_s26]]  ;;  %s2230_s27 = sadd.s32 17, %s1517_s0  ;;  %vm642_vm6 = vcmp.eq.s32.totalorder %v641_v32, 1  ;;  %v685_v47 = vstv %s1885_s13 }
  0xcc   : >> { %s1927_s22 = sld [smem:[#allocation2 + %s2228_s28]]  ;;  %s2231_s26 = sadd.s32 18, %s1517_s0  ;;  %v689_v49 = vstv %s1889_s29 }
  0xcd   : >> { %s1931_s10 = sld [smem:[#allocation2 + %s2229_s24]]  ;;  %s2234_s24 = sadd.s32 20, %s1517_s0  ;;  %v1183_v39 = vpop.eup %1182  ;;  %v692_v50 = vstv %s1893_s9 }
  0xce   : >> { %s1940_s5 = sld [smem:[#allocation2 + %s2230_s27]]  ;;  %s2236_s17 = sadd.s32 22, %s1517_s0  ;;  %v639_v44 = vmul.f32 %v1183_v39, %v1832_v3  ;;  %v1185_v63 = vpop.eup %1184 }
  0xcf   : >> { %s1944_s28 = sld [smem:[#allocation2 + %s2231_s26]]  ;;  %s2235_s26 = sadd.s32 21, %s1517_s0  ;;  %v1187_v3 = vpop.eup %1186 }
  0xd0   : >> { %s1961_s27 = sld [smem:[#allocation2 + %s2234_s24]]  ;;  %s2237_s12 = sadd.s32 23, %s1517_s0  ;;  %v695_v52 = vstv %s1917_s19  ;;  %v643_v54 = vsel %vm642_vm6, 0.0, %v639_v44 }
  0xd1   : >> { %s1965_s16 = sld [smem:[#allocation2 + %s2235_s26]]  ;;  %v698_v55 = vstv %s1921_s2  ;;  %v644_v56 = vsel %vm1781_vm3, -1.0, %v643_v54 }
  0xd2   : >> { %s1971_s23 = sld [smem:[#allocation2 + %s2236_s17]]  ;;  %v702_v51 = vstv %s1927_s22  ;;  %vm648_vm10 = vcmp.eq.f32.partialorder %v644_v56, %v647_v33  ;;  %vm650_vm11 = vcmp.gt.f32.partialorder %v644_v56, %v600_v48 }
  0xd3   : >> { %s1975_s3 = sld [smem:[#allocation2 + %s2237_s12]]  ;;  %v705_v57 = vstv %s1931_s10  ;;  %vm2039_vm3 = vmor %vm598_vm8, %vm648_vm10  ;;  %v651_v0 = vsel %vm650_vm11, %v644_v56, %v600_v48  ;;  %v652_v10 = vsel %vm650_vm11, 4.0, %v601_v53 }
  0xd4   : >> { %v708_v58 = vstv %s1940_s5  ;;  %vm653_vm12 = vcmp.lt.f32.partialorder %v651_v0, 0.3  ;;  %vm656_vm13 = vcmp.ge.f32.partialorder %v651_v0, 0.7  ;;  %vm661_vm14 = vcmp.eq.f32.partialorder %v652_v10, 0.0  ;;  %s2248_s12 = sld [smem:[#allocation27_spill]] }
  0xd5   : >> { %v711_v59 = vstv %s1944_s28  ;;  %vm674_vm0 = vcmp.eq.f32.partialorder %v652_v10, 1.0  ;;  %v654_v5 = vsel %vm653_vm12, 0.0, %v1329_v4  ;;  %v664_v6 = vsel %vm661_vm14, %v663_v34, 0.0 }
  0xd6   : >> { %v715_v61 = vstv %s1961_s27  ;;  %v667_v7 = vsel %vm661_vm14, %v666_v36, 0.0  ;;  %v670_v12 = vsel %vm661_vm14, %v669_v37, 0.0  ;;  %v655_v13 = vsel %vm2039_vm3, 1.0, %v654_v5 }
  0xd7   : >> { %v718_v62 = vstv %s1965_s16  ;;  %v673_v14 = vsel %vm661_vm14, %v672_v38, 0.0  ;;  %v677_v15 = vsel %vm674_vm0, %v676_v42, %v664_v6  ;;  %v680_v16 = vsel %vm674_vm0, %v679_v45, %v667_v7 }
  0xd8   : >> { %v721_v1 = vstv %s1971_s23  ;;  %v657_v17 = vsel %vm656_vm13, 1.0, %v655_v13  ;;  %v683_v11 = vsel %vm674_vm0, %v682_v46, %v670_v12  ;;  %v686_v18 = vsel %vm674_vm0, %v685_v47, %v673_v14  ;;  %s743_s23 = scalar_lea.vmem %s1529_s20, %s1541_s8 [#allocation8] }
  0xd9   : >> { %v724_v2 = vstv %s1975_s3  ;;  %s659_s3 = scalar_lea.vmem %s1522_s30, %s1541_s8  ;;  %vm687_vm2 = vcmp.eq.f32.partialorder %v652_v10, 2.0  ;;  %v658_v21 = vsel %vm2050_vm1, %v657_v17, -1.0  ;;  %vm700_vm15 = vcmp.eq.f32.partialorder %v652_v10, 3.0 }
  0xda   : >> { %v690_v22 = vsel %vm687_vm2, %v689_v49, %v677_v15  ;;  %v693_v23 = vsel %vm687_vm2, %v692_v50, %v680_v16  ;;  %v696_v24 = vsel %vm687_vm2, %v695_v52, %v683_v11  ;;  %660 = vst [vmem:[%s659_s3] sm:$0xff] %v658_v21  ;;  %v699_v25 = vsel %vm687_vm2, %v698_v55, %v686_v18  ;;  %s372_s3 = sadd.s32 1, %s2248_s12  }
  0xdb   : >> { %vm713_vm4 = vcmp.eq.f32.partialorder %v652_v10, 4.0  ;;  %v703_v27 = vsel %vm700_vm15, %v702_v51, %v690_v22  ;;  %v706_v28 = vsel %vm700_vm15, %v705_v57, %v693_v23  ;;  %v709_v29 = vsel %vm700_vm15, %v708_v58, %v696_v24  ;;  %p369_p6 = scmp.ge.s32.totalorder %s372_s3, 2  }
  0xdc   : >> { %v712_v31 = vsel %vm700_vm15, %v711_v59, %v699_v25  ;;  %v716_v32 = vsel %vm713_vm4, %v715_v61, %v703_v27  ;;  %v719_v33 = vsel %vm713_vm4, %v718_v62, %v706_v28  ;;  %v722_v34 = vsel %vm713_vm4, %v721_v1, %v709_v29  ;;  %s2249_s13 = sld [smem:[#allocation20_spill]] (%p369_p6) }
  0xdd   : >> { %v725_v36 = vsel %vm713_vm4, %v724_v2, %v712_v31  ;;  %v732_v37 = vsub.f32 %v722_v34, %v716_v32 }
  0xde   : >> { %v734_v38 = vsub.f32 %v725_v36, %v719_v33 }
  0xdf   : >> { %v733_v39 = vadd.f32 1.0, %v732_v37 }
  0xe0   : >> { %v735_v40 = vadd.f32 1.0, %v734_v38 }
  0xe1   : >> { %v736_v20 = vmul.f32 0.5, %v733_v39  ;;  %v750_v44 = vmul.f32 %v1185_v63, %v733_v39 }
  0xe2   : >> { %v738_v42 = vmul.f32 0.5, %v735_v40  ;;  %v756_v45 = vmul.f32 %v1187_v3, %v735_v40  ;;  %p2250_p10 = scmp.ne.s32.totalorder (%p369_p6), %s2249_s13, 0 }
  0xe3   : >> { %v737_v46 = vadd.f32 %v736_v20, %v716_v32  ;;  %1188 = vlog2.f32 %v750_v44 }
  0xe4   : >> { %v739_v47 = vadd.f32 %v738_v42, %v719_v33  ;;  %1190 = vlog2.f32 %v756_v45 }
  0xe5   : >> { %v740_v48 = vsub.f32 %v737_v46, %v729_v19 }
  0xe6   : >> { %v745_v49 = vsub.f32 %v739_v47, %v731_v41 }
  0xe7   : >> { %v741_v50 = vmul.f32 %v1185_v63, %v740_v48 }
  0xe8   : >> { %v746_v52 = vmul.f32 %v1187_v3, %v745_v49 }
  0xe9   : >> { %v742_v53 = vsel %vm2050_vm1, %v741_v50, 0.0 }
  0xea   : >> { %v747_v8 = vsel %vm2050_vm1, %v746_v52, 0.0  ;;  %744 = vst [vmem:[%s743_s23] sm:$0xff] %v742_v53 }
  0xeb   : >> { %1049 = vst [vmem:[%s743_s23 + $0x10] sm:$0xff] %v747_v8 }
  0xec   : > { %371 = sbr.rel (!%p369_p6) target bundleno = 137 (0x89), region = 188 }
  0xed   : >> { %v1189_v9 = vpop.eup %1188 }
  0xee   : >> { %v1191_v35 = vpop.eup %1190  ;;  %v752_v54 = vmul.f32 0.6931472, %v1189_v9 }
  0xef   : >> { %v758_v55 = vmul.f32 0.6931472, %v1191_v35 }
  0xf0   : >> { %v753_v51 = vsel %vm2050_vm1, %v752_v54, 0.0 }
  0xf1   : >> { %1051 = vst [vmem:[%s743_s23 + $0x20] sm:$0xff] %v753_v51  ;;  %v759_v56 = vsel %vm2050_vm1, %v758_v55, 0.0 }
  0xf2   : >> { %1053 = vst [vmem:[%s743_s23 + $0x30] sm:$0xff] %v759_v56 }
  0xf3   : > { %781 = sbr.rel (!%p2250_p10) target bundleno = 257 (0x101), region = 101  ;;  %s2251_s17 = sld [smem:[#allocation13_spill]] (%p2250_p10) }
  0xf4   : > { %s2252_s10 = sld [smem:[#allocation23_spill]] (%p2250_p10)  ;;  %s2253_s7 = sld [smem:[#allocation33_spill]] (%p2250_p10) }
  0xf9   : > { %s1056_s16 = sshll.u32 (%p2250_p10), %s2251_s17, 4  ;;  %v828_v57 = vld [vmem:[%s1529_s20] sm:$0xff] (%p2250_p10)  ;;  %v830_v58 = vld [vmem:[%s1529_s20 + $0x8] sm:$0xff] (%p2250_p10)  ;;  %v832_v59 = vld [vmem:[%s1529_s20 + $0x10] sm:$0xff] (%p2250_p10) }
  0xfa   : > { %s784_s14 = sadd.s32 %s1056_s16, %s2252_s10  ;;  %v834_v60 = vld [vmem:[%s1529_s20 + $0x18] sm:$0xff]  ;;  %v836_v61 = vld [vmem:[%s1529_s20 + $0x20] sm:$0xff]  ;;  %v838_v62 = vld [vmem:[%s1529_s20 + $0x28] sm:$0xff] }
  0xfb   : > { %s1057_s30 = sshll.u32 %s784_s14, 3  ;;  %v840_v63 = vld [vmem:[%s1529_s20 + $0x30] sm:$0xff]  ;;  %v842_v43 = vld [vmem:[%s1529_s20 + $0x38] sm:$0xff] }
  0xfc   : > { %s786_s1 = scalar_lea.vmem %s2253_s7, %s1057_s30 }
  0xfd   : > { %829 = vst [vmem:[%s786_s1] sm:$0xff] %v828_v57  ;;  %831 = vst [vmem:[%s786_s1 + $0x8] sm:$0xff] %v830_v58 }
  0xfe   : > { %833 = vst [vmem:[%s786_s1 + $0x20] sm:$0xff] %v832_v59  ;;  %835 = vst [vmem:[%s786_s1 + $0x28] sm:$0xff] %v834_v60 }
  0xff   : > { %837 = vst [vmem:[%s786_s1 + $0x40] sm:$0xff] %v836_v61  ;;  %839 = vst [vmem:[%s786_s1 + $0x48] sm:$0xff] %v838_v62 }
 0x100   : > { %841 = vst [vmem:[%s786_s1 + $0x60] sm:$0xff] %v840_v63  ;;  %843 = vst [vmem:[%s786_s1 + $0x68] sm:$0xff] %v842_v43 }
 0x101 PF: > { %s2254_s15 = sld [smem:[#allocation16_spill]]  ;;  %s2255_s18 = sld [smem:[#allocation11_spill]] }
 0x102   : > { %s2256_s19 = sld [smem:[#allocation21_spill]]  ;;  %s2257_s20 = sld [smem:[#allocation12_spill]] }
 0x103   : > { %s2258_s21 = sld [smem:[#allocation19_spill]]  ;;  %s2259_s22 = sld [smem:[#allocation14_spill]] }
 0x104   : > { %s2260_s23 = sld [smem:[#allocation15_spill]]  ;;  %s2261_s24 = sld [smem:[#allocation17_spill]] }
 0x105   : > { %s2262_s25 = sld [smem:[#allocation18_spill]] }
 0x107   : > { %s18_s26 = sadd.s32 1, %s2254_s15  }
 0x108   : > { %p15_p7 = scmp.ge.s32.totalorder %s18_s26, 6  }
 0x10a   :  { %17 = sbr.rel (!%p15_p7) target bundleno = 13 (0xd), region = 199 }
 0x111   :  { %871 = vsyncpa [#allocation3], 1 }
 0x112   :  { %873 = vsyncpa [#allocation3 + $0x1], 1 }
 0x113   :  { %874 = vsyncpa [#allocation5], 1 }

</bundles_post_ra>
